<compile_context>
chip_gen: v6e
topology: v6e:2x2x1
jax: 0.10.0
libtpu: 0.0.40
codegen_flags: <defaults>
</compile_context>

<pallas_src>
import functools

import jax
import jax.numpy as jnp
from jax.experimental import pallas as pl
from jax.experimental.pallas import tpu as pltpu

# ----- small synthetic hparams -----
ENC_EMB = 32          # encoder_embedding_dim
N_CONVS = 3           # encoder_n_convolutions
KSIZE = 5             # encoder_kernel_size
HID = ENC_EMB // 2    # per-direction LSTM hidden size
BN_EPS = 1e-5


# --------------------------------------------------------------------------
# Fused encoder kernel (one batch block of BP=8 rows per grid program)
# --------------------------------------------------------------------------
def _encoder_kernel(x_ref, mask_ref, convw_ref, scale_ref, shift_ref,
                    wih_ref, whh_ref, b_ref, out_ref, gin_ref, act_ref,
                    *, BP, T, C, K, H):
    pad = (K - 1) // 2
    TB = T * BP
    H2, H8 = 2 * H, 8 * H

    # -------- conv stack: tap-packed Conv1d + folded BatchNorm + ReLU --------
    # TODO(synk): nn.Dropout(0.5) is stochastic in training mode; eval-mode
    # identity is implemented here (exact for model.eval()).
    zrow = jnp.zeros((pad * BP, C), jnp.float32)
    act_ref[0:pad * BP, :] = zrow                         # zero pad frames once
    act_ref[(pad + T) * BP:(2 * pad + T) * BP, :] = zrow

    n_convs = convw_ref.shape[0]
    feats = None
    for layer in range(n_convs):
        src = x_ref if layer == 0 else act_ref            # zero-framed rows
        # im2col slab along the contraction axis: K aligned 8-row-strided views
        cols = jnp.concatenate(
            [src[k * BP:k * BP + TB, :] for k in range(K)], axis=-1)
        acc = jnp.dot(cols.astype(jnp.bfloat16), convw_ref[layer],
                      preferred_element_type=jnp.float32)  # (TB, C), 1 deep matmul
        y = jnp.maximum(acc * scale_ref[layer] + shift_ref[layer], 0.0)
        if layer + 1 < n_convs:
            act_ref[pad * BP:pad * BP + TB, :] = y         # interior for next layer
        else:
            feats = y                                      # (T*BP, C) LSTM input

    # -------- BiLSTM: hoisted input-hidden projection (both directions) -----
    # Merged gate layout (8H lanes): [i_f i_b | f_f f_b | g_f g_b | o_f o_b]
    gin_ref[...] = (jnp.dot(feats.astype(jnp.bfloat16), wih_ref[...],
                            preferred_element_type=jnp.float32)
                    + b_ref[...])                          # biases (ih+hh) folded

    whh = whh_ref[...]                                     # (2H, 8H) block-struct
    lane8 = jax.lax.broadcasted_iota(jnp.int32, (BP, H8), 1)
    fwd8 = (lane8 % H2) < H                                # fwd halves of gates
    lane2 = jax.lax.broadcasted_iota(jnp.int32, (BP, H2), 1)
    fwd2 = lane2 < H                                       # fwd half of state

    h = jnp.zeros((BP, H2), jnp.float32)                   # [h_fwd | h_bwd]
    c = jnp.zeros((BP, H2), jnp.float32)

    # One widened bidirectional cell per step: fwd walks t = s, bwd walks
    # t = T-1-s. Fully unrolled (T is small & static); for large T switch to
    # lax.fori_loop(..., unroll=4).
    for s in range(T):
        r = T - 1 - s
        g_in = jnp.where(fwd8,
                         gin_ref[s * BP:(s + 1) * BP, :],
                         gin_ref[r * BP:(r + 1) * BP, :])
        g = g_in + jnp.dot(h, whh, preferred_element_type=jnp.float32)
        i = jax.nn.sigmoid(g[:, 0:H2])                     # PyTorch order i,f,g,o
        f = jax.nn.sigmoid(g[:, H2:2 * H2])
        gg = jnp.tanh(g[:, 2 * H2:3 * H2])
        o = jax.nn.sigmoid(g[:, 3 * H2:4 * H2])
        c_new = f * c + i * gg
        h_new = o * jnp.tanh(c_new)
        m = jnp.where(fwd2,
                      mask_ref[s * BP:(s + 1) * BP, :],
                      mask_ref[r * BP:(r + 1) * BP, :])    # packed-seq mask
        out_s = m * h_new                                  # zero past each length
        h = out_s + (1.0 - m) * h
        c = m * c_new + (1.0 - m) * c
        out_ref[s * BP:(s + 1) * BP, 0:H] = out_s[:, 0:H]          # fwd @ time s
        out_ref[r * BP:(r + 1) * BP, H:H2] = out_s[:, H:H2]        # bwd @ time r


# --------------------------------------------------------------------------
# Encoder.forward wrapper (single pallas_call)
# --------------------------------------------------------------------------
@functools.partial(jax.jit, static_argnames=("max_len",))
def encoder_forward(x_bct, input_lengths, conv_params, lstm_params, *, max_len):
    conv_w, conv_scale, conv_shift = conv_params   # (N,K*C,C) bf16, (N,1,C) f32 x2
    wih, whh, b = lstm_params                      # (C,8H) bf16, (2H,8H), (1,8H)
    B, C, T = x_bct.shape
    K = conv_w.shape[1] // C
    H = whh.shape[0] // 2
    pad = (K - 1) // 2
    BP = 8                                          # batch rows per block (sublanes)
    NB = (B + BP - 1) // BP
    Bpad = NB * BP
    ROWS = (T + 2 * pad) * BP

    # Time-major, batch-block-padded, zero-framed rows:
    #   block n, row = (pad + t) * BP + b_local
    x_tbc = jnp.transpose(x_bct.astype(jnp.float32), (2, 0, 1))       # (T, B, C)
    x_tbc = jnp.pad(x_tbc, ((pad, pad), (0, Bpad - B), (0, 0)))
    x_rows = (x_tbc.reshape(T + 2 * pad, NB, BP, C)
              .transpose(1, 0, 2, 3).reshape(NB * ROWS, C))

    lengths = jnp.asarray(input_lengths, jnp.int32)
    m = (jnp.arange(T)[:, None] < lengths[None, :]).astype(jnp.float32)  # (T, B)
    m = jnp.pad(m, ((0, 0), (0, Bpad - B)))
    mask_rows = (m.reshape(T, NB, BP).transpose(1, 0, 2)[..., None]
                 * jnp.ones((2 * H,), jnp.float32)).reshape(NB * T * BP, 2 * H)

    kernel = functools.partial(_encoder_kernel, BP=BP, T=T, C=C, K=K, H=H)
    out_rows = pl.pallas_call(
        kernel,
        out_shape=jax.ShapeDtypeStruct((NB * T * BP, 2 * H), jnp.float32),
        grid=(NB,),
        in_specs=[
            pl.BlockSpec((ROWS, C), lambda n: (n, 0)),
            pl.BlockSpec((T * BP, 2 * H), lambda n: (n, 0)),
            pl.BlockSpec(conv_w.shape, lambda n: (0, 0, 0)),
            pl.BlockSpec(conv_scale.shape, lambda n: (0, 0, 0)),
            pl.BlockSpec(conv_shift.shape, lambda n: (0, 0, 0)),
            pl.BlockSpec(wih.shape, lambda n: (0, 0)),
            pl.BlockSpec(whh.shape, lambda n: (0, 0)),
            pl.BlockSpec(b.shape, lambda n: (0, 0)),
        ],
        out_specs=pl.BlockSpec((T * BP, 2 * H), lambda n: (n, 0)),
        scratch_shapes=[pltpu.VMEM((T * BP, 8 * H), jnp.float32),   # hoisted gates
                        pltpu.VMEM((ROWS, C), jnp.float32)],        # padded activ.
        compiler_params=pltpu.CompilerParams(dimension_semantics=("parallel",)),
    )(x_rows, mask_rows, conv_w, conv_scale, conv_shift, wih, whh, b)

    # dense padded block -> (B, T, 2H); pad_packed_sequence truncates to max_len
    out = out_rows.reshape(NB, T, BP, 2 * H).transpose(0, 2, 1, 3)
    out = out.reshape(Bpad, T, 2 * H)[:B, :max_len, :]
    return out


# --------------------------------------------------------------------------
# Parameter construction (deterministic, synthetic), pre-packed for the kernel
# --------------------------------------------------------------------------
def make_params(key):
    C, K, H = ENC_EMB, KSIZE, HID
    ws, scales, shifts = [], [], []
    for _ in range(N_CONVS):
        key, k1, k2, k3, k4, k5 = jax.random.split(key, 6)
        w = 0.1 * jax.random.normal(k1, (K, C, C), jnp.float32)   # w[k, ci, co]
        conv_bias = 0.05 * jax.random.normal(k2, (C,), jnp.float32)
        gamma = 1.0 + 0.1 * jax.random.normal(k3, (C,), jnp.float32)
        beta = 0.05 * jax.random.normal(k4, (C,), jnp.float32)
        running_mean = 0.05 * jax.random.normal(k5, (C,), jnp.float32)
        running_var = jnp.ones((C,), jnp.float32)
        s = gamma / jnp.sqrt(running_var + BN_EPS)     # fold conv bias + eval BN
        ws.append(w.reshape(K * C, C))                 # tap-packed (K*C, C)
        scales.append(s[None, :])
        shifts.append((conv_bias * s + beta - running_mean * s)[None, :])
    conv_w = jnp.stack(ws).astype(jnp.bfloat16)        # (N_CONVS, K*C, C) bf16
    conv_scale = jnp.stack(scales)                     # (N_CONVS, 1, C)
    conv_shift = jnp.stack(shifts)                     # (N_CONVS, 1, C)

    key, k1, k2, k3, k4, k5, k6, k7, k8 = jax.random.split(key, 9)
    wih_f = 0.1 * jax.random.normal(k1, (C, 4 * H), jnp.float32)   # [i|f|g|o]
    whh_f = 0.1 * jax.random.normal(k2, (H, 4 * H), jnp.float32)
    b_f = (0.05 * jax.random.normal(k3, (4 * H,), jnp.float32)
           + 0.05 * jax.random.normal(k4, (4 * H,), jnp.float32))[None, :]
    wih_b = 0.1 * jax.random.normal(k5, (C, 4 * H), jnp.float32)
    whh_b = 0.1 * jax.random.normal(k6, (H, 4 * H), jnp.float32)
    b_b = (0.05 * jax.random.normal(k7, (4 * H,), jnp.float32)
           + 0.05 * jax.random.normal(k8, (4 * H,), jnp.float32))[None, :]

    # Merged widened-cell gate layout: [i_f i_b | f_f f_b | g_f g_b | o_f o_b]
    def merge_cols(wf, wb):
        blocks = []
        for q in range(4):
            blocks.append(wf[..., q * H:(q + 1) * H])
            blocks.append(wb[..., q * H:(q + 1) * H])
        return jnp.concatenate(blocks, axis=-1)

    wih_m = merge_cols(wih_f, wih_b).astype(jnp.bfloat16)   # (C, 8H) bf16
    b_m = merge_cols(b_f, b_b)                              # (1, 8H) = b_ih + b_hh
    whh_m = jnp.zeros((2 * H, 8 * H), jnp.float32)          # block-structured
    for q in range(4):
        whh_m = whh_m.at[:H, (2 * q) * H:(2 * q + 1) * H].set(
            whh_f[:, q * H:(q + 1) * H])
        whh_m = whh_m.at[H:, (2 * q + 1) * H:(2 * q + 2) * H].set(
            whh_b[:, q * H:(q + 1) * H])
    return (conv_w, conv_scale, conv_shift), (wih_m, whh_m, b_m)


if __name__ == "__main__":
    key = jax.random.PRNGKey(0)
    kx, kp = jax.random.split(key)

    B, C, T = 2, ENC_EMB, 16
    x = jax.random.normal(kx, (B, C, T), jnp.float32)  # NCL, like PyTorch
    input_lengths = [16, 11]                           # sorted descending
    max_len = max(input_lengths)                       # static, no device sync

    conv_params, lstm_params = make_params(kp)
    lengths = jnp.asarray(input_lengths, jnp.int32)
    out = encoder_forward(x, lengths, conv_params, lstm_params, max_len=max_len)
    out = jax.block_until_ready(out)

    assert out.shape == (B, max_len, 2 * HID), out.shape
    print("KERNEL_OK")
</pallas_src>

<mosaic_0001>
module attributes {stable_mosaic.version = 11 : i64} {
  func.func @_encoder_kernel(%arg0: i32, %arg1: memref<160x32xf32, #tpu.memory_space<vmem>>, %arg2: memref<128x32xf32, #tpu.memory_space<vmem>>, %arg3: memref<3x160x32xbf16, #tpu.memory_space<vmem>>, %arg4: memref<3x1x32xf32, #tpu.memory_space<vmem>>, %arg5: memref<3x1x32xf32, #tpu.memory_space<vmem>>, %arg6: memref<32x128xbf16, #tpu.memory_space<vmem>>, %arg7: memref<32x128xf32, #tpu.memory_space<vmem>>, %arg8: memref<1x128xf32, #tpu.memory_space<vmem>>, %arg9: memref<128x32xf32, #tpu.memory_space<vmem>>, %arg10: memref<128x128xf32, #tpu.memory_space<vmem>>, %arg11: memref<160x32xf32, #tpu.memory_space<vmem>>) attributes {dimension_semantics = [#tpu.dimension_semantics<parallel>], iteration_bounds = array<i64: 1>, scalar_prefetch = 0 : i64, scratch_operands = 2 : i64, tpu.core_type = #tpu.core_type<tc>, window_params = [{transform_indices = @transform_0, window_bounds = array<i64: 160, 32>}, {transform_indices = @transform_1, window_bounds = array<i64: 128, 32>}, {pipeline_mode = #tpu.pipeline_mode<synchronous>, transform_indices = @transform_2, window_bounds = array<i64: 3, 160, 32>}, {pipeline_mode = #tpu.pipeline_mode<synchronous>, transform_indices = @transform_3, window_bounds = array<i64: 3, 1, 32>}, {pipeline_mode = #tpu.pipeline_mode<synchronous>, transform_indices = @transform_4, window_bounds = array<i64: 3, 1, 32>}, {pipeline_mode = #tpu.pipeline_mode<synchronous>, transform_indices = @transform_5, window_bounds = array<i64: 32, 128>}, {pipeline_mode = #tpu.pipeline_mode<synchronous>, transform_indices = @transform_6, window_bounds = array<i64: 32, 128>}, {pipeline_mode = #tpu.pipeline_mode<synchronous>, transform_indices = @transform_7, window_bounds = array<i64: 1, 128>}, {transform_indices = @transform_8, window_bounds = array<i64: 128, 32>}]} {
    %cst = arith.constant 0.000000e+00 : f32
    %0 = vector.broadcast %cst : f32 to vector<16x32xf32>
    %c0 = arith.constant 0 : index
    %c0_0 = arith.constant 0 : index
    %1 = vector.load %arg11[%c0, %c0_0] : memref<160x32xf32, #tpu.memory_space<vmem>>, vector<16x32xf32>
    tpu.vector_store %arg11[%c0, %c0_0], %0 {strides = array<i32>} : memref<160x32xf32, #tpu.memory_space<vmem>>, vector<16x32xf32>,
    %c144 = arith.constant 144 : index
    %c0_1 = arith.constant 0 : index
    %2 = vector.load %arg11[%c144, %c0_1] : memref<160x32xf32, #tpu.memory_space<vmem>>, vector<16x32xf32>
    tpu.vector_store %arg11[%c144, %c0_1], %0 {strides = array<i32>} : memref<160x32xf32, #tpu.memory_space<vmem>>, vector<16x32xf32>,
    %c0_2 = arith.constant 0 : index
    %c0_3 = arith.constant 0 : index
    %3 = vector.load %arg1[%c0_2, %c0_3] : memref<160x32xf32, #tpu.memory_space<vmem>>, vector<128x32xf32>
    %c8 = arith.constant 8 : index
    %c0_4 = arith.constant 0 : index
    %4 = vector.load %arg1[%c8, %c0_4] : memref<160x32xf32, #tpu.memory_space<vmem>>, vector<128x32xf32>
    %c16 = arith.constant 16 : index
    %c0_5 = arith.constant 0 : index
    %5 = vector.load %arg1[%c16, %c0_5] : memref<160x32xf32, #tpu.memory_space<vmem>>, vector<128x32xf32>
    %c24 = arith.constant 24 : index
    %c0_6 = arith.constant 0 : index
    %6 = vector.load %arg1[%c24, %c0_6] : memref<160x32xf32, #tpu.memory_space<vmem>>, vector<128x32xf32>
    %c32 = arith.constant 32 : index
    %c0_7 = arith.constant 0 : index
    %7 = vector.load %arg1[%c32, %c0_7] : memref<160x32xf32, #tpu.memory_space<vmem>>, vector<128x32xf32>
    %8 = tpu.concatenate %3, %4, %5, %6, %7 in 1 : vector<128x32xf32>, vector<128x32xf32>, vector<128x32xf32>, vector<128x32xf32>, vector<128x32xf32> -> vector<128x160xf32>
    %9 = arith.truncf %8 : vector<128x160xf32> to vector<128x160xbf16>
    %c0_8 = arith.constant 0 : index
    %c0_9 = arith.constant 0 : index
    %c0_10 = arith.constant 0 : index
    %10 = vector.load %arg3[%c0_8, %c0_9, %c0_10] : memref<3x160x32xbf16, #tpu.memory_space<vmem>>, vector<1x160x32xbf16>
    %11 = vector.shape_cast %10 : vector<1x160x32xbf16> to vector<160x32xbf16>
    %cst_11 = arith.constant dense<0.000000e+00> : vector<128x32xf32>
    %12 = tpu.matmul %9, %11, %cst_11 {dimension_numbers = #tpu.dot_dimension_numbers<[1], [0], [0], [1], [0, 0, 1, 1], [], []>} : vector<128x160xbf16>, vector<160x32xbf16>, vector<128x32xf32> -> vector<128x32xf32>
    %c0_12 = arith.constant 0 : index
    %c0_13 = arith.constant 0 : index
    %c0_14 = arith.constant 0 : index
    %13 = vector.load %arg4[%c0_12, %c0_13, %c0_14] : memref<3x1x32xf32, #tpu.memory_space<vmem>>, vector<1x1x32xf32>
    %14 = vector.shape_cast %13 : vector<1x1x32xf32> to vector<1x32xf32>
    %15 = vector.broadcast %14 : vector<1x32xf32> to vector<128x32xf32>
    %16 = arith.mulf %12, %15 : vector<128x32xf32>
    %c0_15 = arith.constant 0 : index
    %c0_16 = arith.constant 0 : index
    %c0_17 = arith.constant 0 : index
    %17 = vector.load %arg5[%c0_15, %c0_16, %c0_17] : memref<3x1x32xf32, #tpu.memory_space<vmem>>, vector<1x1x32xf32>
    %18 = vector.shape_cast %17 : vector<1x1x32xf32> to vector<1x32xf32>
    %19 = vector.broadcast %18 : vector<1x32xf32> to vector<128x32xf32>
    %20 = arith.addf %16, %19 : vector<128x32xf32>
    %cst_18 = arith.constant 0.000000e+00 : f32
    %21 = vector.broadcast %cst_18 : f32 to vector<128x32xf32>
    %22 = arith.maximumf %20, %21 : vector<128x32xf32>
    %c16_19 = arith.constant 16 : index
    %c0_20 = arith.constant 0 : index
    %23 = vector.load %arg11[%c16_19, %c0_20] : memref<160x32xf32, #tpu.memory_space<vmem>>, vector<128x32xf32>
    tpu.vector_store %arg11[%c16_19, %c0_20], %22 {strides = array<i32>} : memref<160x32xf32, #tpu.memory_space<vmem>>, vector<128x32xf32>,
    %c0_21 = arith.constant 0 : index
    %c0_22 = arith.constant 0 : index
    %24 = vector.load %arg11[%c0_21, %c0_22] : memref<160x32xf32, #tpu.memory_space<vmem>>, vector<128x32xf32>
    %c8_23 = arith.constant 8 : index
    %c0_24 = arith.constant 0 : index
    %25 = vector.load %arg11[%c8_23, %c0_24] : memref<160x32xf32, #tpu.memory_space<vmem>>, vector<128x32xf32>
    %c16_25 = arith.constant 16 : index
    %c0_26 = arith.constant 0 : index
    %26 = vector.load %arg11[%c16_25, %c0_26] : memref<160x32xf32, #tpu.memory_space<vmem>>, vector<128x32xf32>
    %c24_27 = arith.constant 24 : index
    %c0_28 = arith.constant 0 : index
    %27 = vector.load %arg11[%c24_27, %c0_28] : memref<160x32xf32, #tpu.memory_space<vmem>>, vector<128x32xf32>
    %c32_29 = arith.constant 32 : index
    %c0_30 = arith.constant 0 : index
    %28 = vector.load %arg11[%c32_29, %c0_30] : memref<160x32xf32, #tpu.memory_space<vmem>>, vector<128x32xf32>
    %29 = tpu.concatenate %24, %25, %26, %27, %28 in 1 : vector<128x32xf32>, vector<128x32xf32>, vector<128x32xf32>, vector<128x32xf32>, vector<128x32xf32> -> vector<128x160xf32>
    %30 = arith.truncf %29 : vector<128x160xf32> to vector<128x160xbf16>
    %c1 = arith.constant 1 : index
    %c0_31 = arith.constant 0 : index
    %c0_32 = arith.constant 0 : index
    %31 = vector.load %arg3[%c1, %c0_31, %c0_32] : memref<3x160x32xbf16, #tpu.memory_space<vmem>>, vector<1x160x32xbf16>
    %32 = vector.shape_cast %31 : vector<1x160x32xbf16> to vector<160x32xbf16>
    %cst_33 = arith.constant dense<0.000000e+00> : vector<128x32xf32>
    %33 = tpu.matmul %30, %32, %cst_33 {dimension_numbers = #tpu.dot_dimension_numbers<[1], [0], [0], [1], [0, 0, 1, 1], [], []>} : vector<128x160xbf16>, vector<160x32xbf16>, vector<128x32xf32> -> vector<128x32xf32>
    %c1_34 = arith.constant 1 : index
    %c0_35 = arith.constant 0 : index
    %c0_36 = arith.constant 0 : index
    %34 = vector.load %arg4[%c1_34, %c0_35, %c0_36] : memref<3x1x32xf32, #tpu.memory_space<vmem>>, vector<1x1x32xf32>
    %35 = vector.shape_cast %34 : vector<1x1x32xf32> to vector<1x32xf32>
    %36 = vector.broadcast %35 : vector<1x32xf32> to vector<128x32xf32>
    %37 = arith.mulf %33, %36 : vector<128x32xf32>
    %c1_37 = arith.constant 1 : index
    %c0_38 = arith.constant 0 : index
    %c0_39 = arith.constant 0 : index
    %38 = vector.load %arg5[%c1_37, %c0_38, %c0_39] : memref<3x1x32xf32, #tpu.memory_space<vmem>>, vector<1x1x32xf32>
    %39 = vector.shape_cast %38 : vector<1x1x32xf32> to vector<1x32xf32>
    %40 = vector.broadcast %39 : vector<1x32xf32> to vector<128x32xf32>
    %41 = arith.addf %37, %40 : vector<128x32xf32>
    %cst_40 = arith.constant 0.000000e+00 : f32
    %42 = vector.broadcast %cst_40 : f32 to vector<128x32xf32>
    %43 = arith.maximumf %41, %42 : vector<128x32xf32>
    %c16_41 = arith.constant 16 : index
    %c0_42 = arith.constant 0 : index
    %44 = vector.load %arg11[%c16_41, %c0_42] : memref<160x32xf32, #tpu.memory_space<vmem>>, vector<128x32xf32>
    tpu.vector_store %arg11[%c16_41, %c0_42], %43 {strides = array<i32>} : memref<160x32xf32, #tpu.memory_space<vmem>>, vector<128x32xf32>,
    %c0_43 = arith.constant 0 : index
    %c0_44 = arith.constant 0 : index
    %45 = vector.load %arg11[%c0_43, %c0_44] : memref<160x32xf32, #tpu.memory_space<vmem>>, vector<128x32xf32>
    %c8_45 = arith.constant 8 : index
    %c0_46 = arith.constant 0 : index
    %46 = vector.load %arg11[%c8_45, %c0_46] : memref<160x32xf32, #tpu.memory_space<vmem>>, vector<128x32xf32>
    %c16_47 = arith.constant 16 : index
    %c0_48 = arith.constant 0 : index
    %47 = vector.load %arg11[%c16_47, %c0_48] : memref<160x32xf32, #tpu.memory_space<vmem>>, vector<128x32xf32>
    %c24_49 = arith.constant 24 : index
    %c0_50 = arith.constant 0 : index
    %48 = vector.load %arg11[%c24_49, %c0_50] : memref<160x32xf32, #tpu.memory_space<vmem>>, vector<128x32xf32>
    %c32_51 = arith.constant 32 : index
    %c0_52 = arith.constant 0 : index
    %49 = vector.load %arg11[%c32_51, %c0_52] : memref<160x32xf32, #tpu.memory_space<vmem>>, vector<128x32xf32>
    %50 = tpu.concatenate %45, %46, %47, %48, %49 in 1 : vector<128x32xf32>, vector<128x32xf32>, vector<128x32xf32>, vector<128x32xf32>, vector<128x32xf32> -> vector<128x160xf32>
    %51 = arith.truncf %50 : vector<128x160xf32> to vector<128x160xbf16>
    %c2 = arith.constant 2 : index
    %c0_53 = arith.constant 0 : index
    %c0_54 = arith.constant 0 : index
    %52 = vector.load %arg3[%c2, %c0_53, %c0_54] : memref<3x160x32xbf16, #tpu.memory_space<vmem>>, vector<1x160x32xbf16>
    %53 = vector.shape_cast %52 : vector<1x160x32xbf16> to vector<160x32xbf16>
    %cst_55 = arith.constant dense<0.000000e+00> : vector<128x32xf32>
    %54 = tpu.matmul %51, %53, %cst_55 {dimension_numbers = #tpu.dot_dimension_numbers<[1], [0], [0], [1], [0, 0, 1, 1], [], []>} : vector<128x160xbf16>, vector<160x32xbf16>, vector<128x32xf32> -> vector<128x32xf32>
    %c2_56 = arith.constant 2 : index
    %c0_57 = arith.constant 0 : index
    %c0_58 = arith.constant 0 : index
    %55 = vector.load %arg4[%c2_56, %c0_57, %c0_58] : memref<3x1x32xf32, #tpu.memory_space<vmem>>, vector<1x1x32xf32>
    %56 = vector.shape_cast %55 : vector<1x1x32xf32> to vector<1x32xf32>
    %57 = vector.broadcast %56 : vector<1x32xf32> to vector<128x32xf32>
    %58 = arith.mulf %54, %57 : vector<128x32xf32>
    %c2_59 = arith.constant 2 : index
    %c0_60 = arith.constant 0 : index
    %c0_61 = arith.constant 0 : index
    %59 = vector.load %arg5[%c2_59, %c0_60, %c0_61] : memref<3x1x32xf32, #tpu.memory_space<vmem>>, vector<1x1x32xf32>
    %60 = vector.shape_cast %59 : vector<1x1x32xf32> to vector<1x32xf32>
    %61 = vector.broadcast %60 : vector<1x32xf32> to vector<128x32xf32>
    %62 = arith.addf %58, %61 : vector<128x32xf32>
    %cst_62 = arith.constant 0.000000e+00 : f32
    %63 = vector.broadcast %cst_62 : f32 to vector<128x32xf32>
    %64 = arith.maximumf %62, %63 : vector<128x32xf32>
    %65 = arith.truncf %64 : vector<128x32xf32> to vector<128x32xbf16>
    %c0_63 = arith.constant 0 : index
    %c0_64 = arith.constant 0 : index
    %66 = vector.load %arg6[%c0_63, %c0_64] : memref<32x128xbf16, #tpu.memory_space<vmem>>, vector<32x128xbf16>
    %cst_65 = arith.constant dense<0.000000e+00> : vector<128x128xf32>
    %67 = tpu.matmul %65, %66, %cst_65 {dimension_numbers = #tpu.dot_dimension_numbers<[1], [0], [0], [1], [0, 0, 1, 1], [], []>} : vector<128x32xbf16>, vector<32x128xbf16>, vector<128x128xf32> -> vector<128x128xf32>
    %c0_66 = arith.constant 0 : index
    %c0_67 = arith.constant 0 : index
    %68 = vector.load %arg8[%c0_66, %c0_67] : memref<1x128xf32, #tpu.memory_space<vmem>>, vector<1x128xf32>
    %69 = vector.broadcast %68 : vector<1x128xf32> to vector<128x128xf32>
    %70 = arith.addf %67, %69 : vector<128x128xf32>
    %c0_68 = arith.constant 0 : index
    %c0_69 = arith.constant 0 : index
    %71 = vector.load %arg10[%c0_68, %c0_69] : memref<128x128xf32, #tpu.memory_space<vmem>>, vector<128x128xf32>
    tpu.vector_store %arg10[%c0_68, %c0_69], %70 {strides = array<i32>} : memref<128x128xf32, #tpu.memory_space<vmem>>, vector<128x128xf32>,
    %c0_70 = arith.constant 0 : index
    %c0_71 = arith.constant 0 : index
    %72 = vector.load %arg7[%c0_70, %c0_71] : memref<32x128xf32, #tpu.memory_space<vmem>>, vector<32x128xf32>
    %73 = tpu.iota {dimensions = array<i32: 1>} : vector<8x128xi32>
    %c32_i32 = arith.constant 32 : i32
    %c0_i32 = arith.constant 0 : i32
    %74 = arith.cmpi eq, %c32_i32, %c0_i32 : i32
    %c1_i32 = arith.constant 1 : i32
    %75 = arith.select %74, %c1_i32, %c32_i32 : i32
    %76 = vector.broadcast %75 : i32 to vector<8x128xi32>
    %77 = arith.remsi %73, %76 : vector<8x128xi32>
    %c0_i32_72 = arith.constant 0 : i32
    %78 = vector.broadcast %c0_i32_72 : i32 to vector<8x128xi32>
    %79 = arith.cmpi ne, %77, %78 : vector<8x128xi32>
    %c0_i32_73 = arith.constant 0 : i32
    %80 = vector.broadcast %c0_i32_73 : i32 to vector<8x128xi32>
    %81 = arith.cmpi slt, %77, %80 : vector<8x128xi32>
    %c0_i32_74 = arith.constant 0 : i32
    %82 = arith.cmpi slt, %75, %c0_i32_74 : i32
    %83 = vector.broadcast %82 : i1 to vector<8x128xi1>
    %84 = vector.broadcast %83 : vector<8x128xi1> to vector<8x128xi1>
    %85 = arith.xori %81, %84 : vector<8x128xi1>
    %86 = arith.andi %85, %79 : vector<8x128xi1>
    %87 = vector.broadcast %75 : i32 to vector<8x128xi32>
    %88 = arith.addi %77, %87 : vector<8x128xi32>
    %89 = arith.select %86, %88, %77 : vector<8x128xi1>, vector<8x128xi32>
    %c16_i32 = arith.constant 16 : i32
    %90 = vector.broadcast %c16_i32 : i32 to vector<8x128xi32>
    %91 = arith.cmpi slt, %89, %90 : vector<8x128xi32>
    %92 = tpu.iota {dimensions = array<i32: 1>} : vector<8x32xi32>
    %c16_i32_75 = arith.constant 16 : i32
    %93 = vector.broadcast %c16_i32_75 : i32 to vector<8x32xi32>
    %94 = arith.cmpi slt, %92, %93 : vector<8x32xi32>
    %cst_76 = arith.constant 0.000000e+00 : f32
    %95 = vector.broadcast %cst_76 : f32 to vector<8x32xf32>
    %cst_77 = arith.constant 0.000000e+00 : f32
    %96 = vector.broadcast %cst_77 : f32 to vector<8x32xf32>
    %c0_78 = arith.constant 0 : index
    %c0_79 = arith.constant 0 : index
    %97 = vector.load %arg10[%c0_78, %c0_79] : memref<128x128xf32, #tpu.memory_space<vmem>>, vector<8x128xf32>
    %c120 = arith.constant 120 : index
    %c0_80 = arith.constant 0 : index
    %98 = vector.load %arg10[%c120, %c0_80] : memref<128x128xf32, #tpu.memory_space<vmem>>, vector<8x128xf32>
    %99 = arith.select %91, %97, %98 : vector<8x128xi1>, vector<8x128xf32>
    %cst_81 = arith.constant dense<0.000000e+00> : vector<8x128xf32>
    %100 = tpu.matmul %95, %72, %cst_81 {dimension_numbers = #tpu.dot_dimension_numbers<[1], [0], [0], [1], [0, 0, 1, 1], [], []>} : vector<8x32xf32>, vector<32x128xf32>, vector<8x128xf32> -> vector<8x128xf32>
    %101 = arith.addf %99, %100 : vector<8x128xf32>
    %102 = vector.extract_strided_slice %101 {offsets = [0, 0], sizes = [8, 32], strides = [1, 1]} : vector<8x128xf32> to vector<8x32xf32>
    %103 = arith.negf %102 : vector<8x32xf32>
    %104 = math.exp %103 : vector<8x32xf32>
    %cst_82 = arith.constant 1.000000e+00 : f32
    %105 = vector.broadcast %cst_82 : f32 to vector<8x32xf32>
    %106 = arith.addf %105, %104 : vector<8x32xf32>
    %107 = arith.divf %105, %106 : vector<8x32xf32>
    %108 = vector.extract_strided_slice %101 {offsets = [0, 32], sizes = [8, 32], strides = [1, 1]} : vector<8x128xf32> to vector<8x32xf32>
    %109 = arith.negf %108 : vector<8x32xf32>
    %110 = math.exp %109 : vector<8x32xf32>
    %cst_83 = arith.constant 1.000000e+00 : f32
    %111 = vector.broadcast %cst_83 : f32 to vector<8x32xf32>
    %112 = arith.addf %111, %110 : vector<8x32xf32>
    %113 = arith.divf %111, %112 : vector<8x32xf32>
    %114 = vector.extract_strided_slice %101 {offsets = [0, 64], sizes = [8, 32], strides = [1, 1]} : vector<8x128xf32> to vector<8x32xf32>
    %115 = math.tanh %114 : vector<8x32xf32>
    %116 = vector.extract_strided_slice %101 {offsets = [0, 96], sizes = [8, 32], strides = [1, 1]} : vector<8x128xf32> to vector<8x32xf32>
    %117 = arith.negf %116 : vector<8x32xf32>
    %118 = math.exp %117 : vector<8x32xf32>
    %cst_84 = arith.constant 1.000000e+00 : f32
    %119 = vector.broadcast %cst_84 : f32 to vector<8x32xf32>
    %120 = arith.addf %119, %118 : vector<8x32xf32>
    %121 = arith.divf %119, %120 : vector<8x32xf32>
    %122 = arith.mulf %113, %96 : vector<8x32xf32>
    %123 = arith.mulf %107, %115 : vector<8x32xf32>
    %124 = arith.addf %122, %123 : vector<8x32xf32>
    %125 = math.tanh %124 : vector<8x32xf32>
    %126 = arith.mulf %121, %125 : vector<8x32xf32>
    %c0_85 = arith.constant 0 : index
    %c0_86 = arith.constant 0 : index
    %127 = vector.load %arg2[%c0_85, %c0_86] : memref<128x32xf32, #tpu.memory_space<vmem>>, vector<8x32xf32>
    %c120_87 = arith.constant 120 : index
    %c0_88 = arith.constant 0 : index
    %128 = vector.load %arg2[%c120_87, %c0_88] : memref<128x32xf32, #tpu.memory_space<vmem>>, vector<8x32xf32>
    %129 = arith.select %94, %127, %128 : vector<8x32xi1>, vector<8x32xf32>
    %130 = arith.mulf %129, %126 : vector<8x32xf32>
    %cst_89 = arith.constant 1.000000e+00 : f32
    %131 = vector.broadcast %cst_89 : f32 to vector<8x32xf32>
    %132 = arith.subf %131, %129 : vector<8x32xf32>
    %133 = arith.mulf %132, %95 : vector<8x32xf32>
    %134 = arith.addf %130, %133 : vector<8x32xf32>
    %135 = arith.mulf %129, %124 : vector<8x32xf32>
    %cst_90 = arith.constant 1.000000e+00 : f32
    %136 = vector.broadcast %cst_90 : f32 to vector<8x32xf32>
    %137 = arith.subf %136, %129 : vector<8x32xf32>
    %138 = arith.mulf %137, %96 : vector<8x32xf32>
    %139 = arith.addf %135, %138 : vector<8x32xf32>
    %140 = vector.extract_strided_slice %130 {offsets = [0, 0], sizes = [8, 16], strides = [1, 1]} : vector<8x32xf32> to vector<8x16xf32>
    %c0_91 = arith.constant 0 : index
    %c0_92 = arith.constant 0 : index
    %141 = vector.load %arg9[%c0_91, %c0_92] : memref<128x32xf32, #tpu.memory_space<vmem>>, vector<8x16xf32>
    tpu.vector_store %arg9[%c0_91, %c0_92], %140 {strides = array<i32>} : memref<128x32xf32, #tpu.memory_space<vmem>>, vector<8x16xf32>,
    %142 = vector.extract_strided_slice %130 {offsets = [0, 16], sizes = [8, 16], strides = [1, 1]} : vector<8x32xf32> to vector<8x16xf32>
    %c120_93 = arith.constant 120 : index
    %c16_94 = arith.constant 16 : index
    %143 = vector.load %arg9[%c120_93, %c16_94] : memref<128x32xf32, #tpu.memory_space<vmem>>, vector<8x16xf32>
    tpu.vector_store %arg9[%c120_93, %c16_94], %142 {strides = array<i32>} : memref<128x32xf32, #tpu.memory_space<vmem>>, vector<8x16xf32>,
    %c8_95 = arith.constant 8 : index
    %c0_96 = arith.constant 0 : index
    %144 = vector.load %arg10[%c8_95, %c0_96] : memref<128x128xf32, #tpu.memory_space<vmem>>, vector<8x128xf32>
    %c112 = arith.constant 112 : index
    %c0_97 = arith.constant 0 : index
    %145 = vector.load %arg10[%c112, %c0_97] : memref<128x128xf32, #tpu.memory_space<vmem>>, vector<8x128xf32>
    %146 = arith.select %91, %144, %145 : vector<8x128xi1>, vector<8x128xf32>
    %cst_98 = arith.constant dense<0.000000e+00> : vector<8x128xf32>
    %147 = tpu.matmul %134, %72, %cst_98 {dimension_numbers = #tpu.dot_dimension_numbers<[1], [0], [0], [1], [0, 0, 1, 1], [], []>} : vector<8x32xf32>, vector<32x128xf32>, vector<8x128xf32> -> vector<8x128xf32>
    %148 = arith.addf %146, %147 : vector<8x128xf32>
    %149 = vector.extract_strided_slice %148 {offsets = [0, 0], sizes = [8, 32], strides = [1, 1]} : vector<8x128xf32> to vector<8x32xf32>
    %150 = arith.negf %149 : vector<8x32xf32>
    %151 = math.exp %150 : vector<8x32xf32>
    %cst_99 = arith.constant 1.000000e+00 : f32
    %152 = vector.broadcast %cst_99 : f32 to vector<8x32xf32>
    %153 = arith.addf %152, %151 : vector<8x32xf32>
    %154 = arith.divf %152, %153 : vector<8x32xf32>
    %155 = vector.extract_strided_slice %148 {offsets = [0, 32], sizes = [8, 32], strides = [1, 1]} : vector<8x128xf32> to vector<8x32xf32>
    %156 = arith.negf %155 : vector<8x32xf32>
    %157 = math.exp %156 : vector<8x32xf32>
    %cst_100 = arith.constant 1.000000e+00 : f32
    %158 = vector.broadcast %cst_100 : f32 to vector<8x32xf32>
    %159 = arith.addf %158, %157 : vector<8x32xf32>
    %160 = arith.divf %158, %159 : vector<8x32xf32>
    %161 = vector.extract_strided_slice %148 {offsets = [0, 64], sizes = [8, 32], strides = [1, 1]} : vector<8x128xf32> to vector<8x32xf32>
    %162 = math.tanh %161 : vector<8x32xf32>
    %163 = vector.extract_strided_slice %148 {offsets = [0, 96], sizes = [8, 32], strides = [1, 1]} : vector<8x128xf32> to vector<8x32xf32>
    %164 = arith.negf %163 : vector<8x32xf32>
    %165 = math.exp %164 : vector<8x32xf32>
    %cst_101 = arith.constant 1.000000e+00 : f32
    %166 = vector.broadcast %cst_101 : f32 to vector<8x32xf32>
    %167 = arith.addf %166, %165 : vector<8x32xf32>
    %168 = arith.divf %166, %167 : vector<8x32xf32>
    %169 = arith.mulf %160, %139 : vector<8x32xf32>
    %170 = arith.mulf %154, %162 : vector<8x32xf32>
    %171 = arith.addf %169, %170 : vector<8x32xf32>
    %172 = math.tanh %171 : vector<8x32xf32>
    %173 = arith.mulf %168, %172 : vector<8x32xf32>
    %c8_102 = arith.constant 8 : index
    %c0_103 = arith.constant 0 : index
    %174 = vector.load %arg2[%c8_102, %c0_103] : memref<128x32xf32, #tpu.memory_space<vmem>>, vector<8x32xf32>
    %c112_104 = arith.constant 112 : index
    %c0_105 = arith.constant 0 : index
    %175 = vector.load %arg2[%c112_104, %c0_105] : memref<128x32xf32, #tpu.memory_space<vmem>>, vector<8x32xf32>
    %176 = arith.select %94, %174, %175 : vector<8x32xi1>, vector<8x32xf32>
    %177 = arith.mulf %176, %173 : vector<8x32xf32>
    %cst_106 = arith.constant 1.000000e+00 : f32
    %178 = vector.broadcast %cst_106 : f32 to vector<8x32xf32>
    %179 = arith.subf %178, %176 : vector<8x32xf32>
    %180 = arith.mulf %179, %134 : vector<8x32xf32>
    %181 = arith.addf %177, %180 : vector<8x32xf32>
    %182 = arith.mulf %176, %171 : vector<8x32xf32>
    %cst_107 = arith.constant 1.000000e+00 : f32
    %183 = vector.broadcast %cst_107 : f32 to vector<8x32xf32>
    %184 = arith.subf %183, %176 : vector<8x32xf32>
    %185 = arith.mulf %184, %139 : vector<8x32xf32>
    %186 = arith.addf %182, %185 : vector<8x32xf32>
    %187 = vector.extract_strided_slice %177 {offsets = [0, 0], sizes = [8, 16], strides = [1, 1]} : vector<8x32xf32> to vector<8x16xf32>
    %c8_108 = arith.constant 8 : index
    %c0_109 = arith.constant 0 : index
    %188 = vector.load %arg9[%c8_108, %c0_109] : memref<128x32xf32, #tpu.memory_space<vmem>>, vector<8x16xf32>
    tpu.vector_store %arg9[%c8_108, %c0_109], %187 {strides = array<i32>} : memref<128x32xf32, #tpu.memory_space<vmem>>, vector<8x16xf32>,
    %189 = vector.extract_strided_slice %177 {offsets = [0, 16], sizes = [8, 16], strides = [1, 1]} : vector<8x32xf32> to vector<8x16xf32>
    %c112_110 = arith.constant 112 : index
    %c16_111 = arith.constant 16 : index
    %190 = vector.load %arg9[%c112_110, %c16_111] : memref<128x32xf32, #tpu.memory_space<vmem>>, vector<8x16xf32>
    tpu.vector_store %arg9[%c112_110, %c16_111], %189 {strides = array<i32>} : memref<128x32xf32, #tpu.memory_space<vmem>>, vector<8x16xf32>,
    %c16_112 = arith.constant 16 : index
    %c0_113 = arith.constant 0 : index
    %191 = vector.load %arg10[%c16_112, %c0_113] : memref<128x128xf32, #tpu.memory_space<vmem>>, vector<8x128xf32>
    %c104 = arith.constant 104 : index
    %c0_114 = arith.constant 0 : index
    %192 = vector.load %arg10[%c104, %c0_114] : memref<128x128xf32, #tpu.memory_space<vmem>>, vector<8x128xf32>
    %193 = arith.select %91, %191, %192 : vector<8x128xi1>, vector<8x128xf32>
    %cst_115 = arith.constant dense<0.000000e+00> : vector<8x128xf32>
    %194 = tpu.matmul %181, %72, %cst_115 {dimension_numbers = #tpu.dot_dimension_numbers<[1], [0], [0], [1], [0, 0, 1, 1], [], []>} : vector<8x32xf32>, vector<32x128xf32>, vector<8x128xf32> -> vector<8x128xf32>
    %195 = arith.addf %193, %194 : vector<8x128xf32>
    %196 = vector.extract_strided_slice %195 {offsets = [0, 0], sizes = [8, 32], strides = [1, 1]} : vector<8x128xf32> to vector<8x32xf32>
    %197 = arith.negf %196 : vector<8x32xf32>
    %198 = math.exp %197 : vector<8x32xf32>
    %cst_116 = arith.constant 1.000000e+00 : f32
    %199 = vector.broadcast %cst_116 : f32 to vector<8x32xf32>
    %200 = arith.addf %199, %198 : vector<8x32xf32>
    %201 = arith.divf %199, %200 : vector<8x32xf32>
    %202 = vector.extract_strided_slice %195 {offsets = [0, 32], sizes = [8, 32], strides = [1, 1]} : vector<8x128xf32> to vector<8x32xf32>
    %203 = arith.negf %202 : vector<8x32xf32>
    %204 = math.exp %203 : vector<8x32xf32>
    %cst_117 = arith.constant 1.000000e+00 : f32
    %205 = vector.broadcast %cst_117 : f32 to vector<8x32xf32>
    %206 = arith.addf %205, %204 : vector<8x32xf32>
    %207 = arith.divf %205, %206 : vector<8x32xf32>
    %208 = vector.extract_strided_slice %195 {offsets = [0, 64], sizes = [8, 32], strides = [1, 1]} : vector<8x128xf32> to vector<8x32xf32>
    %209 = math.tanh %208 : vector<8x32xf32>
    %210 = vector.extract_strided_slice %195 {offsets = [0, 96], sizes = [8, 32], strides = [1, 1]} : vector<8x128xf32> to vector<8x32xf32>
    %211 = arith.negf %210 : vector<8x32xf32>
    %212 = math.exp %211 : vector<8x32xf32>
    %cst_118 = arith.constant 1.000000e+00 : f32
    %213 = vector.broadcast %cst_118 : f32 to vector<8x32xf32>
    %214 = arith.addf %213, %212 : vector<8x32xf32>
    %215 = arith.divf %213, %214 : vector<8x32xf32>
    %216 = arith.mulf %207, %186 : vector<8x32xf32>
    %217 = arith.mulf %201, %209 : vector<8x32xf32>
    %218 = arith.addf %216, %217 : vector<8x32xf32>
    %219 = math.tanh %218 : vector<8x32xf32>
    %220 = arith.mulf %215, %219 : vector<8x32xf32>
    %c16_119 = arith.constant 16 : index
    %c0_120 = arith.constant 0 : index
    %221 = vector.load %arg2[%c16_119, %c0_120] : memref<128x32xf32, #tpu.memory_space<vmem>>, vector<8x32xf32>
    %c104_121 = arith.constant 104 : index
    %c0_122 = arith.constant 0 : index
    %222 = vector.load %arg2[%c104_121, %c0_122] : memref<128x32xf32, #tpu.memory_space<vmem>>, vector<8x32xf32>
    %223 = arith.select %94, %221, %222 : vector<8x32xi1>, vector<8x32xf32>
    %224 = arith.mulf %223, %220 : vector<8x32xf32>
    %cst_123 = arith.constant 1.000000e+00 : f32
    %225 = vector.broadcast %cst_123 : f32 to vector<8x32xf32>
    %226 = arith.subf %225, %223 : vector<8x32xf32>
    %227 = arith.mulf %226, %181 : vector<8x32xf32>
    %228 = arith.addf %224, %227 : vector<8x32xf32>
    %229 = arith.mulf %223, %218 : vector<8x32xf32>
    %cst_124 = arith.constant 1.000000e+00 : f32
    %230 = vector.broadcast %cst_124 : f32 to vector<8x32xf32>
    %231 = arith.subf %230, %223 : vector<8x32xf32>
    %232 = arith.mulf %231, %186 : vector<8x32xf32>
    %233 = arith.addf %229, %232 : vector<8x32xf32>
    %234 = vector.extract_strided_slice %224 {offsets = [0, 0], sizes = [8, 16], strides = [1, 1]} : vector<8x32xf32> to vector<8x16xf32>
    %c16_125 = arith.constant 16 : index
    %c0_126 = arith.constant 0 : index
    %235 = vector.load %arg9[%c16_125, %c0_126] : memref<128x32xf32, #tpu.memory_space<vmem>>, vector<8x16xf32>
    tpu.vector_store %arg9[%c16_125, %c0_126], %234 {strides = array<i32>} : memref<128x32xf32, #tpu.memory_space<vmem>>, vector<8x16xf32>,
    %236 = vector.extract_strided_slice %224 {offsets = [0, 16], sizes = [8, 16], strides = [1, 1]} : vector<8x32xf32> to vector<8x16xf32>
    %c104_127 = arith.constant 104 : index
    %c16_128 = arith.constant 16 : index
    %237 = vector.load %arg9[%c104_127, %c16_128] : memref<128x32xf32, #tpu.memory_space<vmem>>, vector<8x16xf32>
    tpu.vector_store %arg9[%c104_127, %c16_128], %236 {strides = array<i32>} : memref<128x32xf32, #tpu.memory_space<vmem>>, vector<8x16xf32>,
    %c24_129 = arith.constant 24 : index
    %c0_130 = arith.constant 0 : index
    %238 = vector.load %arg10[%c24_129, %c0_130] : memref<128x128xf32, #tpu.memory_space<vmem>>, vector<8x128xf32>
    %c96 = arith.constant 96 : index
    %c0_131 = arith.constant 0 : index
    %239 = vector.load %arg10[%c96, %c0_131] : memref<128x128xf32, #tpu.memory_space<vmem>>, vector<8x128xf32>
    %240 = arith.select %91, %238, %239 : vector<8x128xi1>, vector<8x128xf32>
    %cst_132 = arith.constant dense<0.000000e+00> : vector<8x128xf32>
    %241 = tpu.matmul %228, %72, %cst_132 {dimension_numbers = #tpu.dot_dimension_numbers<[1], [0], [0], [1], [0, 0, 1, 1], [], []>} : vector<8x32xf32>, vector<32x128xf32>, vector<8x128xf32> -> vector<8x128xf32>
    %242 = arith.addf %240, %241 : vector<8x128xf32>
    %243 = vector.extract_strided_slice %242 {offsets = [0, 0], sizes = [8, 32], strides = [1, 1]} : vector<8x128xf32> to vector<8x32xf32>
    %244 = arith.negf %243 : vector<8x32xf32>
    %245 = math.exp %244 : vector<8x32xf32>
    %cst_133 = arith.constant 1.000000e+00 : f32
    %246 = vector.broadcast %cst_133 : f32 to vector<8x32xf32>
    %247 = arith.addf %246, %245 : vector<8x32xf32>
    %248 = arith.divf %246, %247 : vector<8x32xf32>
    %249 = vector.extract_strided_slice %242 {offsets = [0, 32], sizes = [8, 32], strides = [1, 1]} : vector<8x128xf32> to vector<8x32xf32>
    %250 = arith.negf %249 : vector<8x32xf32>
    %251 = math.exp %250 : vector<8x32xf32>
    %cst_134 = arith.constant 1.000000e+00 : f32
    %252 = vector.broadcast %cst_134 : f32 to vector<8x32xf32>
    %253 = arith.addf %252, %251 : vector<8x32xf32>
    %254 = arith.divf %252, %253 : vector<8x32xf32>
    %255 = vector.extract_strided_slice %242 {offsets = [0, 64], sizes = [8, 32], strides = [1, 1]} : vector<8x128xf32> to vector<8x32xf32>
    %256 = math.tanh %255 : vector<8x32xf32>
    %257 = vector.extract_strided_slice %242 {offsets = [0, 96], sizes = [8, 32], strides = [1, 1]} : vector<8x128xf32> to vector<8x32xf32>
    %258 = arith.negf %257 : vector<8x32xf32>
    %259 = math.exp %258 : vector<8x32xf32>
    %cst_135 = arith.constant 1.000000e+00 : f32
    %260 = vector.broadcast %cst_135 : f32 to vector<8x32xf32>
    %261 = arith.addf %260, %259 : vector<8x32xf32>
    %262 = arith.divf %260, %261 : vector<8x32xf32>
    %263 = arith.mulf %254, %233 : vector<8x32xf32>
    %264 = arith.mulf %248, %256 : vector<8x32xf32>
    %265 = arith.addf %263, %264 : vector<8x32xf32>
    %266 = math.tanh %265 : vector<8x32xf32>
    %267 = arith.mulf %262, %266 : vector<8x32xf32>
    %c24_136 = arith.constant 24 : index
    %c0_137 = arith.constant 0 : index
    %268 = vector.load %arg2[%c24_136, %c0_137] : memref<128x32xf32, #tpu.memory_space<vmem>>, vector<8x32xf32>
    %c96_138 = arith.constant 96 : index
    %c0_139 = arith.constant 0 : index
    %269 = vector.load %arg2[%c96_138, %c0_139] : memref<128x32xf32, #tpu.memory_space<vmem>>, vector<8x32xf32>
    %270 = arith.select %94, %268, %269 : vector<8x32xi1>, vector<8x32xf32>
    %271 = arith.mulf %270, %267 : vector<8x32xf32>
    %cst_140 = arith.constant 1.000000e+00 : f32
    %272 = vector.broadcast %cst_140 : f32 to vector<8x32xf32>
    %273 = arith.subf %272, %270 : vector<8x32xf32>
    %274 = arith.mulf %273, %228 : vector<8x32xf32>
    %275 = arith.addf %271, %274 : vector<8x32xf32>
    %276 = arith.mulf %270, %265 : vector<8x32xf32>
    %cst_141 = arith.constant 1.000000e+00 : f32
    %277 = vector.broadcast %cst_141 : f32 to vector<8x32xf32>
    %278 = arith.subf %277, %270 : vector<8x32xf32>
    %279 = arith.mulf %278, %233 : vector<8x32xf32>
    %280 = arith.addf %276, %279 : vector<8x32xf32>
    %281 = vector.extract_strided_slice %271 {offsets = [0, 0], sizes = [8, 16], strides = [1, 1]} : vector<8x32xf32> to vector<8x16xf32>
    %c24_142 = arith.constant 24 : index
    %c0_143 = arith.constant 0 : index
    %282 = vector.load %arg9[%c24_142, %c0_143] : memref<128x32xf32, #tpu.memory_space<vmem>>, vector<8x16xf32>
    tpu.vector_store %arg9[%c24_142, %c0_143], %281 {strides = array<i32>} : memref<128x32xf32, #tpu.memory_space<vmem>>, vector<8x16xf32>,
    %283 = vector.extract_strided_slice %271 {offsets = [0, 16], sizes = [8, 16], strides = [1, 1]} : vector<8x32xf32> to vector<8x16xf32>
    %c96_144 = arith.constant 96 : index
    %c16_145 = arith.constant 16 : index
    %284 = vector.load %arg9[%c96_144, %c16_145] : memref<128x32xf32, #tpu.memory_space<vmem>>, vector<8x16xf32>
    tpu.vector_store %arg9[%c96_144, %c16_145], %283 {strides = array<i32>} : memref<128x32xf32, #tpu.memory_space<vmem>>, vector<8x16xf32>,
    %c32_146 = arith.constant 32 : index
    %c0_147 = arith.constant 0 : index
    %285 = vector.load %arg10[%c32_146, %c0_147] : memref<128x128xf32, #tpu.memory_space<vmem>>, vector<8x128xf32>
    %c88 = arith.constant 88 : index
    %c0_148 = arith.constant 0 : index
    %286 = vector.load %arg10[%c88, %c0_148] : memref<128x128xf32, #tpu.memory_space<vmem>>, vector<8x128xf32>
    %287 = arith.select %91, %285, %286 : vector<8x128xi1>, vector<8x128xf32>
    %cst_149 = arith.constant dense<0.000000e+00> : vector<8x128xf32>
    %288 = tpu.matmul %275, %72, %cst_149 {dimension_numbers = #tpu.dot_dimension_numbers<[1], [0], [0], [1], [0, 0, 1, 1], [], []>} : vector<8x32xf32>, vector<32x128xf32>, vector<8x128xf32> -> vector<8x128xf32>
    %289 = arith.addf %287, %288 : vector<8x128xf32>
    %290 = vector.extract_strided_slice %289 {offsets = [0, 0], sizes = [8, 32], strides = [1, 1]} : vector<8x128xf32> to vector<8x32xf32>
    %291 = arith.negf %290 : vector<8x32xf32>
    %292 = math.exp %291 : vector<8x32xf32>
    %cst_150 = arith.constant 1.000000e+00 : f32
    %293 = vector.broadcast %cst_150 : f32 to vector<8x32xf32>
    %294 = arith.addf %293, %292 : vector<8x32xf32>
    %295 = arith.divf %293, %294 : vector<8x32xf32>
    %296 = vector.extract_strided_slice %289 {offsets = [0, 32], sizes = [8, 32], strides = [1, 1]} : vector<8x128xf32> to vector<8x32xf32>
    %297 = arith.negf %296 : vector<8x32xf32>
    %298 = math.exp %297 : vector<8x32xf32>
    %cst_151 = arith.constant 1.000000e+00 : f32
    %299 = vector.broadcast %cst_151 : f32 to vector<8x32xf32>
    %300 = arith.addf %299, %298 : vector<8x32xf32>
    %301 = arith.divf %299, %300 : vector<8x32xf32>
    %302 = vector.extract_strided_slice %289 {offsets = [0, 64], sizes = [8, 32], strides = [1, 1]} : vector<8x128xf32> to vector<8x32xf32>
    %303 = math.tanh %302 : vector<8x32xf32>
    %304 = vector.extract_strided_slice %289 {offsets = [0, 96], sizes = [8, 32], strides = [1, 1]} : vector<8x128xf32> to vector<8x32xf32>
    %305 = arith.negf %304 : vector<8x32xf32>
    %306 = math.exp %305 : vector<8x32xf32>
    %cst_152 = arith.constant 1.000000e+00 : f32
    %307 = vector.broadcast %cst_152 : f32 to vector<8x32xf32>
    %308 = arith.addf %307, %306 : vector<8x32xf32>
    %309 = arith.divf %307, %308 : vector<8x32xf32>
    %310 = arith.mulf %301, %280 : vector<8x32xf32>
    %311 = arith.mulf %295, %303 : vector<8x32xf32>
    %312 = arith.addf %310, %311 : vector<8x32xf32>
    %313 = math.tanh %312 : vector<8x32xf32>
    %314 = arith.mulf %309, %313 : vector<8x32xf32>
    %c32_153 = arith.constant 32 : index
    %c0_154 = arith.constant 0 : index
    %315 = vector.load %arg2[%c32_153, %c0_154] : memref<128x32xf32, #tpu.memory_space<vmem>>, vector<8x32xf32>
    %c88_155 = arith.constant 88 : index
    %c0_156 = arith.constant 0 : index
    %316 = vector.load %arg2[%c88_155, %c0_156] : memref<128x32xf32, #tpu.memory_space<vmem>>, vector<8x32xf32>
    %317 = arith.select %94, %315, %316 : vector<8x32xi1>, vector<8x32xf32>
    %318 = arith.mulf %317, %314 : vector<8x32xf32>
    %cst_157 = arith.constant 1.000000e+00 : f32
    %319 = vector.broadcast %cst_157 : f32 to vector<8x32xf32>
    %320 = arith.subf %319, %317 : vector<8x32xf32>
    %321 = arith.mulf %320, %275 : vector<8x32xf32>
    %322 = arith.addf %318, %321 : vector<8x32xf32>
    %323 = arith.mulf %317, %312 : vector<8x32xf32>
    %cst_158 = arith.constant 1.000000e+00 : f32
    %324 = vector.broadcast %cst_158 : f32 to vector<8x32xf32>
    %325 = arith.subf %324, %317 : vector<8x32xf32>
    %326 = arith.mulf %325, %280 : vector<8x32xf32>
    %327 = arith.addf %323, %326 : vector<8x32xf32>
    %328 = vector.extract_strided_slice %318 {offsets = [0, 0], sizes = [8, 16], strides = [1, 1]} : vector<8x32xf32> to vector<8x16xf32>
    %c32_159 = arith.constant 32 : index
    %c0_160 = arith.constant 0 : index
    %329 = vector.load %arg9[%c32_159, %c0_160] : memref<128x32xf32, #tpu.memory_space<vmem>>, vector<8x16xf32>
    tpu.vector_store %arg9[%c32_159, %c0_160], %328 {strides = array<i32>} : memref<128x32xf32, #tpu.memory_space<vmem>>, vector<8x16xf32>,
    %330 = vector.extract_strided_slice %318 {offsets = [0, 16], sizes = [8, 16], strides = [1, 1]} : vector<8x32xf32> to vector<8x16xf32>
    %c88_161 = arith.constant 88 : index
    %c16_162 = arith.constant 16 : index
    %331 = vector.load %arg9[%c88_161, %c16_162] : memref<128x32xf32, #tpu.memory_space<vmem>>, vector<8x16xf32>
    tpu.vector_store %arg9[%c88_161, %c16_162], %330 {strides = array<i32>} : memref<128x32xf32, #tpu.memory_space<vmem>>, vector<8x16xf32>,
    %c40 = arith.constant 40 : index
    %c0_163 = arith.constant 0 : index
    %332 = vector.load %arg10[%c40, %c0_163] : memref<128x128xf32, #tpu.memory_space<vmem>>, vector<8x128xf32>
    %c80 = arith.constant 80 : index
    %c0_164 = arith.constant 0 : index
    %333 = vector.load %arg10[%c80, %c0_164] : memref<128x128xf32, #tpu.memory_space<vmem>>, vector<8x128xf32>
    %334 = arith.select %91, %332, %333 : vector<8x128xi1>, vector<8x128xf32>
    %cst_165 = arith.constant dense<0.000000e+00> : vector<8x128xf32>
    %335 = tpu.matmul %322, %72, %cst_165 {dimension_numbers = #tpu.dot_dimension_numbers<[1], [0], [0], [1], [0, 0, 1, 1], [], []>} : vector<8x32xf32>, vector<32x128xf32>, vector<8x128xf32> -> vector<8x128xf32>
    %336 = arith.addf %334, %335 : vector<8x128xf32>
    %337 = vector.extract_strided_slice %336 {offsets = [0, 0], sizes = [8, 32], strides = [1, 1]} : vector<8x128xf32> to vector<8x32xf32>
    %338 = arith.negf %337 : vector<8x32xf32>
    %339 = math.exp %338 : vector<8x32xf32>
    %cst_166 = arith.constant 1.000000e+00 : f32
    %340 = vector.broadcast %cst_166 : f32 to vector<8x32xf32>
    %341 = arith.addf %340, %339 : vector<8x32xf32>
    %342 = arith.divf %340, %341 : vector<8x32xf32>
    %343 = vector.extract_strided_slice %336 {offsets = [0, 32], sizes = [8, 32], strides = [1, 1]} : vector<8x128xf32> to vector<8x32xf32>
    %344 = arith.negf %343 : vector<8x32xf32>
    %345 = math.exp %344 : vector<8x32xf32>
    %cst_167 = arith.constant 1.000000e+00 : f32
    %346 = vector.broadcast %cst_167 : f32 to vector<8x32xf32>
    %347 = arith.addf %346, %345 : vector<8x32xf32>
    %348 = arith.divf %346, %347 : vector<8x32xf32>
    %349 = vector.extract_strided_slice %336 {offsets = [0, 64], sizes = [8, 32], strides = [1, 1]} : vector<8x128xf32> to vector<8x32xf32>
    %350 = math.tanh %349 : vector<8x32xf32>
    %351 = vector.extract_strided_slice %336 {offsets = [0, 96], sizes = [8, 32], strides = [1, 1]} : vector<8x128xf32> to vector<8x32xf32>
    %352 = arith.negf %351 : vector<8x32xf32>
    %353 = math.exp %352 : vector<8x32xf32>
    %cst_168 = arith.constant 1.000000e+00 : f32
    %354 = vector.broadcast %cst_168 : f32 to vector<8x32xf32>
    %355 = arith.addf %354, %353 : vector<8x32xf32>
    %356 = arith.divf %354, %355 : vector<8x32xf32>
    %357 = arith.mulf %348, %327 : vector<8x32xf32>
    %358 = arith.mulf %342, %350 : vector<8x32xf32>
    %359 = arith.addf %357, %358 : vector<8x32xf32>
    %360 = math.tanh %359 : vector<8x32xf32>
    %361 = arith.mulf %356, %360 : vector<8x32xf32>
    %c40_169 = arith.constant 40 : index
    %c0_170 = arith.constant 0 : index
    %362 = vector.load %arg2[%c40_169, %c0_170] : memref<128x32xf32, #tpu.memory_space<vmem>>, vector<8x32xf32>
    %c80_171 = arith.constant 80 : index
    %c0_172 = arith.constant 0 : index
    %363 = vector.load %arg2[%c80_171, %c0_172] : memref<128x32xf32, #tpu.memory_space<vmem>>, vector<8x32xf32>
    %364 = arith.select %94, %362, %363 : vector<8x32xi1>, vector<8x32xf32>
    %365 = arith.mulf %364, %361 : vector<8x32xf32>
    %cst_173 = arith.constant 1.000000e+00 : f32
    %366 = vector.broadcast %cst_173 : f32 to vector<8x32xf32>
    %367 = arith.subf %366, %364 : vector<8x32xf32>
    %368 = arith.mulf %367, %322 : vector<8x32xf32>
    %369 = arith.addf %365, %368 : vector<8x32xf32>
    %370 = arith.mulf %364, %359 : vector<8x32xf32>
    %cst_174 = arith.constant 1.000000e+00 : f32
    %371 = vector.broadcast %cst_174 : f32 to vector<8x32xf32>
    %372 = arith.subf %371, %364 : vector<8x32xf32>
    %373 = arith.mulf %372, %327 : vector<8x32xf32>
    %374 = arith.addf %370, %373 : vector<8x32xf32>
    %375 = vector.extract_strided_slice %365 {offsets = [0, 0], sizes = [8, 16], strides = [1, 1]} : vector<8x32xf32> to vector<8x16xf32>
    %c40_175 = arith.constant 40 : index
    %c0_176 = arith.constant 0 : index
    %376 = vector.load %arg9[%c40_175, %c0_176] : memref<128x32xf32, #tpu.memory_space<vmem>>, vector<8x16xf32>
    tpu.vector_store %arg9[%c40_175, %c0_176], %375 {strides = array<i32>} : memref<128x32xf32, #tpu.memory_space<vmem>>, vector<8x16xf32>,
    %377 = vector.extract_strided_slice %365 {offsets = [0, 16], sizes = [8, 16], strides = [1, 1]} : vector<8x32xf32> to vector<8x16xf32>
    %c80_177 = arith.constant 80 : index
    %c16_178 = arith.constant 16 : index
    %378 = vector.load %arg9[%c80_177, %c16_178] : memref<128x32xf32, #tpu.memory_space<vmem>>, vector<8x16xf32>
    tpu.vector_store %arg9[%c80_177, %c16_178], %377 {strides = array<i32>} : memref<128x32xf32, #tpu.memory_space<vmem>>, vector<8x16xf32>,
    %c48 = arith.constant 48 : index
    %c0_179 = arith.constant 0 : index
    %379 = vector.load %arg10[%c48, %c0_179] : memref<128x128xf32, #tpu.memory_space<vmem>>, vector<8x128xf32>
    %c72 = arith.constant 72 : index
    %c0_180 = arith.constant 0 : index
    %380 = vector.load %arg10[%c72, %c0_180] : memref<128x128xf32, #tpu.memory_space<vmem>>, vector<8x128xf32>
    %381 = arith.select %91, %379, %380 : vector<8x128xi1>, vector<8x128xf32>
    %cst_181 = arith.constant dense<0.000000e+00> : vector<8x128xf32>
    %382 = tpu.matmul %369, %72, %cst_181 {dimension_numbers = #tpu.dot_dimension_numbers<[1], [0], [0], [1], [0, 0, 1, 1], [], []>} : vector<8x32xf32>, vector<32x128xf32>, vector<8x128xf32> -> vector<8x128xf32>
    %383 = arith.addf %381, %382 : vector<8x128xf32>
    %384 = vector.extract_strided_slice %383 {offsets = [0, 0], sizes = [8, 32], strides = [1, 1]} : vector<8x128xf32> to vector<8x32xf32>
    %385 = arith.negf %384 : vector<8x32xf32>
    %386 = math.exp %385 : vector<8x32xf32>
    %cst_182 = arith.constant 1.000000e+00 : f32
    %387 = vector.broadcast %cst_182 : f32 to vector<8x32xf32>
    %388 = arith.addf %387, %386 : vector<8x32xf32>
    %389 = arith.divf %387, %388 : vector<8x32xf32>
    %390 = vector.extract_strided_slice %383 {offsets = [0, 32], sizes = [8, 32], strides = [1, 1]} : vector<8x128xf32> to vector<8x32xf32>
    %391 = arith.negf %390 : vector<8x32xf32>
    %392 = math.exp %391 : vector<8x32xf32>
    %cst_183 = arith.constant 1.000000e+00 : f32
    %393 = vector.broadcast %cst_183 : f32 to vector<8x32xf32>
    %394 = arith.addf %393, %392 : vector<8x32xf32>
    %395 = arith.divf %393, %394 : vector<8x32xf32>
    %396 = vector.extract_strided_slice %383 {offsets = [0, 64], sizes = [8, 32], strides = [1, 1]} : vector<8x128xf32> to vector<8x32xf32>
    %397 = math.tanh %396 : vector<8x32xf32>
    %398 = vector.extract_strided_slice %383 {offsets = [0, 96], sizes = [8, 32], strides = [1, 1]} : vector<8x128xf32> to vector<8x32xf32>
    %399 = arith.negf %398 : vector<8x32xf32>
    %400 = math.exp %399 : vector<8x32xf32>
    %cst_184 = arith.constant 1.000000e+00 : f32
    %401 = vector.broadcast %cst_184 : f32 to vector<8x32xf32>
    %402 = arith.addf %401, %400 : vector<8x32xf32>
    %403 = arith.divf %401, %402 : vector<8x32xf32>
    %404 = arith.mulf %395, %374 : vector<8x32xf32>
    %405 = arith.mulf %389, %397 : vector<8x32xf32>
    %406 = arith.addf %404, %405 : vector<8x32xf32>
    %407 = math.tanh %406 : vector<8x32xf32>
    %408 = arith.mulf %403, %407 : vector<8x32xf32>
    %c48_185 = arith.constant 48 : index
    %c0_186 = arith.constant 0 : index
    %409 = vector.load %arg2[%c48_185, %c0_186] : memref<128x32xf32, #tpu.memory_space<vmem>>, vector<8x32xf32>
    %c72_187 = arith.constant 72 : index
    %c0_188 = arith.constant 0 : index
    %410 = vector.load %arg2[%c72_187, %c0_188] : memref<128x32xf32, #tpu.memory_space<vmem>>, vector<8x32xf32>
    %411 = arith.select %94, %409, %410 : vector<8x32xi1>, vector<8x32xf32>
    %412 = arith.mulf %411, %408 : vector<8x32xf32>
    %cst_189 = arith.constant 1.000000e+00 : f32
    %413 = vector.broadcast %cst_189 : f32 to vector<8x32xf32>
    %414 = arith.subf %413, %411 : vector<8x32xf32>
    %415 = arith.mulf %414, %369 : vector<8x32xf32>
    %416 = arith.addf %412, %415 : vector<8x32xf32>
    %417 = arith.mulf %411, %406 : vector<8x32xf32>
    %cst_190 = arith.constant 1.000000e+00 : f32
    %418 = vector.broadcast %cst_190 : f32 to vector<8x32xf32>
    %419 = arith.subf %418, %411 : vector<8x32xf32>
    %420 = arith.mulf %419, %374 : vector<8x32xf32>
    %421 = arith.addf %417, %420 : vector<8x32xf32>
    %422 = vector.extract_strided_slice %412 {offsets = [0, 0], sizes = [8, 16], strides = [1, 1]} : vector<8x32xf32> to vector<8x16xf32>
    %c48_191 = arith.constant 48 : index
    %c0_192 = arith.constant 0 : index
    %423 = vector.load %arg9[%c48_191, %c0_192] : memref<128x32xf32, #tpu.memory_space<vmem>>, vector<8x16xf32>
    tpu.vector_store %arg9[%c48_191, %c0_192], %422 {strides = array<i32>} : memref<128x32xf32, #tpu.memory_space<vmem>>, vector<8x16xf32>,
    %424 = vector.extract_strided_slice %412 {offsets = [0, 16], sizes = [8, 16], strides = [1, 1]} : vector<8x32xf32> to vector<8x16xf32>
    %c72_193 = arith.constant 72 : index
    %c16_194 = arith.constant 16 : index
    %425 = vector.load %arg9[%c72_193, %c16_194] : memref<128x32xf32, #tpu.memory_space<vmem>>, vector<8x16xf32>
    tpu.vector_store %arg9[%c72_193, %c16_194], %424 {strides = array<i32>} : memref<128x32xf32, #tpu.memory_space<vmem>>, vector<8x16xf32>,
    %c56 = arith.constant 56 : index
    %c0_195 = arith.constant 0 : index
    %426 = vector.load %arg10[%c56, %c0_195] : memref<128x128xf32, #tpu.memory_space<vmem>>, vector<8x128xf32>
    %c64 = arith.constant 64 : index
    %c0_196 = arith.constant 0 : index
    %427 = vector.load %arg10[%c64, %c0_196] : memref<128x128xf32, #tpu.memory_space<vmem>>, vector<8x128xf32>
    %428 = arith.select %91, %426, %427 : vector<8x128xi1>, vector<8x128xf32>
    %cst_197 = arith.constant dense<0.000000e+00> : vector<8x128xf32>
    %429 = tpu.matmul %416, %72, %cst_197 {dimension_numbers = #tpu.dot_dimension_numbers<[1], [0], [0], [1], [0, 0, 1, 1], [], []>} : vector<8x32xf32>, vector<32x128xf32>, vector<8x128xf32> -> vector<8x128xf32>
    %430 = arith.addf %428, %429 : vector<8x128xf32>
    %431 = vector.extract_strided_slice %430 {offsets = [0, 0], sizes = [8, 32], strides = [1, 1]} : vector<8x128xf32> to vector<8x32xf32>
    %432 = arith.negf %431 : vector<8x32xf32>
    %433 = math.exp %432 : vector<8x32xf32>
    %cst_198 = arith.constant 1.000000e+00 : f32
    %434 = vector.broadcast %cst_198 : f32 to vector<8x32xf32>
    %435 = arith.addf %434, %433 : vector<8x32xf32>
    %436 = arith.divf %434, %435 : vector<8x32xf32>
    %437 = vector.extract_strided_slice %430 {offsets = [0, 32], sizes = [8, 32], strides = [1, 1]} : vector<8x128xf32> to vector<8x32xf32>
    %438 = arith.negf %437 : vector<8x32xf32>
    %439 = math.exp %438 : vector<8x32xf32>
    %cst_199 = arith.constant 1.000000e+00 : f32
    %440 = vector.broadcast %cst_199 : f32 to vector<8x32xf32>
    %441 = arith.addf %440, %439 : vector<8x32xf32>
    %442 = arith.divf %440, %441 : vector<8x32xf32>
    %443 = vector.extract_strided_slice %430 {offsets = [0, 64], sizes = [8, 32], strides = [1, 1]} : vector<8x128xf32> to vector<8x32xf32>
    %444 = math.tanh %443 : vector<8x32xf32>
    %445 = vector.extract_strided_slice %430 {offsets = [0, 96], sizes = [8, 32], strides = [1, 1]} : vector<8x128xf32> to vector<8x32xf32>
    %446 = arith.negf %445 : vector<8x32xf32>
    %447 = math.exp %446 : vector<8x32xf32>
    %cst_200 = arith.constant 1.000000e+00 : f32
    %448 = vector.broadcast %cst_200 : f32 to vector<8x32xf32>
    %449 = arith.addf %448, %447 : vector<8x32xf32>
    %450 = arith.divf %448, %449 : vector<8x32xf32>
    %451 = arith.mulf %442, %421 : vector<8x32xf32>
    %452 = arith.mulf %436, %444 : vector<8x32xf32>
    %453 = arith.addf %451, %452 : vector<8x32xf32>
    %454 = math.tanh %453 : vector<8x32xf32>
    %455 = arith.mulf %450, %454 : vector<8x32xf32>
    %c56_201 = arith.constant 56 : index
    %c0_202 = arith.constant 0 : index
    %456 = vector.load %arg2[%c56_201, %c0_202] : memref<128x32xf32, #tpu.memory_space<vmem>>, vector<8x32xf32>
    %c64_203 = arith.constant 64 : index
    %c0_204 = arith.constant 0 : index
    %457 = vector.load %arg2[%c64_203, %c0_204] : memref<128x32xf32, #tpu.memory_space<vmem>>, vector<8x32xf32>
    %458 = arith.select %94, %456, %457 : vector<8x32xi1>, vector<8x32xf32>
    %459 = arith.mulf %458, %455 : vector<8x32xf32>
    %cst_205 = arith.constant 1.000000e+00 : f32
    %460 = vector.broadcast %cst_205 : f32 to vector<8x32xf32>
    %461 = arith.subf %460, %458 : vector<8x32xf32>
    %462 = arith.mulf %461, %416 : vector<8x32xf32>
    %463 = arith.addf %459, %462 : vector<8x32xf32>
    %464 = arith.mulf %458, %453 : vector<8x32xf32>
    %cst_206 = arith.constant 1.000000e+00 : f32
    %465 = vector.broadcast %cst_206 : f32 to vector<8x32xf32>
    %466 = arith.subf %465, %458 : vector<8x32xf32>
    %467 = arith.mulf %466, %421 : vector<8x32xf32>
    %468 = arith.addf %464, %467 : vector<8x32xf32>
    %469 = vector.extract_strided_slice %459 {offsets = [0, 0], sizes = [8, 16], strides = [1, 1]} : vector<8x32xf32> to vector<8x16xf32>
    %c56_207 = arith.constant 56 : index
    %c0_208 = arith.constant 0 : index
    %470 = vector.load %arg9[%c56_207, %c0_208] : memref<128x32xf32, #tpu.memory_space<vmem>>, vector<8x16xf32>
    tpu.vector_store %arg9[%c56_207, %c0_208], %469 {strides = array<i32>} : memref<128x32xf32, #tpu.memory_space<vmem>>, vector<8x16xf32>,
    %471 = vector.extract_strided_slice %459 {offsets = [0, 16], sizes = [8, 16], strides = [1, 1]} : vector<8x32xf32> to vector<8x16xf32>
    %c64_209 = arith.constant 64 : index
    %c16_210 = arith.constant 16 : index
    %472 = vector.load %arg9[%c64_209, %c16_210] : memref<128x32xf32, #tpu.memory_space<vmem>>, vector<8x16xf32>
    tpu.vector_store %arg9[%c64_209, %c16_210], %471 {strides = array<i32>} : memref<128x32xf32, #tpu.memory_space<vmem>>, vector<8x16xf32>,
    %c64_211 = arith.constant 64 : index
    %c0_212 = arith.constant 0 : index
    %473 = vector.load %arg10[%c64_211, %c0_212] : memref<128x128xf32, #tpu.memory_space<vmem>>, vector<8x128xf32>
    %c56_213 = arith.constant 56 : index
    %c0_214 = arith.constant 0 : index
    %474 = vector.load %arg10[%c56_213, %c0_214] : memref<128x128xf32, #tpu.memory_space<vmem>>, vector<8x128xf32>
    %475 = arith.select %91, %473, %474 : vector<8x128xi1>, vector<8x128xf32>
    %cst_215 = arith.constant dense<0.000000e+00> : vector<8x128xf32>
    %476 = tpu.matmul %463, %72, %cst_215 {dimension_numbers = #tpu.dot_dimension_numbers<[1], [0], [0], [1], [0, 0, 1, 1], [], []>} : vector<8x32xf32>, vector<32x128xf32>, vector<8x128xf32> -> vector<8x128xf32>
    %477 = arith.addf %475, %476 : vector<8x128xf32>
    %478 = vector.extract_strided_slice %477 {offsets = [0, 0], sizes = [8, 32], strides = [1, 1]} : vector<8x128xf32> to vector<8x32xf32>
    %479 = arith.negf %478 : vector<8x32xf32>
    %480 = math.exp %479 : vector<8x32xf32>
    %cst_216 = arith.constant 1.000000e+00 : f32
    %481 = vector.broadcast %cst_216 : f32 to vector<8x32xf32>
    %482 = arith.addf %481, %480 : vector<8x32xf32>
    %483 = arith.divf %481, %482 : vector<8x32xf32>
    %484 = vector.extract_strided_slice %477 {offsets = [0, 32], sizes = [8, 32], strides = [1, 1]} : vector<8x128xf32> to vector<8x32xf32>
    %485 = arith.negf %484 : vector<8x32xf32>
    %486 = math.exp %485 : vector<8x32xf32>
    %cst_217 = arith.constant 1.000000e+00 : f32
    %487 = vector.broadcast %cst_217 : f32 to vector<8x32xf32>
    %488 = arith.addf %487, %486 : vector<8x32xf32>
    %489 = arith.divf %487, %488 : vector<8x32xf32>
    %490 = vector.extract_strided_slice %477 {offsets = [0, 64], sizes = [8, 32], strides = [1, 1]} : vector<8x128xf32> to vector<8x32xf32>
    %491 = math.tanh %490 : vector<8x32xf32>
    %492 = vector.extract_strided_slice %477 {offsets = [0, 96], sizes = [8, 32], strides = [1, 1]} : vector<8x128xf32> to vector<8x32xf32>
    %493 = arith.negf %492 : vector<8x32xf32>
    %494 = math.exp %493 : vector<8x32xf32>
    %cst_218 = arith.constant 1.000000e+00 : f32
    %495 = vector.broadcast %cst_218 : f32 to vector<8x32xf32>
    %496 = arith.addf %495, %494 : vector<8x32xf32>
    %497 = arith.divf %495, %496 : vector<8x32xf32>
    %498 = arith.mulf %489, %468 : vector<8x32xf32>
    %499 = arith.mulf %483, %491 : vector<8x32xf32>
    %500 = arith.addf %498, %499 : vector<8x32xf32>
    %501 = math.tanh %500 : vector<8x32xf32>
    %502 = arith.mulf %497, %501 : vector<8x32xf32>
    %c64_219 = arith.constant 64 : index
    %c0_220 = arith.constant 0 : index
    %503 = vector.load %arg2[%c64_219, %c0_220] : memref<128x32xf32, #tpu.memory_space<vmem>>, vector<8x32xf32>
    %c56_221 = arith.constant 56 : index
    %c0_222 = arith.constant 0 : index
    %504 = vector.load %arg2[%c56_221, %c0_222] : memref<128x32xf32, #tpu.memory_space<vmem>>, vector<8x32xf32>
    %505 = arith.select %94, %503, %504 : vector<8x32xi1>, vector<8x32xf32>
    %506 = arith.mulf %505, %502 : vector<8x32xf32>
    %cst_223 = arith.constant 1.000000e+00 : f32
    %507 = vector.broadcast %cst_223 : f32 to vector<8x32xf32>
    %508 = arith.subf %507, %505 : vector<8x32xf32>
    %509 = arith.mulf %508, %463 : vector<8x32xf32>
    %510 = arith.addf %506, %509 : vector<8x32xf32>
    %511 = arith.mulf %505, %500 : vector<8x32xf32>
    %cst_224 = arith.constant 1.000000e+00 : f32
    %512 = vector.broadcast %cst_224 : f32 to vector<8x32xf32>
    %513 = arith.subf %512, %505 : vector<8x32xf32>
    %514 = arith.mulf %513, %468 : vector<8x32xf32>
    %515 = arith.addf %511, %514 : vector<8x32xf32>
    %516 = vector.extract_strided_slice %506 {offsets = [0, 0], sizes = [8, 16], strides = [1, 1]} : vector<8x32xf32> to vector<8x16xf32>
    %c64_225 = arith.constant 64 : index
    %c0_226 = arith.constant 0 : index
    %517 = vector.load %arg9[%c64_225, %c0_226] : memref<128x32xf32, #tpu.memory_space<vmem>>, vector<8x16xf32>
    tpu.vector_store %arg9[%c64_225, %c0_226], %516 {strides = array<i32>} : memref<128x32xf32, #tpu.memory_space<vmem>>, vector<8x16xf32>,
    %518 = vector.extract_strided_slice %506 {offsets = [0, 16], sizes = [8, 16], strides = [1, 1]} : vector<8x32xf32> to vector<8x16xf32>
    %c56_227 = arith.constant 56 : index
    %c16_228 = arith.constant 16 : index
    %519 = vector.load %arg9[%c56_227, %c16_228] : memref<128x32xf32, #tpu.memory_space<vmem>>, vector<8x16xf32>
    tpu.vector_store %arg9[%c56_227, %c16_228], %518 {strides = array<i32>} : memref<128x32xf32, #tpu.memory_space<vmem>>, vector<8x16xf32>,
    %c72_229 = arith.constant 72 : index
    %c0_230 = arith.constant 0 : index
    %520 = vector.load %arg10[%c72_229, %c0_230] : memref<128x128xf32, #tpu.memory_space<vmem>>, vector<8x128xf32>
    %c48_231 = arith.constant 48 : index
    %c0_232 = arith.constant 0 : index
    %521 = vector.load %arg10[%c48_231, %c0_232] : memref<128x128xf32, #tpu.memory_space<vmem>>, vector<8x128xf32>
    %522 = arith.select %91, %520, %521 : vector<8x128xi1>, vector<8x128xf32>
    %cst_233 = arith.constant dense<0.000000e+00> : vector<8x128xf32>
    %523 = tpu.matmul %510, %72, %cst_233 {dimension_numbers = #tpu.dot_dimension_numbers<[1], [0], [0], [1], [0, 0, 1, 1], [], []>} : vector<8x32xf32>, vector<32x128xf32>, vector<8x128xf32> -> vector<8x128xf32>
    %524 = arith.addf %522, %523 : vector<8x128xf32>
    %525 = vector.extract_strided_slice %524 {offsets = [0, 0], sizes = [8, 32], strides = [1, 1]} : vector<8x128xf32> to vector<8x32xf32>
    %526 = arith.negf %525 : vector<8x32xf32>
    %527 = math.exp %526 : vector<8x32xf32>
    %cst_234 = arith.constant 1.000000e+00 : f32
    %528 = vector.broadcast %cst_234 : f32 to vector<8x32xf32>
    %529 = arith.addf %528, %527 : vector<8x32xf32>
    %530 = arith.divf %528, %529 : vector<8x32xf32>
    %531 = vector.extract_strided_slice %524 {offsets = [0, 32], sizes = [8, 32], strides = [1, 1]} : vector<8x128xf32> to vector<8x32xf32>
    %532 = arith.negf %531 : vector<8x32xf32>
    %533 = math.exp %532 : vector<8x32xf32>
    %cst_235 = arith.constant 1.000000e+00 : f32
    %534 = vector.broadcast %cst_235 : f32 to vector<8x32xf32>
    %535 = arith.addf %534, %533 : vector<8x32xf32>
    %536 = arith.divf %534, %535 : vector<8x32xf32>
    %537 = vector.extract_strided_slice %524 {offsets = [0, 64], sizes = [8, 32], strides = [1, 1]} : vector<8x128xf32> to vector<8x32xf32>
    %538 = math.tanh %537 : vector<8x32xf32>
    %539 = vector.extract_strided_slice %524 {offsets = [0, 96], sizes = [8, 32], strides = [1, 1]} : vector<8x128xf32> to vector<8x32xf32>
    %540 = arith.negf %539 : vector<8x32xf32>
    %541 = math.exp %540 : vector<8x32xf32>
    %cst_236 = arith.constant 1.000000e+00 : f32
    %542 = vector.broadcast %cst_236 : f32 to vector<8x32xf32>
    %543 = arith.addf %542, %541 : vector<8x32xf32>
    %544 = arith.divf %542, %543 : vector<8x32xf32>
    %545 = arith.mulf %536, %515 : vector<8x32xf32>
    %546 = arith.mulf %530, %538 : vector<8x32xf32>
    %547 = arith.addf %545, %546 : vector<8x32xf32>
    %548 = math.tanh %547 : vector<8x32xf32>
    %549 = arith.mulf %544, %548 : vector<8x32xf32>
    %c72_237 = arith.constant 72 : index
    %c0_238 = arith.constant 0 : index
    %550 = vector.load %arg2[%c72_237, %c0_238] : memref<128x32xf32, #tpu.memory_space<vmem>>, vector<8x32xf32>
    %c48_239 = arith.constant 48 : index
    %c0_240 = arith.constant 0 : index
    %551 = vector.load %arg2[%c48_239, %c0_240] : memref<128x32xf32, #tpu.memory_space<vmem>>, vector<8x32xf32>
    %552 = arith.select %94, %550, %551 : vector<8x32xi1>, vector<8x32xf32>
    %553 = arith.mulf %552, %549 : vector<8x32xf32>
    %cst_241 = arith.constant 1.000000e+00 : f32
    %554 = vector.broadcast %cst_241 : f32 to vector<8x32xf32>
    %555 = arith.subf %554, %552 : vector<8x32xf32>
    %556 = arith.mulf %555, %510 : vector<8x32xf32>
    %557 = arith.addf %553, %556 : vector<8x32xf32>
    %558 = arith.mulf %552, %547 : vector<8x32xf32>
    %cst_242 = arith.constant 1.000000e+00 : f32
    %559 = vector.broadcast %cst_242 : f32 to vector<8x32xf32>
    %560 = arith.subf %559, %552 : vector<8x32xf32>
    %561 = arith.mulf %560, %515 : vector<8x32xf32>
    %562 = arith.addf %558, %561 : vector<8x32xf32>
    %563 = vector.extract_strided_slice %553 {offsets = [0, 0], sizes = [8, 16], strides = [1, 1]} : vector<8x32xf32> to vector<8x16xf32>
    %c72_243 = arith.constant 72 : index
    %c0_244 = arith.constant 0 : index
    %564 = vector.load %arg9[%c72_243, %c0_244] : memref<128x32xf32, #tpu.memory_space<vmem>>, vector<8x16xf32>
    tpu.vector_store %arg9[%c72_243, %c0_244], %563 {strides = array<i32>} : memref<128x32xf32, #tpu.memory_space<vmem>>, vector<8x16xf32>,
    %565 = vector.extract_strided_slice %553 {offsets = [0, 16], sizes = [8, 16], strides = [1, 1]} : vector<8x32xf32> to vector<8x16xf32>
    %c48_245 = arith.constant 48 : index
    %c16_246 = arith.constant 16 : index
    %566 = vector.load %arg9[%c48_245, %c16_246] : memref<128x32xf32, #tpu.memory_space<vmem>>, vector<8x16xf32>
    tpu.vector_store %arg9[%c48_245, %c16_246], %565 {strides = array<i32>} : memref<128x32xf32, #tpu.memory_space<vmem>>, vector<8x16xf32>,
    %c80_247 = arith.constant 80 : index
    %c0_248 = arith.constant 0 : index
    %567 = vector.load %arg10[%c80_247, %c0_248] : memref<128x128xf32, #tpu.memory_space<vmem>>, vector<8x128xf32>
    %c40_249 = arith.constant 40 : index
    %c0_250 = arith.constant 0 : index
    %568 = vector.load %arg10[%c40_249, %c0_250] : memref<128x128xf32, #tpu.memory_space<vmem>>, vector<8x128xf32>
    %569 = arith.select %91, %567, %568 : vector<8x128xi1>, vector<8x128xf32>
    %cst_251 = arith.constant dense<0.000000e+00> : vector<8x128xf32>
    %570 = tpu.matmul %557, %72, %cst_251 {dimension_numbers = #tpu.dot_dimension_numbers<[1], [0], [0], [1], [0, 0, 1, 1], [], []>} : vector<8x32xf32>, vector<32x128xf32>, vector<8x128xf32> -> vector<8x128xf32>
    %571 = arith.addf %569, %570 : vector<8x128xf32>
    %572 = vector.extract_strided_slice %571 {offsets = [0, 0], sizes = [8, 32], strides = [1, 1]} : vector<8x128xf32> to vector<8x32xf32>
    %573 = arith.negf %572 : vector<8x32xf32>
    %574 = math.exp %573 : vector<8x32xf32>
    %cst_252 = arith.constant 1.000000e+00 : f32
    %575 = vector.broadcast %cst_252 : f32 to vector<8x32xf32>
    %576 = arith.addf %575, %574 : vector<8x32xf32>
    %577 = arith.divf %575, %576 : vector<8x32xf32>
    %578 = vector.extract_strided_slice %571 {offsets = [0, 32], sizes = [8, 32], strides = [1, 1]} : vector<8x128xf32> to vector<8x32xf32>
    %579 = arith.negf %578 : vector<8x32xf32>
    %580 = math.exp %579 : vector<8x32xf32>
    %cst_253 = arith.constant 1.000000e+00 : f32
    %581 = vector.broadcast %cst_253 : f32 to vector<8x32xf32>
    %582 = arith.addf %581, %580 : vector<8x32xf32>
    %583 = arith.divf %581, %582 : vector<8x32xf32>
    %584 = vector.extract_strided_slice %571 {offsets = [0, 64], sizes = [8, 32], strides = [1, 1]} : vector<8x128xf32> to vector<8x32xf32>
    %585 = math.tanh %584 : vector<8x32xf32>
    %586 = vector.extract_strided_slice %571 {offsets = [0, 96], sizes = [8, 32], strides = [1, 1]} : vector<8x128xf32> to vector<8x32xf32>
    %587 = arith.negf %586 : vector<8x32xf32>
    %588 = math.exp %587 : vector<8x32xf32>
    %cst_254 = arith.constant 1.000000e+00 : f32
    %589 = vector.broadcast %cst_254 : f32 to vector<8x32xf32>
    %590 = arith.addf %589, %588 : vector<8x32xf32>
    %591 = arith.divf %589, %590 : vector<8x32xf32>
    %592 = arith.mulf %583, %562 : vector<8x32xf32>
    %593 = arith.mulf %577, %585 : vector<8x32xf32>
    %594 = arith.addf %592, %593 : vector<8x32xf32>
    %595 = math.tanh %594 : vector<8x32xf32>
    %596 = arith.mulf %591, %595 : vector<8x32xf32>
    %c80_255 = arith.constant 80 : index
    %c0_256 = arith.constant 0 : index
    %597 = vector.load %arg2[%c80_255, %c0_256] : memref<128x32xf32, #tpu.memory_space<vmem>>, vector<8x32xf32>
    %c40_257 = arith.constant 40 : index
    %c0_258 = arith.constant 0 : index
    %598 = vector.load %arg2[%c40_257, %c0_258] : memref<128x32xf32, #tpu.memory_space<vmem>>, vector<8x32xf32>
    %599 = arith.select %94, %597, %598 : vector<8x32xi1>, vector<8x32xf32>
    %600 = arith.mulf %599, %596 : vector<8x32xf32>
    %cst_259 = arith.constant 1.000000e+00 : f32
    %601 = vector.broadcast %cst_259 : f32 to vector<8x32xf32>
    %602 = arith.subf %601, %599 : vector<8x32xf32>
    %603 = arith.mulf %602, %557 : vector<8x32xf32>
    %604 = arith.addf %600, %603 : vector<8x32xf32>
    %605 = arith.mulf %599, %594 : vector<8x32xf32>
    %cst_260 = arith.constant 1.000000e+00 : f32
    %606 = vector.broadcast %cst_260 : f32 to vector<8x32xf32>
    %607 = arith.subf %606, %599 : vector<8x32xf32>
    %608 = arith.mulf %607, %562 : vector<8x32xf32>
    %609 = arith.addf %605, %608 : vector<8x32xf32>
    %610 = vector.extract_strided_slice %600 {offsets = [0, 0], sizes = [8, 16], strides = [1, 1]} : vector<8x32xf32> to vector<8x16xf32>
    %c80_261 = arith.constant 80 : index
    %c0_262 = arith.constant 0 : index
    %611 = vector.load %arg9[%c80_261, %c0_262] : memref<128x32xf32, #tpu.memory_space<vmem>>, vector<8x16xf32>
    tpu.vector_store %arg9[%c80_261, %c0_262], %610 {strides = array<i32>} : memref<128x32xf32, #tpu.memory_space<vmem>>, vector<8x16xf32>,
    %612 = vector.extract_strided_slice %600 {offsets = [0, 16], sizes = [8, 16], strides = [1, 1]} : vector<8x32xf32> to vector<8x16xf32>
    %c40_263 = arith.constant 40 : index
    %c16_264 = arith.constant 16 : index
    %613 = vector.load %arg9[%c40_263, %c16_264] : memref<128x32xf32, #tpu.memory_space<vmem>>, vector<8x16xf32>
    tpu.vector_store %arg9[%c40_263, %c16_264], %612 {strides = array<i32>} : memref<128x32xf32, #tpu.memory_space<vmem>>, vector<8x16xf32>,
    %c88_265 = arith.constant 88 : index
    %c0_266 = arith.constant 0 : index
    %614 = vector.load %arg10[%c88_265, %c0_266] : memref<128x128xf32, #tpu.memory_space<vmem>>, vector<8x128xf32>
    %c32_267 = arith.constant 32 : index
    %c0_268 = arith.constant 0 : index
    %615 = vector.load %arg10[%c32_267, %c0_268] : memref<128x128xf32, #tpu.memory_space<vmem>>, vector<8x128xf32>
    %616 = arith.select %91, %614, %615 : vector<8x128xi1>, vector<8x128xf32>
    %cst_269 = arith.constant dense<0.000000e+00> : vector<8x128xf32>
    %617 = tpu.matmul %604, %72, %cst_269 {dimension_numbers = #tpu.dot_dimension_numbers<[1], [0], [0], [1], [0, 0, 1, 1], [], []>} : vector<8x32xf32>, vector<32x128xf32>, vector<8x128xf32> -> vector<8x128xf32>
    %618 = arith.addf %616, %617 : vector<8x128xf32>
    %619 = vector.extract_strided_slice %618 {offsets = [0, 0], sizes = [8, 32], strides = [1, 1]} : vector<8x128xf32> to vector<8x32xf32>
    %620 = arith.negf %619 : vector<8x32xf32>
    %621 = math.exp %620 : vector<8x32xf32>
    %cst_270 = arith.constant 1.000000e+00 : f32
    %622 = vector.broadcast %cst_270 : f32 to vector<8x32xf32>
    %623 = arith.addf %622, %621 : vector<8x32xf32>
    %624 = arith.divf %622, %623 : vector<8x32xf32>
    %625 = vector.extract_strided_slice %618 {offsets = [0, 32], sizes = [8, 32], strides = [1, 1]} : vector<8x128xf32> to vector<8x32xf32>
    %626 = arith.negf %625 : vector<8x32xf32>
    %627 = math.exp %626 : vector<8x32xf32>
    %cst_271 = arith.constant 1.000000e+00 : f32
    %628 = vector.broadcast %cst_271 : f32 to vector<8x32xf32>
    %629 = arith.addf %628, %627 : vector<8x32xf32>
    %630 = arith.divf %628, %629 : vector<8x32xf32>
    %631 = vector.extract_strided_slice %618 {offsets = [0, 64], sizes = [8, 32], strides = [1, 1]} : vector<8x128xf32> to vector<8x32xf32>
    %632 = math.tanh %631 : vector<8x32xf32>
    %633 = vector.extract_strided_slice %618 {offsets = [0, 96], sizes = [8, 32], strides = [1, 1]} : vector<8x128xf32> to vector<8x32xf32>
    %634 = arith.negf %633 : vector<8x32xf32>
    %635 = math.exp %634 : vector<8x32xf32>
    %cst_272 = arith.constant 1.000000e+00 : f32
    %636 = vector.broadcast %cst_272 : f32 to vector<8x32xf32>
    %637 = arith.addf %636, %635 : vector<8x32xf32>
    %638 = arith.divf %636, %637 : vector<8x32xf32>
    %639 = arith.mulf %630, %609 : vector<8x32xf32>
    %640 = arith.mulf %624, %632 : vector<8x32xf32>
    %641 = arith.addf %639, %640 : vector<8x32xf32>
    %642 = math.tanh %641 : vector<8x32xf32>
    %643 = arith.mulf %638, %642 : vector<8x32xf32>
    %c88_273 = arith.constant 88 : index
    %c0_274 = arith.constant 0 : index
    %644 = vector.load %arg2[%c88_273, %c0_274] : memref<128x32xf32, #tpu.memory_space<vmem>>, vector<8x32xf32>
    %c32_275 = arith.constant 32 : index
    %c0_276 = arith.constant 0 : index
    %645 = vector.load %arg2[%c32_275, %c0_276] : memref<128x32xf32, #tpu.memory_space<vmem>>, vector<8x32xf32>
    %646 = arith.select %94, %644, %645 : vector<8x32xi1>, vector<8x32xf32>
    %647 = arith.mulf %646, %643 : vector<8x32xf32>
    %cst_277 = arith.constant 1.000000e+00 : f32
    %648 = vector.broadcast %cst_277 : f32 to vector<8x32xf32>
    %649 = arith.subf %648, %646 : vector<8x32xf32>
    %650 = arith.mulf %649, %604 : vector<8x32xf32>
    %651 = arith.addf %647, %650 : vector<8x32xf32>
    %652 = arith.mulf %646, %641 : vector<8x32xf32>
    %cst_278 = arith.constant 1.000000e+00 : f32
    %653 = vector.broadcast %cst_278 : f32 to vector<8x32xf32>
    %654 = arith.subf %653, %646 : vector<8x32xf32>
    %655 = arith.mulf %654, %609 : vector<8x32xf32>
    %656 = arith.addf %652, %655 : vector<8x32xf32>
    %657 = vector.extract_strided_slice %647 {offsets = [0, 0], sizes = [8, 16], strides = [1, 1]} : vector<8x32xf32> to vector<8x16xf32>
    %c88_279 = arith.constant 88 : index
    %c0_280 = arith.constant 0 : index
    %658 = vector.load %arg9[%c88_279, %c0_280] : memref<128x32xf32, #tpu.memory_space<vmem>>, vector<8x16xf32>
    tpu.vector_store %arg9[%c88_279, %c0_280], %657 {strides = array<i32>} : memref<128x32xf32, #tpu.memory_space<vmem>>, vector<8x16xf32>,
    %659 = vector.extract_strided_slice %647 {offsets = [0, 16], sizes = [8, 16], strides = [1, 1]} : vector<8x32xf32> to vector<8x16xf32>
    %c32_281 = arith.constant 32 : index
    %c16_282 = arith.constant 16 : index
    %660 = vector.load %arg9[%c32_281, %c16_282] : memref<128x32xf32, #tpu.memory_space<vmem>>, vector<8x16xf32>
    tpu.vector_store %arg9[%c32_281, %c16_282], %659 {strides = array<i32>} : memref<128x32xf32, #tpu.memory_space<vmem>>, vector<8x16xf32>,
    %c96_283 = arith.constant 96 : index
    %c0_284 = arith.constant 0 : index
    %661 = vector.load %arg10[%c96_283, %c0_284] : memref<128x128xf32, #tpu.memory_space<vmem>>, vector<8x128xf32>
    %c24_285 = arith.constant 24 : index
    %c0_286 = arith.constant 0 : index
    %662 = vector.load %arg10[%c24_285, %c0_286] : memref<128x128xf32, #tpu.memory_space<vmem>>, vector<8x128xf32>
    %663 = arith.select %91, %661, %662 : vector<8x128xi1>, vector<8x128xf32>
    %cst_287 = arith.constant dense<0.000000e+00> : vector<8x128xf32>
    %664 = tpu.matmul %651, %72, %cst_287 {dimension_numbers = #tpu.dot_dimension_numbers<[1], [0], [0], [1], [0, 0, 1, 1], [], []>} : vector<8x32xf32>, vector<32x128xf32>, vector<8x128xf32> -> vector<8x128xf32>
    %665 = arith.addf %663, %664 : vector<8x128xf32>
    %666 = vector.extract_strided_slice %665 {offsets = [0, 0], sizes = [8, 32], strides = [1, 1]} : vector<8x128xf32> to vector<8x32xf32>
    %667 = arith.negf %666 : vector<8x32xf32>
    %668 = math.exp %667 : vector<8x32xf32>
    %cst_288 = arith.constant 1.000000e+00 : f32
    %669 = vector.broadcast %cst_288 : f32 to vector<8x32xf32>
    %670 = arith.addf %669, %668 : vector<8x32xf32>
    %671 = arith.divf %669, %670 : vector<8x32xf32>
    %672 = vector.extract_strided_slice %665 {offsets = [0, 32], sizes = [8, 32], strides = [1, 1]} : vector<8x128xf32> to vector<8x32xf32>
    %673 = arith.negf %672 : vector<8x32xf32>
    %674 = math.exp %673 : vector<8x32xf32>
    %cst_289 = arith.constant 1.000000e+00 : f32
    %675 = vector.broadcast %cst_289 : f32 to vector<8x32xf32>
    %676 = arith.addf %675, %674 : vector<8x32xf32>
    %677 = arith.divf %675, %676 : vector<8x32xf32>
    %678 = vector.extract_strided_slice %665 {offsets = [0, 64], sizes = [8, 32], strides = [1, 1]} : vector<8x128xf32> to vector<8x32xf32>
    %679 = math.tanh %678 : vector<8x32xf32>
    %680 = vector.extract_strided_slice %665 {offsets = [0, 96], sizes = [8, 32], strides = [1, 1]} : vector<8x128xf32> to vector<8x32xf32>
    %681 = arith.negf %680 : vector<8x32xf32>
    %682 = math.exp %681 : vector<8x32xf32>
    %cst_290 = arith.constant 1.000000e+00 : f32
    %683 = vector.broadcast %cst_290 : f32 to vector<8x32xf32>
    %684 = arith.addf %683, %682 : vector<8x32xf32>
    %685 = arith.divf %683, %684 : vector<8x32xf32>
    %686 = arith.mulf %677, %656 : vector<8x32xf32>
    %687 = arith.mulf %671, %679 : vector<8x32xf32>
    %688 = arith.addf %686, %687 : vector<8x32xf32>
    %689 = math.tanh %688 : vector<8x32xf32>
    %690 = arith.mulf %685, %689 : vector<8x32xf32>
    %c96_291 = arith.constant 96 : index
    %c0_292 = arith.constant 0 : index
    %691 = vector.load %arg2[%c96_291, %c0_292] : memref<128x32xf32, #tpu.memory_space<vmem>>, vector<8x32xf32>
    %c24_293 = arith.constant 24 : index
    %c0_294 = arith.constant 0 : index
    %692 = vector.load %arg2[%c24_293, %c0_294] : memref<128x32xf32, #tpu.memory_space<vmem>>, vector<8x32xf32>
    %693 = arith.select %94, %691, %692 : vector<8x32xi1>, vector<8x32xf32>
    %694 = arith.mulf %693, %690 : vector<8x32xf32>
    %cst_295 = arith.constant 1.000000e+00 : f32
    %695 = vector.broadcast %cst_295 : f32 to vector<8x32xf32>
    %696 = arith.subf %695, %693 : vector<8x32xf32>
    %697 = arith.mulf %696, %651 : vector<8x32xf32>
    %698 = arith.addf %694, %697 : vector<8x32xf32>
    %699 = arith.mulf %693, %688 : vector<8x32xf32>
    %cst_296 = arith.constant 1.000000e+00 : f32
    %700 = vector.broadcast %cst_296 : f32 to vector<8x32xf32>
    %701 = arith.subf %700, %693 : vector<8x32xf32>
    %702 = arith.mulf %701, %656 : vector<8x32xf32>
    %703 = arith.addf %699, %702 : vector<8x32xf32>
    %704 = vector.extract_strided_slice %694 {offsets = [0, 0], sizes = [8, 16], strides = [1, 1]} : vector<8x32xf32> to vector<8x16xf32>
    %c96_297 = arith.constant 96 : index
    %c0_298 = arith.constant 0 : index
    %705 = vector.load %arg9[%c96_297, %c0_298] : memref<128x32xf32, #tpu.memory_space<vmem>>, vector<8x16xf32>
    tpu.vector_store %arg9[%c96_297, %c0_298], %704 {strides = array<i32>} : memref<128x32xf32, #tpu.memory_space<vmem>>, vector<8x16xf32>,
    %706 = vector.extract_strided_slice %694 {offsets = [0, 16], sizes = [8, 16], strides = [1, 1]} : vector<8x32xf32> to vector<8x16xf32>
    %c24_299 = arith.constant 24 : index
    %c16_300 = arith.constant 16 : index
    %707 = vector.load %arg9[%c24_299, %c16_300] : memref<128x32xf32, #tpu.memory_space<vmem>>, vector<8x16xf32>
    tpu.vector_store %arg9[%c24_299, %c16_300], %706 {strides = array<i32>} : memref<128x32xf32, #tpu.memory_space<vmem>>, vector<8x16xf32>,
    %c104_301 = arith.constant 104 : index
    %c0_302 = arith.constant 0 : index
    %708 = vector.load %arg10[%c104_301, %c0_302] : memref<128x128xf32, #tpu.memory_space<vmem>>, vector<8x128xf32>
    %c16_303 = arith.constant 16 : index
    %c0_304 = arith.constant 0 : index
    %709 = vector.load %arg10[%c16_303, %c0_304] : memref<128x128xf32, #tpu.memory_space<vmem>>, vector<8x128xf32>
    %710 = arith.select %91, %708, %709 : vector<8x128xi1>, vector<8x128xf32>
    %cst_305 = arith.constant dense<0.000000e+00> : vector<8x128xf32>
    %711 = tpu.matmul %698, %72, %cst_305 {dimension_numbers = #tpu.dot_dimension_numbers<[1], [0], [0], [1], [0, 0, 1, 1], [], []>} : vector<8x32xf32>, vector<32x128xf32>, vector<8x128xf32> -> vector<8x128xf32>
    %712 = arith.addf %710, %711 : vector<8x128xf32>
    %713 = vector.extract_strided_slice %712 {offsets = [0, 0], sizes = [8, 32], strides = [1, 1]} : vector<8x128xf32> to vector<8x32xf32>
    %714 = arith.negf %713 : vector<8x32xf32>
    %715 = math.exp %714 : vector<8x32xf32>
    %cst_306 = arith.constant 1.000000e+00 : f32
    %716 = vector.broadcast %cst_306 : f32 to vector<8x32xf32>
    %717 = arith.addf %716, %715 : vector<8x32xf32>
    %718 = arith.divf %716, %717 : vector<8x32xf32>
    %719 = vector.extract_strided_slice %712 {offsets = [0, 32], sizes = [8, 32], strides = [1, 1]} : vector<8x128xf32> to vector<8x32xf32>
    %720 = arith.negf %719 : vector<8x32xf32>
    %721 = math.exp %720 : vector<8x32xf32>
    %cst_307 = arith.constant 1.000000e+00 : f32
    %722 = vector.broadcast %cst_307 : f32 to vector<8x32xf32>
    %723 = arith.addf %722, %721 : vector<8x32xf32>
    %724 = arith.divf %722, %723 : vector<8x32xf32>
    %725 = vector.extract_strided_slice %712 {offsets = [0, 64], sizes = [8, 32], strides = [1, 1]} : vector<8x128xf32> to vector<8x32xf32>
    %726 = math.tanh %725 : vector<8x32xf32>
    %727 = vector.extract_strided_slice %712 {offsets = [0, 96], sizes = [8, 32], strides = [1, 1]} : vector<8x128xf32> to vector<8x32xf32>
    %728 = arith.negf %727 : vector<8x32xf32>
    %729 = math.exp %728 : vector<8x32xf32>
    %cst_308 = arith.constant 1.000000e+00 : f32
    %730 = vector.broadcast %cst_308 : f32 to vector<8x32xf32>
    %731 = arith.addf %730, %729 : vector<8x32xf32>
    %732 = arith.divf %730, %731 : vector<8x32xf32>
    %733 = arith.mulf %724, %703 : vector<8x32xf32>
    %734 = arith.mulf %718, %726 : vector<8x32xf32>
    %735 = arith.addf %733, %734 : vector<8x32xf32>
    %736 = math.tanh %735 : vector<8x32xf32>
    %737 = arith.mulf %732, %736 : vector<8x32xf32>
    %c104_309 = arith.constant 104 : index
    %c0_310 = arith.constant 0 : index
    %738 = vector.load %arg2[%c104_309, %c0_310] : memref<128x32xf32, #tpu.memory_space<vmem>>, vector<8x32xf32>
    %c16_311 = arith.constant 16 : index
    %c0_312 = arith.constant 0 : index
    %739 = vector.load %arg2[%c16_311, %c0_312] : memref<128x32xf32, #tpu.memory_space<vmem>>, vector<8x32xf32>
    %740 = arith.select %94, %738, %739 : vector<8x32xi1>, vector<8x32xf32>
    %741 = arith.mulf %740, %737 : vector<8x32xf32>
    %cst_313 = arith.constant 1.000000e+00 : f32
    %742 = vector.broadcast %cst_313 : f32 to vector<8x32xf32>
    %743 = arith.subf %742, %740 : vector<8x32xf32>
    %744 = arith.mulf %743, %698 : vector<8x32xf32>
    %745 = arith.addf %741, %744 : vector<8x32xf32>
    %746 = arith.mulf %740, %735 : vector<8x32xf32>
    %cst_314 = arith.constant 1.000000e+00 : f32
    %747 = vector.broadcast %cst_314 : f32 to vector<8x32xf32>
    %748 = arith.subf %747, %740 : vector<8x32xf32>
    %749 = arith.mulf %748, %703 : vector<8x32xf32>
    %750 = arith.addf %746, %749 : vector<8x32xf32>
    %751 = vector.extract_strided_slice %741 {offsets = [0, 0], sizes = [8, 16], strides = [1, 1]} : vector<8x32xf32> to vector<8x16xf32>
    %c104_315 = arith.constant 104 : index
    %c0_316 = arith.constant 0 : index
    %752 = vector.load %arg9[%c104_315, %c0_316] : memref<128x32xf32, #tpu.memory_space<vmem>>, vector<8x16xf32>
    tpu.vector_store %arg9[%c104_315, %c0_316], %751 {strides = array<i32>} : memref<128x32xf32, #tpu.memory_space<vmem>>, vector<8x16xf32>,
    %753 = vector.extract_strided_slice %741 {offsets = [0, 16], sizes = [8, 16], strides = [1, 1]} : vector<8x32xf32> to vector<8x16xf32>
    %c16_317 = arith.constant 16 : index
    %c16_318 = arith.constant 16 : index
    %754 = vector.load %arg9[%c16_317, %c16_318] : memref<128x32xf32, #tpu.memory_space<vmem>>, vector<8x16xf32>
    tpu.vector_store %arg9[%c16_317, %c16_318], %753 {strides = array<i32>} : memref<128x32xf32, #tpu.memory_space<vmem>>, vector<8x16xf32>,
    %c112_319 = arith.constant 112 : index
    %c0_320 = arith.constant 0 : index
    %755 = vector.load %arg10[%c112_319, %c0_320] : memref<128x128xf32, #tpu.memory_space<vmem>>, vector<8x128xf32>
    %c8_321 = arith.constant 8 : index
    %c0_322 = arith.constant 0 : index
    %756 = vector.load %arg10[%c8_321, %c0_322] : memref<128x128xf32, #tpu.memory_space<vmem>>, vector<8x128xf32>
    %757 = arith.select %91, %755, %756 : vector<8x128xi1>, vector<8x128xf32>
    %cst_323 = arith.constant dense<0.000000e+00> : vector<8x128xf32>
    %758 = tpu.matmul %745, %72, %cst_323 {dimension_numbers = #tpu.dot_dimension_numbers<[1], [0], [0], [1], [0, 0, 1, 1], [], []>} : vector<8x32xf32>, vector<32x128xf32>, vector<8x128xf32> -> vector<8x128xf32>
    %759 = arith.addf %757, %758 : vector<8x128xf32>
    %760 = vector.extract_strided_slice %759 {offsets = [0, 0], sizes = [8, 32], strides = [1, 1]} : vector<8x128xf32> to vector<8x32xf32>
    %761 = arith.negf %760 : vector<8x32xf32>
    %762 = math.exp %761 : vector<8x32xf32>
    %cst_324 = arith.constant 1.000000e+00 : f32
    %763 = vector.broadcast %cst_324 : f32 to vector<8x32xf32>
    %764 = arith.addf %763, %762 : vector<8x32xf32>
    %765 = arith.divf %763, %764 : vector<8x32xf32>
    %766 = vector.extract_strided_slice %759 {offsets = [0, 32], sizes = [8, 32], strides = [1, 1]} : vector<8x128xf32> to vector<8x32xf32>
    %767 = arith.negf %766 : vector<8x32xf32>
    %768 = math.exp %767 : vector<8x32xf32>
    %cst_325 = arith.constant 1.000000e+00 : f32
    %769 = vector.broadcast %cst_325 : f32 to vector<8x32xf32>
    %770 = arith.addf %769, %768 : vector<8x32xf32>
    %771 = arith.divf %769, %770 : vector<8x32xf32>
    %772 = vector.extract_strided_slice %759 {offsets = [0, 64], sizes = [8, 32], strides = [1, 1]} : vector<8x128xf32> to vector<8x32xf32>
    %773 = math.tanh %772 : vector<8x32xf32>
    %774 = vector.extract_strided_slice %759 {offsets = [0, 96], sizes = [8, 32], strides = [1, 1]} : vector<8x128xf32> to vector<8x32xf32>
    %775 = arith.negf %774 : vector<8x32xf32>
    %776 = math.exp %775 : vector<8x32xf32>
    %cst_326 = arith.constant 1.000000e+00 : f32
    %777 = vector.broadcast %cst_326 : f32 to vector<8x32xf32>
    %778 = arith.addf %777, %776 : vector<8x32xf32>
    %779 = arith.divf %777, %778 : vector<8x32xf32>
    %780 = arith.mulf %771, %750 : vector<8x32xf32>
    %781 = arith.mulf %765, %773 : vector<8x32xf32>
    %782 = arith.addf %780, %781 : vector<8x32xf32>
    %783 = math.tanh %782 : vector<8x32xf32>
    %784 = arith.mulf %779, %783 : vector<8x32xf32>
    %c112_327 = arith.constant 112 : index
    %c0_328 = arith.constant 0 : index
    %785 = vector.load %arg2[%c112_327, %c0_328] : memref<128x32xf32, #tpu.memory_space<vmem>>, vector<8x32xf32>
    %c8_329 = arith.constant 8 : index
    %c0_330 = arith.constant 0 : index
    %786 = vector.load %arg2[%c8_329, %c0_330] : memref<128x32xf32, #tpu.memory_space<vmem>>, vector<8x32xf32>
    %787 = arith.select %94, %785, %786 : vector<8x32xi1>, vector<8x32xf32>
    %788 = arith.mulf %787, %784 : vector<8x32xf32>
    %cst_331 = arith.constant 1.000000e+00 : f32
    %789 = vector.broadcast %cst_331 : f32 to vector<8x32xf32>
    %790 = arith.subf %789, %787 : vector<8x32xf32>
    %791 = arith.mulf %790, %745 : vector<8x32xf32>
    %792 = arith.addf %788, %791 : vector<8x32xf32>
    %793 = arith.mulf %787, %782 : vector<8x32xf32>
    %cst_332 = arith.constant 1.000000e+00 : f32
    %794 = vector.broadcast %cst_332 : f32 to vector<8x32xf32>
    %795 = arith.subf %794, %787 : vector<8x32xf32>
    %796 = arith.mulf %795, %750 : vector<8x32xf32>
    %797 = arith.addf %793, %796 : vector<8x32xf32>
    %798 = vector.extract_strided_slice %788 {offsets = [0, 0], sizes = [8, 16], strides = [1, 1]} : vector<8x32xf32> to vector<8x16xf32>
    %c112_333 = arith.constant 112 : index
    %c0_334 = arith.constant 0 : index
    %799 = vector.load %arg9[%c112_333, %c0_334] : memref<128x32xf32, #tpu.memory_space<vmem>>, vector<8x16xf32>
    tpu.vector_store %arg9[%c112_333, %c0_334], %798 {strides = array<i32>} : memref<128x32xf32, #tpu.memory_space<vmem>>, vector<8x16xf32>,
    %800 = vector.extract_strided_slice %788 {offsets = [0, 16], sizes = [8, 16], strides = [1, 1]} : vector<8x32xf32> to vector<8x16xf32>
    %c8_335 = arith.constant 8 : index
    %c16_336 = arith.constant 16 : index
    %801 = vector.load %arg9[%c8_335, %c16_336] : memref<128x32xf32, #tpu.memory_space<vmem>>, vector<8x16xf32>
    tpu.vector_store %arg9[%c8_335, %c16_336], %800 {strides = array<i32>} : memref<128x32xf32, #tpu.memory_space<vmem>>, vector<8x16xf32>,
    %c120_337 = arith.constant 120 : index
    %c0_338 = arith.constant 0 : index
    %802 = vector.load %arg10[%c120_337, %c0_338] : memref<128x128xf32, #tpu.memory_space<vmem>>, vector<8x128xf32>
    %c0_339 = arith.constant 0 : index
    %c0_340 = arith.constant 0 : index
    %803 = vector.load %arg10[%c0_339, %c0_340] : memref<128x128xf32, #tpu.memory_space<vmem>>, vector<8x128xf32>
    %804 = arith.select %91, %802, %803 : vector<8x128xi1>, vector<8x128xf32>
    %cst_341 = arith.constant dense<0.000000e+00> : vector<8x128xf32>
    %805 = tpu.matmul %792, %72, %cst_341 {dimension_numbers = #tpu.dot_dimension_numbers<[1], [0], [0], [1], [0, 0, 1, 1], [], []>} : vector<8x32xf32>, vector<32x128xf32>, vector<8x128xf32> -> vector<8x128xf32>
    %806 = arith.addf %804, %805 : vector<8x128xf32>
    %807 = vector.extract_strided_slice %806 {offsets = [0, 0], sizes = [8, 32], strides = [1, 1]} : vector<8x128xf32> to vector<8x32xf32>
    %808 = arith.negf %807 : vector<8x32xf32>
    %809 = math.exp %808 : vector<8x32xf32>
    %cst_342 = arith.constant 1.000000e+00 : f32
    %810 = vector.broadcast %cst_342 : f32 to vector<8x32xf32>
    %811 = arith.addf %810, %809 : vector<8x32xf32>
    %812 = arith.divf %810, %811 : vector<8x32xf32>
    %813 = vector.extract_strided_slice %806 {offsets = [0, 32], sizes = [8, 32], strides = [1, 1]} : vector<8x128xf32> to vector<8x32xf32>
    %814 = arith.negf %813 : vector<8x32xf32>
    %815 = math.exp %814 : vector<8x32xf32>
    %cst_343 = arith.constant 1.000000e+00 : f32
    %816 = vector.broadcast %cst_343 : f32 to vector<8x32xf32>
    %817 = arith.addf %816, %815 : vector<8x32xf32>
    %818 = arith.divf %816, %817 : vector<8x32xf32>
    %819 = vector.extract_strided_slice %806 {offsets = [0, 64], sizes = [8, 32], strides = [1, 1]} : vector<8x128xf32> to vector<8x32xf32>
    %820 = math.tanh %819 : vector<8x32xf32>
    %821 = vector.extract_strided_slice %806 {offsets = [0, 96], sizes = [8, 32], strides = [1, 1]} : vector<8x128xf32> to vector<8x32xf32>
    %822 = arith.negf %821 : vector<8x32xf32>
    %823 = math.exp %822 : vector<8x32xf32>
    %cst_344 = arith.constant 1.000000e+00 : f32
    %824 = vector.broadcast %cst_344 : f32 to vector<8x32xf32>
    %825 = arith.addf %824, %823 : vector<8x32xf32>
    %826 = arith.divf %824, %825 : vector<8x32xf32>
    %827 = arith.mulf %818, %797 : vector<8x32xf32>
    %828 = arith.mulf %812, %820 : vector<8x32xf32>
    %829 = arith.addf %827, %828 : vector<8x32xf32>
    %830 = math.tanh %829 : vector<8x32xf32>
    %831 = arith.mulf %826, %830 : vector<8x32xf32>
    %c120_345 = arith.constant 120 : index
    %c0_346 = arith.constant 0 : index
    %832 = vector.load %arg2[%c120_345, %c0_346] : memref<128x32xf32, #tpu.memory_space<vmem>>, vector<8x32xf32>
    %c0_347 = arith.constant 0 : index
    %c0_348 = arith.constant 0 : index
    %833 = vector.load %arg2[%c0_347, %c0_348] : memref<128x32xf32, #tpu.memory_space<vmem>>, vector<8x32xf32>
    %834 = arith.select %94, %832, %833 : vector<8x32xi1>, vector<8x32xf32>
    %835 = arith.mulf %834, %831 : vector<8x32xf32>
    %836 = vector.extract_strided_slice %835 {offsets = [0, 0], sizes = [8, 16], strides = [1, 1]} : vector<8x32xf32> to vector<8x16xf32>
    %c120_349 = arith.constant 120 : index
    %c0_350 = arith.constant 0 : index
    %837 = vector.load %arg9[%c120_349, %c0_350] : memref<128x32xf32, #tpu.memory_space<vmem>>, vector<8x16xf32>
    tpu.vector_store %arg9[%c120_349, %c0_350], %836 {strides = array<i32>} : memref<128x32xf32, #tpu.memory_space<vmem>>, vector<8x16xf32>,
    %838 = vector.extract_strided_slice %835 {offsets = [0, 16], sizes = [8, 16], strides = [1, 1]} : vector<8x32xf32> to vector<8x16xf32>
    %c0_351 = arith.constant 0 : index
    %c16_352 = arith.constant 16 : index
    %839 = vector.load %arg9[%c0_351, %c16_352] : memref<128x32xf32, #tpu.memory_space<vmem>>, vector<8x16xf32>
    tpu.vector_store %arg9[%c0_351, %c16_352], %838 {strides = array<i32>} : memref<128x32xf32, #tpu.memory_space<vmem>>, vector<8x16xf32>,
    return
  }
  func.func @transform_0(%arg0: i32) -> (i32, i32) {
    %c0_i32 = arith.constant 0 : i32
    %c0_i32_0 = arith.constant 0 : i32
    return %arg0, %c0_i32 : i32, i32
  }
  func.func @transform_1(%arg0: i32) -> (i32, i32) {
    %c0_i32 = arith.constant 0 : i32
    %c0_i32_0 = arith.constant 0 : i32
    return %arg0, %c0_i32 : i32, i32
  }
  func.func @transform_2(%arg0: i32) -> (i32, i32, i32) {
    %c0_i32 = arith.constant 0 : i32
    %c0_i32_0 = arith.constant 0 : i32
    %c0_i32_1 = arith.constant 0 : i32
    %c0_i32_2 = arith.constant 0 : i32
    return %c0_i32, %c0_i32_0, %c0_i32_1 : i32, i32, i32
  }
  func.func @transform_3(%arg0: i32) -> (i32, i32, i32) {
    %c0_i32 = arith.constant 0 : i32
    %c0_i32_0 = arith.constant 0 : i32
    %c0_i32_1 = arith.constant 0 : i32
    %c0_i32_2 = arith.constant 0 : i32
    return %c0_i32, %c0_i32_0, %c0_i32_1 : i32, i32, i32
  }
  func.func @transform_4(%arg0: i32) -> (i32, i32, i32) {
    %c0_i32 = arith.constant 0 : i32
    %c0_i32_0 = arith.constant 0 : i32
    %c0_i32_1 = arith.constant 0 : i32
    %c0_i32_2 = arith.constant 0 : i32
    return %c0_i32, %c0_i32_0, %c0_i32_1 : i32, i32, i32
  }
  func.func @transform_5(%arg0: i32) -> (i32, i32) {
    %c0_i32 = arith.constant 0 : i32
    %c0_i32_0 = arith.constant 0 : i32
    %c0_i32_1 = arith.constant 0 : i32
    return %c0_i32, %c0_i32_0 : i32, i32
  }
  func.func @transform_6(%arg0: i32) -> (i32, i32) {
    %c0_i32 = arith.constant 0 : i32
    %c0_i32_0 = arith.constant 0 : i32
    %c0_i32_1 = arith.constant 0 : i32
    return %c0_i32, %c0_i32_0 : i32, i32
  }
  func.func @transform_7(%arg0: i32) -> (i32, i32) {
    %c0_i32 = arith.constant 0 : i32
    %c0_i32_0 = arith.constant 0 : i32
    %c0_i32_1 = arith.constant 0 : i32
    return %c0_i32, %c0_i32_0 : i32, i32
  }
  func.func @transform_8(%arg0: i32) -> (i32, i32) {
    %c0_i32 = arith.constant 0 : i32
    %c0_i32_0 = arith.constant 0 : i32
    return %arg0, %c0_i32 : i32, i32
  }
}

</mosaic_0001>

<bundles_post_ra>
// kernel: encoder_forward.1
= control target key start
LH: loop header
LB: loop body
LE: loop exit
PB: predicated region body
PF: predicated region fallthrough
CT: control target
= control target key end

     0   :  { %v4743_v3 = vmov 0   ;;  %s4744_s13 = smov 32   ;;  %s4745_s14 = smov 96   ;;  %vm30_vm0 = vcmask 261120   ;;  %vm233_vm1 = vcmask 523264   ;;  %vm250_vm2 = vcmask 785408   ;;  %s6459_s0 = inlined_call_operand.vmem [shape: f32[160,32], index: 0, kind: input, shape index: {}]   ;;  %s6460_s2 = inlined_call_operand.vmem [shape: bf16[3,160,32], index: 2, kind: input, shape index: {}]   ;;  %s6461_s3 = inlined_call_operand.vmem [shape: f32[3,1,32], index: 3, kind: input, shape index: {}]   ;;  %s6462_s4 = inlined_call_operand.vmem [shape: f32[3,1,32], index: 4, kind: input, shape index: {}]   ;;  %s6463_s5 = inlined_call_operand.vmem [shape: bf16[32,128], index: 5, kind: input, shape index: {}]   ;;  %s6464_s6 = inlined_call_operand.vmem [shape: f32[32,128], index: 6, kind: input, shape index: {}]   ;;  %s6465_s7 = inlined_call_operand.vmem [shape: f32[1,128], index: 7, kind: input, shape index: {}]   ;;  %s6466_s1 = inlined_call_operand.vmem [shape: f32[128,32], index: 1, kind: input, shape index: {}]   ;;  %s6467_s8 = inlined_call_operand.vmem [shape: f32[128,32], index: 8, kind: output, shape index: {}]  }
   0x1   :  { %v4797_v0 = vld [vmem:[%s6459_s0 + $0x8] sm:$0xff]  ;;  %v4802_v1 = vld [vmem:[%s6459_s0 + $0x10] sm:$0xff]  ;;  %v4807_v2 = vld [vmem:[%s6459_s0 + $0x18] sm:$0xff]  ;;  %387 = vmatprep.subr.bf16.mxu0 %v4743_v3  ;;  %913 = vmatprep.subr.bf16.mxu1 %v4743_v3  ;;  %s4746_s23 = smov 64   ;;  %vm4748_vm3 = vmmov 0   ;;  %vm1908_vm6 = vcmask 130048  }
   0x2   :  { %v4219_v4 = vpack.i.bf16 %v4802_v1, %v4797_v0  ;;  %v4816_v5 = vld [vmem:[%s6459_s0 + $0x20] sm:$0xff]  ;;  %v4224_v7 = vpack.i.bf16 %v4807_v2, %v4802_v1  ;;  %v4827_v8 = vld [vmem:[%s6459_s0 + $0x28] sm:$0xff]  ;;  %v4832_v9 = vld [vmem:[%s6459_s0 + $0x30] sm:$0xff]  ;;  %vm1910_vm7 = vcmask 261248  }
   0x3   :  { %v4229_v6 = vpack.i.bf16 %v4816_v5, %v4807_v2  ;;  %v4837_v10 = vld [vmem:[%s6459_s0 + $0x90] sm:$0xff]  ;;  %v4842_v11 = vld [vmem:[%s6459_s0 + $0x98] sm:$0xff]  ;;  %v4239_v12 = vpack.i.bf16 %v4827_v8, %v4816_v5  ;;  %v268_v15 = vpack.c.bf16 %v4827_v8, %v4816_v5  ;;  %v4244_v16 = vpack.i.bf16 %v4832_v9, %v4827_v8  ;;  %v4874_v20 = vld [vmem:[%s6459_s0 + $0x40] sm:$0xff] }
   0x4   :  { %4220 = vrot.lane.b32.xlu0 %v4219_v4, %s4744_s13  ;;  %v282_v13 = vpack.c.bf16 %v4842_v11, %v4837_v10  ;;  %v4579_v14 = vld [vmem:[%s6460_s2 + $0x38] sm:$0xff]   ;;  %v4580_v18 = vld [vmem:[%s6460_s2 + $0x30] sm:$0xff]   ;;  %v4581_v21 = vld [vmem:[%s6460_s2 + $0x28] sm:$0xff]  }
   0x5   :  { %4230 = vrot.lane.b32.xlu1 %v4229_v6, %s4745_s14  ;;  %v4860_v17 = vld [vmem:[%s6459_s0 + $0x38] sm:$0xff]  ;;  %388 = vmatpush1.bf16.msra.mxu0 %v4579_v14  ;;  %v4882_v22 = vld [vmem:[%s6459_s0 + $0x48] sm:$0xff]  ;;  %v4891_v24 = vld [vmem:[%s6459_s0 + $0x50] sm:$0xff] }
   0x6   :  { %3791 = vmatprep.mubr.msk.bf16.mxu0 %vm30_vm0, %v268_v15  ;;  %389 = vmatprep.subr.bf16.mxu0 %v4743_v3  ;;  %v4254_v19 = vpack.i.bf16 %v4860_v17, %v4832_v9  ;;  %v4259_v23 = vpack.i.bf16 %v4874_v20, %v4860_v17  ;;  %v4582_v25 = vld [vmem:[%s6460_s2 + $0x20] sm:$0xff]   ;;  %v4269_v26 = vpack.i.bf16 %v4882_v22, %v4874_v20  ;;  %v4904_v27 = vld [vmem:[%s6459_s0 + $0x58] sm:$0xff]  ;;  %v4584_v31 = vld [vmem:[%s6460_s2 + $0x10] sm:$0xff]  }
   0x7   :  { %v4583_v28 = vld [vmem:[%s6460_s2 + $0x18] sm:$0xff]   ;;  %v4274_v29 = vpack.i.bf16 %v4891_v24, %v4882_v22  ;;  %v4915_v30 = vld [vmem:[%s6459_s0 + $0x60] sm:$0xff]  ;;  %v4284_v32 = vpack.i.bf16 %v4904_v27, %v4891_v24  ;;  %v4928_v33 = vld [vmem:[%s6459_s0 + $0x68] sm:$0xff] }
   0x8   :  { %4225 = vrot.lane.b32.xlu0 %v4224_v7, %s4746_s23  ;;  %v4289_v34 = vpack.i.bf16 %v4915_v30, %v4904_v27  ;;  %v4937_v35 = vld [vmem:[%s6459_s0 + $0x70] sm:$0xff]  ;;  %v4585_v36 = vld [vmem:[%s6460_s2 + $0x8] sm:$0xff]   ;;  %v4299_v37 = vpack.i.bf16 %v4928_v33, %v4915_v30  ;;  %v4953_v39 = vld [vmem:[%s6459_s0 + $0x78] sm:$0xff] }
   0x9   :  { %4235 = vrot.lane.b32.xlu1 %v4229_v6, %s4744_s13  ;;  %390 = vmatpush1.bf16.msra.mxu0 %v4580_v18  ;;  %v4304_v38 = vpack.i.bf16 %v4937_v35, %v4928_v33  ;;  %v4586_v40 = vld [vmem:[%s6460_s2] sm:$0xff]   ;;  %v4314_v41 = vpack.i.bf16 %v4953_v39, %v4937_v35  ;;  %v4587_v43 = vld [vmem:[%s6460_s2 + $0x48] sm:$0xff]  }
   0xa   :  { %391 = vmatprep.subr.bf16.mxu0 %v4743_v3  ;;  %v4966_v42 = vld [vmem:[%s6459_s0 + $0x80] sm:$0xff]  ;;  %v4978_v45 = vld [vmem:[%s6459_s0 + $0x88] sm:$0xff] }
   0xb   :  { %v4319_v44 = vpack.i.bf16 %v4966_v42, %v4953_v39  ;;  %v280_v46 = vpack.c.bf16 %v4978_v45, %v4966_v42  ;;  %v4588_v47 = vld [vmem:[%s6460_s2 + $0x40] sm:$0xff]   ;;  %v4329_v48 = vpack.i.bf16 %v4978_v45, %v4966_v42  ;;  %v4334_v49 = vpack.i.bf16 %v4837_v10, %v4978_v45  ;;  %v4589_v10 = vld [vmem:[%s6460_s2 + $0x88] sm:$0xff]  }
   0xc   :  { %4240 = vrot.lane.b32.xlu0 %v4239_v12, %s4746_s23  ;;  %v35_v54 = vld [vmem:[%s6459_s0] sm:$0xff]  ;;  %v270_v12 = vpack.c.bf16 %v4860_v17, %v4832_v9  ;;  %914 = vmatpush1.bf16.msra.mxu1 %v4589_v10 }
   0xd   :  { %4245 = vrot.lane.b32.xlu1 %v4244_v16, %s4745_s14  ;;  %392 = vmatpush1.bf16.msra.mxu0 %v4581_v21  ;;  %v4590_v11 = vld [vmem:[%s6460_s2 + $0x80] sm:$0xff]  }
   0xe   :  { %393 = vmatprep.subr.bf16.mxu0 %v4743_v3  ;;  %915 = vmatprep.subr.bf16.mxu1 %v4743_v3 }
  0x10   :  { %4250 = vrot.lane.b32.xlu0 %v4244_v16, %s4744_s13  ;;  %916 = vmatpush1.bf16.msra.mxu1 %v4590_v11 }
  0x11   :  { %4255 = vrot.lane.b32.xlu1 %v4254_v19, %s4746_s23  ;;  %394 = vmatpush1.bf16.msra.mxu0 %v4582_v25 }
  0x12   :  { %395 = vmatprep.subr.bf16.mxu0 %v4743_v3  ;;  %917 = vmatprep.subr.bf16.mxu1 %v4743_v3 }
  0x14   :  { %4260 = vrot.lane.b32.xlu0 %v4259_v23, %s4745_s14 }
  0x15   :  { %4265 = vrot.lane.b32.xlu1 %v4259_v23, %s4744_s13  ;;  %396 = vmatpush1.bf16.msra.mxu0 %v4583_v28 }
  0x16   :  { %397 = vmatprep.subr.bf16.mxu0 %v4743_v3 }
  0x18   :  { %4270 = vrot.lane.b32.xlu0 %v4269_v26, %s4746_s23 }
  0x19   :  { %4275 = vrot.lane.b32.xlu1 %v4274_v29, %s4745_s14  ;;  %398 = vmatpush1.bf16.msra.mxu0 %v4584_v31 }
  0x1a   :  { %399 = vmatprep.subr.bf16.mxu0 %v4743_v3 }
  0x1c   :  { %4280 = vrot.lane.b32.xlu0 %v4274_v29, %s4744_s13 }
  0x1d   :  { %4285 = vrot.lane.b32.xlu1 %v4284_v32, %s4746_s23  ;;  %400 = vmatpush1.bf16.msra.mxu0 %v4585_v36 }
  0x1e   :  { %401 = vmatprep.subr.bf16.mxu0 %v4743_v3 }
  0x20   :  { %4290 = vrot.lane.b32.xlu0 %v4289_v34, %s4745_s14 }
  0x21   :  { %4295 = vrot.lane.b32.xlu1 %v4289_v34, %s4744_s13  ;;  %402 = vmatpush1.bf16.msra.mxu0 %v4586_v40 }
  0x22   :  { %415 = vmatprep.subr.bf16.mxu0 %v4743_v3 }
  0x24   :  { %4300 = vrot.lane.b32.xlu0 %v4299_v37, %s4746_s23 }
  0x25   :  { %4305 = vrot.lane.b32.xlu1 %v4304_v38, %s4745_s14  ;;  %416 = vmatpush2.bf16.msra.mxu0 %v4587_v43 }
  0x26   :  { %417 = vmatprep.subr.bf16.mxu0 %v4743_v3 }
  0x28   :  { %4310 = vrot.lane.b32.xlu0 %v4304_v38, %s4744_s13 }
  0x29   :  { %4315 = vrot.lane.b32.xlu1 %v4314_v41, %s4746_s23  ;;  %418 = vmatpush2.bf16.msra.mxu0 %v4588_v47  ;;  %v272_v47 = vpack.c.bf16 %v4882_v22, %v4874_v20 }
  0x2a   :  { %1441 = vmatprep.subr.bf16.mxu0 %v4743_v3 }
  0x2c   :  { %4320 = vrot.lane.b32.xlu0 %v4319_v44, %s4745_s14 }
  0x2d   :  { %4325 = vrot.lane.b32.xlu1 %v4319_v44, %s4744_s13 }
  0x30   :  { %4330 = vrot.lane.b32.xlu0 %v4329_v48, %s4746_s23 }
  0x31   :  { %4335 = vrot.lane.b32.xlu1 %v4334_v49, %s4745_s14 }
  0x76   :  { %v4221_v50 = vpop.permute.xlu0 %4220 }
  0x77   :  { %v4231_v51 = vpop.permute.xlu1 %4230  ;;  %v4223_v52 = vunpack.i.h.bf16 %v4221_v50  ;;  %v4222_v53 = vunpack.i.l.bf16 %v4221_v50 }
  0x78   :  { %v4233_v55 = vunpack.i.h.bf16 %v4231_v51  ;;  %v4232_v56 = vunpack.i.l.bf16 %v4231_v51 }
  0x79   :  { %v218_v61 = vsel %vm30_vm0, %v4797_v0, %v4223_v52  ;;  %v217_v62 = vsel %vm30_vm0, %v35_v54, %v4222_v53 }
  0x7a   :  { %v4226_v57 = vpop.permute.xlu0 %4225 }
  0x7b   :  { %v4228_v58 = vunpack.i.h.bf16 %v4226_v57  ;;  %v4227_v59 = vunpack.i.l.bf16 %v4226_v57  ;;  %v4236_v60 = vpop.permute.xlu1 %4235 }
  0x7c   :  { %v4238_v63 = vunpack.i.h.bf16 %v4236_v60  ;;  %v4237_v4 = vunpack.i.l.bf16 %v4236_v60 }
  0x7d   :  { %v234_v6 = vsel %vm233_vm1, %v217_v62, %v4227_v59  ;;  %v235_v7 = vsel %vm233_vm1, %v218_v61, %v4228_v58  ;;  %v274_v62 = vpack.c.bf16 %v4904_v27, %v4891_v24 }
  0x7e   :  { %v220_v14 = vsel %vm30_vm0, %v4807_v2, %v4238_v63  ;;  %v219_v15 = vsel %vm30_vm0, %v4802_v1, %v4237_v4  ;;  %v4241_v16 = vpop.permute.xlu0 %4240  ;;  %v251_v0 = vsel %vm250_vm2, %v234_v6, %v4232_v56  ;;  %v252_v18 = vsel %vm250_vm2, %v235_v7, %v4233_v55 }
  0x7f   :  { %v4243_v19 = vunpack.i.h.bf16 %v4241_v16  ;;  %v4242_v21 = vunpack.i.l.bf16 %v4241_v16  ;;  %v4246_v23 = vpop.permute.xlu1 %4245  ;;  %v267_v25 = vpack.c.bf16 %v252_v18, %v251_v0 }
  0x80   :  { %v4248_v26 = vunpack.i.h.bf16 %v4246_v23  ;;  %v4247_v28 = vunpack.i.l.bf16 %v4246_v23 }
  0x81   :  { %420 = vmatmul.mubr.bf16.vlgmr.msra.gmra.mxu0 %v267_v25  ;;  %v236_v29 = vsel %vm233_vm1, %v219_v15, %v4242_v21  ;;  %v237_v31 = vsel %vm233_vm1, %v220_v14, %v4243_v19 }
  0x82   :  { %v4251_v2 = vpop.permute.xlu0 %4250  ;;  %3792 = vmatprep.mubr.msk.bf16.mxu0 %vm30_vm0, %v270_v12  ;;  %v253_v36 = vsel %vm250_vm2, %v236_v29, %v4247_v28  ;;  %v254_v37 = vsel %vm250_vm2, %v237_v31, %v4248_v26  ;;  %v276_v26 = vpack.c.bf16 %v4928_v33, %v4915_v30 }
  0x83   :  { %v4253_v1 = vunpack.i.h.bf16 %v4251_v2  ;;  %v4252_v32 = vunpack.i.l.bf16 %v4251_v2  ;;  %v4256_v34 = vpop.permute.xlu1 %4255  ;;  %v269_v48 = vpack.c.bf16 %v254_v37, %v253_v36 }
  0x84   :  { %v4258_v38 = vunpack.i.h.bf16 %v4256_v34  ;;  %v4257_v40 = vunpack.i.l.bf16 %v4256_v34 }
  0x85   :  { %v222_v41 = vsel %vm30_vm0, %v4827_v8, %v4253_v1  ;;  %v221_v43 = vsel %vm30_vm0, %v4816_v5, %v4252_v32 }
  0x86   :  { %v4261_v44 = vpop.permute.xlu0 %4260  ;;  %v238_v52 = vsel %vm233_vm1, %v221_v43, %v4257_v40  ;;  %v239_v53 = vsel %vm233_vm1, %v222_v41, %v4258_v38 }
  0x87   :  { %v4266_v49 = vpop.permute.xlu1 %4265  ;;  %v4263_v50 = vunpack.i.h.bf16 %v4261_v44  ;;  %v4262_v51 = vunpack.i.l.bf16 %v4261_v44 }
  0x88   :  { %v4268_v54 = vunpack.i.h.bf16 %v4266_v49  ;;  %v4267_v55 = vunpack.i.l.bf16 %v4266_v49 }
  0x89   :  { %428 = vmatmul.mubr.bf16.gmra.mxu0 %v269_v48  ;;  %v255_v5 = vsel %vm250_vm2, %v238_v52, %v4262_v51  ;;  %v256_v8 = vsel %vm250_vm2, %v239_v53, %v4263_v50 }
  0x8a   :  { %v4271_v56 = vpop.permute.xlu0 %4270  ;;  %3793 = vmatprep.mubr.msk.bf16.mxu0 %vm30_vm0, %v272_v47  ;;  %v224_v60 = vsel %vm30_vm0, %v4860_v17, %v4268_v54  ;;  %v223_v61 = vsel %vm30_vm0, %v4832_v9, %v4267_v55  ;;  %v271_v63 = vpack.c.bf16 %v256_v8, %v255_v5  ;;  %v278_v47 = vpack.c.bf16 %v4953_v39, %v4937_v35 }
  0x8b   :  { %v4273_v57 = vunpack.i.h.bf16 %v4271_v56  ;;  %v4272_v58 = vunpack.i.l.bf16 %v4271_v56  ;;  %v4276_v59 = vpop.permute.xlu1 %4275 }
  0x8c   :  { %v4278_v6 = vunpack.i.h.bf16 %v4276_v59  ;;  %v4277_v7 = vunpack.i.l.bf16 %v4276_v59 }
  0x8d   :  { %v240_v14 = vsel %vm233_vm1, %v223_v61, %v4272_v58  ;;  %v241_v15 = vsel %vm233_vm1, %v224_v60, %v4273_v57 }
  0x8e   :  { %v4281_v4 = vpop.permute.xlu0 %4280  ;;  %v257_v17 = vsel %vm250_vm2, %v240_v14, %v4277_v7  ;;  %v258_v9 = vsel %vm250_vm2, %v241_v15, %v4278_v6 }
  0x8f   :  { %v4286_v12 = vpop.permute.xlu1 %4285  ;;  %v4283_v16 = vunpack.i.h.bf16 %v4281_v4  ;;  %v4282_v0 = vunpack.i.l.bf16 %v4281_v4  ;;  %v273_v28 = vpack.c.bf16 %v258_v9, %v257_v17 }
  0x90   :  { %v4288_v18 = vunpack.i.h.bf16 %v4286_v12  ;;  %v4287_v19 = vunpack.i.l.bf16 %v4286_v12 }
  0x91   :  { %436 = vmatmul.mubr.bf16.gmra.mxu0 %v271_v63  ;;  %v226_v23 = vsel %vm30_vm0, %v4882_v22, %v4283_v16  ;;  %v225_v25 = vsel %vm30_vm0, %v4874_v20, %v4282_v0 }
  0x92   :  { %3794 = vmatprep.mubr.msk.bf16.mxu0 %vm30_vm0, %v274_v62  ;;  %v4291_v21 = vpop.permute.xlu0 %4290  ;;  %v242_v32 = vsel %vm233_vm1, %v225_v25, %v4287_v19  ;;  %v243_v34 = vsel %vm233_vm1, %v226_v23, %v4288_v18  ;;  %v4592_v25 = vld [vmem:[%s6460_s2 + $0x70] sm:$0xff]  }
  0x93   :  { %v4296_v29 = vpop.permute.xlu1 %4295  ;;  %v4293_v31 = vunpack.i.h.bf16 %v4291_v21  ;;  %v4292_v2 = vunpack.i.l.bf16 %v4291_v21 }
  0x94   :  { %v4298_v36 = vunpack.i.h.bf16 %v4296_v29  ;;  %v4297_v37 = vunpack.i.l.bf16 %v4296_v29  ;;  %v4595_v29 = vld [vmem:[%s6460_s2 + $0x58] sm:$0xff]  }
  0x95   :  { %v259_v22 = vsel %vm250_vm2, %v242_v32, %v4292_v2  ;;  %v260_v20 = vsel %vm250_vm2, %v243_v34, %v4293_v31  ;;  %v5124_v31 = vld [vmem:[%s6461_s3] ss:$0 sm:$0xff] }
  0x96   :  { %v4301_v1 = vpop.permute.xlu0 %4300  ;;  %v228_v43 = vsel %vm30_vm0, %v4904_v27, %v4298_v36  ;;  %v227_v44 = vsel %vm30_vm0, %v4891_v24, %v4297_v37  ;;  %v275_v48 = vpack.c.bf16 %v260_v20, %v259_v22  ;;  %v4596_v22 = vld [vmem:[%s6460_s2 + $0x50] sm:$0xff]  }
  0x97   :  { %v4303_v38 = vunpack.i.h.bf16 %v4301_v1  ;;  %v4302_v40 = vunpack.i.l.bf16 %v4301_v1  ;;  %v4306_v41 = vpop.permute.xlu1 %4305  ;;  %v5129_v1 = vld [vmem:[%s6462_s4] ss:$0 sm:$0xff] }
  0x98   :  { %v4308_v50 = vunpack.i.h.bf16 %v4306_v41  ;;  %v4307_v51 = vunpack.i.l.bf16 %v4306_v41 }
  0x99   :  { %444 = vmatmul.mubr.bf16.gmra.mxu0 %v273_v28  ;;  %v244_v53 = vsel %vm233_vm1, %v227_v44, %v4302_v40  ;;  %v245_v54 = vsel %vm233_vm1, %v228_v43, %v4303_v38  ;;  %v4594_v28 = vld [vmem:[%s6460_s2 + $0x60] sm:$0xff]   ;;  %v4597_v44 = vld [vmem:[%s6460_s2 + $0x98] sm:$0xff]  }
  0x9a   :  { %3795 = vmatprep.mubr.msk.bf16.mxu0 %vm30_vm0, %v276_v26  ;;  %v4311_v49 = vpop.permute.xlu0 %4310  ;;  %v261_v27 = vsel %vm250_vm2, %v244_v53, %v4307_v51  ;;  %v262_v24 = vsel %vm250_vm2, %v245_v54, %v4308_v50  ;;  %v4593_v26 = vld [vmem:[%s6460_s2 + $0x68] sm:$0xff]   ;;  %v4598_v53 = vld [vmem:[%s6460_s2 + $0x90] sm:$0xff]  }
  0x9b   :  { %v4316_v52 = vpop.permute.xlu1 %4315  ;;  %v4313_v55 = vunpack.i.h.bf16 %v4311_v49  ;;  %v4312_v56 = vunpack.i.l.bf16 %v4311_v49  ;;  %v277_v60 = vpack.c.bf16 %v262_v24, %v261_v27 }
  0x9c   :  { %v4318_v5 = vunpack.i.h.bf16 %v4316_v52  ;;  %v4317_v8 = vunpack.i.l.bf16 %v4316_v52 }
  0x9d   :  { %v230_v58 = vsel %vm30_vm0, %v4928_v33, %v4313_v55  ;;  %v229_v59 = vsel %vm30_vm0, %v4915_v30, %v4312_v56 }
  0x9e   :  { %v4321_v57 = vpop.permute.xlu0 %4320  ;;  %v246_v4 = vsel %vm233_vm1, %v229_v59, %v4317_v8  ;;  %v247_v6 = vsel %vm233_vm1, %v230_v58, %v4318_v5 }
  0x9f   :  { %v4326_v61 = vpop.permute.xlu1 %4325  ;;  %v4323_v62 = vunpack.i.h.bf16 %v4321_v57  ;;  %v4322_v63 = vunpack.i.l.bf16 %v4321_v57 }
  0xa0   :  { %v4328_v7 = vunpack.i.h.bf16 %v4326_v61  ;;  %v4327_v12 = vunpack.i.l.bf16 %v4326_v61 }
  0xa1   :  { %452 = vmatmul.mubr.bf16.gmra.mxu0 %v275_v48  ;;  %v263_v33 = vsel %vm250_vm2, %v246_v4, %v4322_v63  ;;  %v264_v30 = vsel %vm250_vm2, %v247_v6, %v4323_v62 }
  0xa2   :  { %3796 = vmatprep.mubr.msk.bf16.mxu0 %vm30_vm0, %v278_v47  ;;  %v4331_v14 = vpop.permute.xlu0 %4330  ;;  %v232_v17 = vsel %vm30_vm0, %v4953_v39, %v4328_v7  ;;  %v231_v9 = vsel %vm30_vm0, %v4937_v35, %v4327_v12  ;;  %v279_v18 = vpack.c.bf16 %v264_v30, %v263_v33  ;;  %v4747_v35 = vmov 0.0  }
  0xa3   :  { %v4333_v15 = vunpack.i.h.bf16 %v4331_v14  ;;  %v4332_v16 = vunpack.i.l.bf16 %v4331_v14  ;;  %v4336_v0 = vpop.permute.xlu1 %4335  ;;  %32 = vst.msk [vmem:[#allocation3 + $0x8] sm:$0xff] %vm30_vm0, %v4747_v35  ;;  %31 = vst.msk [vmem:[#allocation3] sm:$0xff] %vm30_vm0, %v4747_v35 }
  0xa4   :  { %v4338_v19 = vunpack.i.h.bf16 %v4336_v0  ;;  %v4337_v21 = vunpack.i.l.bf16 %v4336_v0  ;;  %33 = vst.msk [vmem:[#allocation3 + $0x90] sm:$0xff] %vm30_vm0, %v4747_v35  ;;  %34 = vst.msk [vmem:[#allocation3 + $0x98] sm:$0xff] %vm30_vm0, %v4747_v35 }
  0xa5   :  { %v248_v42 = vsel %vm233_vm1, %v231_v9, %v4332_v16  ;;  %v249_v45 = vsel %vm233_vm1, %v232_v17, %v4333_v15 }
  0xa6   :  { %v266_v39 = vsel %vm250_vm2, %v249_v45, %v4338_v19 }
  0xa9   :  { %460 = vmatmul.mubr.bf16.gmra.mxu0 %v277_v60 }
  0xaa   :  { %3797 = vmatprep.mubr.msk.bf16.mxu0 %vm30_vm0, %v280_v46  ;;  %v265_v46 = vsel %vm250_vm2, %v248_v42, %v4337_v21  ;;  %v5147_v52 = vld [vmem:[#allocation3 + $0x8] sm:$0xff] }
  0xab   :  { %v281_v23 = vpack.c.bf16 %v266_v39, %v265_v46 }
  0xb1   :  { %468 = vmatmul.mubr.bf16.gmra.mxu0 %v279_v18 }
  0xb2   :  { %3798 = vmatprep.mubr.msk.bf16.mxu0 %vm30_vm0, %v282_v13  ;;  %v4591_v13 = vld [vmem:[%s6460_s2 + $0x78] sm:$0xff]  }
  0xb3   :  { %918 = vmatpush1.bf16.msra.mxu1 %v4591_v13 }
  0xb4   :  { %919 = vmatprep.subr.bf16.mxu1 %v4743_v3 }
  0xb7   :  { %920 = vmatpush1.bf16.msra.mxu1 %v4592_v25 }
  0xb8   :  { %921 = vmatprep.subr.bf16.mxu1 %v4743_v3 }
  0xb9   :  { %476 = vmatmul.mubr.bf16.gmra.mxu0 %v281_v23 }
  0xbb   :  { %922 = vmatpush1.bf16.msra.mxu1 %v4593_v26 }
  0xbc   :  { %923 = vmatprep.subr.bf16.mxu1 %v4743_v3 }
  0xbf   :  { %924 = vmatpush1.bf16.msra.mxu1 %v4594_v28 }
  0xc0   :  { %925 = vmatprep.subr.bf16.mxu1 %v4743_v3 }
  0xc3   :  { %926 = vmatpush1.bf16.msra.mxu1 %v4595_v29 }
  0xc4   :  { %927 = vmatprep.subr.bf16.mxu1 %v4743_v3 }
  0xc7   :  { %928 = vmatpush1.bf16.msra.mxu1 %v4596_v22 }
  0xc8   :  { %941 = vmatprep.subr.bf16.mxu1 %v4743_v3 }
  0xcb   :  { %942 = vmatpush2.bf16.msra.mxu1 %v4597_v44 }
  0xcc   :  { %943 = vmatprep.subr.bf16.mxu1 %v4743_v3 }
  0xcf   :  { %944 = vmatpush2.bf16.msra.mxu1 %v4598_v53 }
 0x141   :  { %v421_v2 = vpop.f32.mrf.mxu0 }
 0x142   :  { %v491_v32 = vmul.f32 %v5124_v31, %v421_v2 }
 0x143   :  { %v423_v34 = vpop.f32.mrf.mxu0 }
 0x144   :  { %v514_v36 = vadd.f32 %v5129_v1, %v491_v32 }
 0x145   :  { %v424_v37 = vpop.f32.mrf.mxu0 }
 0x146   :  { %v530_v20 = vmax.f32 %v514_v36, 0.0  ;;  %v492_v38 = vmul.f32 %v5124_v31, %v424_v37 }
 0x147   :  { %v426_v40 = vpop.f32.mrf.mxu0 }
 0x148   :  { %546 = vst.msk [vmem:[#allocation3 + $0x10] sm:$0xff] %vm30_vm0, %v530_v20  ;;  %v515_v41 = vadd.f32 %v5129_v1, %v492_v38 }
 0x149   :  { %v429_v43 = vpop.f32.mrf.mxu0 }
 0x14a   :  { %v531_v47 = vmax.f32 %v515_v41, 0.0  ;;  %v493_v48 = vmul.f32 %v5124_v31, %v429_v43 }
 0x14b   :  { %v431_v49 = vpop.f32.mrf.mxu0 }
 0x14c   :  { %547 = vst.msk [vmem:[#allocation3 + $0x18] sm:$0xff] %vm30_vm0, %v531_v47  ;;  %v516_v50 = vadd.f32 %v5129_v1, %v493_v48 }
 0x14d   :  { %v432_v51 = vpop.f32.mrf.mxu0 }
 0x14e   :  { %v532_v54 = vmax.f32 %v516_v50, 0.0  ;;  %v494_v55 = vmul.f32 %v5124_v31, %v432_v51 }
 0x14f   :  { %v434_v56 = vpop.f32.mrf.mxu0  ;;  %v5153_v27 = vld [vmem:[#allocation3 + $0x10] sm:$0xff] }
 0x150   :  { %548 = vst.msk [vmem:[#allocation3 + $0x20] sm:$0xff] %vm30_vm0, %v532_v54  ;;  %v517_v24 = vadd.f32 %v5129_v1, %v494_v55  ;;  %v4339_v5 = vpack.i.bf16 %v5153_v27, %v5147_v52 }
 0x151   :  { %v437_v8 = vpop.f32.mrf.mxu0 }
 0x152   :  { %v533_v57 = vmax.f32 %v517_v24, 0.0  ;;  %v495_v58 = vmul.f32 %v5124_v31, %v437_v8  ;;  %4340 = vrot.lane.b32.xlu0 %v4339_v5, %s4744_s13 }
 0x153   :  { %v439_v59 = vpop.f32.mrf.mxu0  ;;  %v5161_v60 = vld [vmem:[#allocation3 + $0x18] sm:$0xff] }
 0x154   :  { %549 = vst.msk [vmem:[#allocation3 + $0x28] sm:$0xff] %vm30_vm0, %v533_v57  ;;  %v518_v61 = vadd.f32 %v5129_v1, %v495_v58  ;;  %v4344_v62 = vpack.i.bf16 %v5161_v60, %v5153_v27 }
 0x155   :  { %v440_v63 = vpop.f32.mrf.mxu0 }
 0x156   :  { %v534_v4 = vmax.f32 %v518_v61, 0.0  ;;  %v496_v6 = vmul.f32 %v5124_v31, %v440_v63  ;;  %4345 = vrot.lane.b32.xlu1 %v4344_v62, %s4746_s23 }
 0x157   :  { %v442_v7 = vpop.f32.mrf.mxu0  ;;  %v5169_v12 = vld [vmem:[#allocation3 + $0x20] sm:$0xff] }
 0x158   :  { %550 = vst.msk [vmem:[#allocation3 + $0x30] sm:$0xff] %vm30_vm0, %v534_v4  ;;  %v519_v14 = vadd.f32 %v5129_v1, %v496_v6  ;;  %v4354_v33 = vpack.i.bf16 %v5169_v12, %v5161_v60 }
 0x159   :  { %v445_v30 = vpop.f32.mrf.mxu0 }
 0x15a   :  { %v535_v15 = vmax.f32 %v519_v14, 0.0  ;;  %v497_v16 = vmul.f32 %v5124_v31, %v445_v30  ;;  %4355 = vrot.lane.b32.xlu1 %v4354_v33, %s4744_s13  ;;  %4350 = vrot.lane.b32.xlu0 %v4354_v33, %s4745_s14 }
 0x15b   :  { %v447_v0 = vpop.f32.mrf.mxu0  ;;  %v5178_v17 = vld [vmem:[#allocation3 + $0x28] sm:$0xff] }
 0x15c   :  { %551 = vst.msk [vmem:[#allocation3 + $0x38] sm:$0xff] %vm30_vm0, %v535_v15  ;;  %v520_v9 = vadd.f32 %v5129_v1, %v497_v16  ;;  %v4359_v18 = vpack.i.bf16 %v5178_v17, %v5169_v12  ;;  %v793_v19 = vpack.c.bf16 %v5178_v17, %v5169_v12 }
 0x15d   :  { %v448_v21 = vpop.f32.mrf.mxu0 }
 0x15e   :  { %v536_v42 = vmax.f32 %v520_v9, 0.0  ;;  %v498_v45 = vmul.f32 %v5124_v31, %v448_v21  ;;  %4360 = vrot.lane.b32.xlu0 %v4359_v18, %s4746_s23  ;;  %3831 = vmatprep.mubr.msk.bf16.mxu1 %vm30_vm0, %v793_v19 }
 0x15f   :  { %v450_v46 = vpop.f32.mrf.mxu0  ;;  %v5189_v39 = vld [vmem:[#allocation3 + $0x30] sm:$0xff] }
 0x160   :  { %552 = vst.msk [vmem:[#allocation3 + $0x40] sm:$0xff] %vm30_vm0, %v536_v42  ;;  %v521_v23 = vadd.f32 %v5129_v1, %v498_v45  ;;  %v4369_v10 = vpack.i.bf16 %v5189_v39, %v5178_v17 }
 0x161   :  { %v453_v11 = vpop.f32.mrf.mxu0 }
 0x162   :  { %v537_v13 = vmax.f32 %v521_v23, 0.0  ;;  %v499_v25 = vmul.f32 %v5124_v31, %v453_v11  ;;  %4370 = vrot.lane.b32.xlu0 %v4369_v10, %s4744_s13  ;;  %4365 = vrot.lane.b32.xlu1 %v4369_v10, %s4745_s14 }
 0x163   :  { %v455_v26 = vpop.f32.mrf.mxu0  ;;  %v5198_v28 = vld [vmem:[#allocation3 + $0x38] sm:$0xff] }
 0x164   :  { %553 = vst.msk [vmem:[#allocation3 + $0x48] sm:$0xff] %vm30_vm0, %v537_v13  ;;  %v522_v29 = vadd.f32 %v5129_v1, %v499_v25  ;;  %v4374_v2 = vpack.i.bf16 %v5198_v28, %v5189_v39 }
 0x165   :  { %v456_v32 = vpop.f32.mrf.mxu0 }
 0x166   :  { %v538_v34 = vmax.f32 %v522_v29, 0.0  ;;  %v500_v36 = vmul.f32 %v5124_v31, %v456_v32  ;;  %4375 = vrot.lane.b32.xlu1 %v4374_v2, %s4746_s23  ;;  %v5275_v2 = vld [vmem:[#allocation3 + $0x90] sm:$0xff] }
 0x167   :  { %v458_v37 = vpop.f32.mrf.mxu0  ;;  %v5206_v22 = vld [vmem:[#allocation3 + $0x40] sm:$0xff] }
 0x168   :  { %554 = vst.msk [vmem:[#allocation3 + $0x50] sm:$0xff] %vm30_vm0, %v538_v34  ;;  %v523_v20 = vadd.f32 %v5129_v1, %v500_v36  ;;  %v4384_v38 = vpack.i.bf16 %v5206_v22, %v5198_v28 }
 0x169   :  { %v461_v40 = vpop.f32.mrf.mxu0 }
 0x16a   :  { %v539_v41 = vmax.f32 %v523_v20, 0.0  ;;  %v501_v43 = vmul.f32 %v5124_v31, %v461_v40  ;;  %4385 = vrot.lane.b32.xlu1 %v4384_v38, %s4744_s13  ;;  %4380 = vrot.lane.b32.xlu0 %v4384_v38, %s4745_s14 }
 0x16b   :  { %v463_v44 = vpop.f32.mrf.mxu0  ;;  %v5215_v47 = vld [vmem:[#allocation3 + $0x48] sm:$0xff] }
 0x16c   :  { %555 = vst.msk [vmem:[#allocation3 + $0x58] sm:$0xff] %vm30_vm0, %v539_v41  ;;  %v524_v48 = vadd.f32 %v5129_v1, %v501_v43  ;;  %v4389_v49 = vpack.i.bf16 %v5215_v47, %v5206_v22  ;;  %v5287_v41 = vld [vmem:[#allocation3] sm:$0xff] }
 0x16d   :  { %v464_v50 = vpop.f32.mrf.mxu0 }
 0x16e   :  { %v540_v51 = vmax.f32 %v524_v48, 0.0  ;;  %v502_v53 = vmul.f32 %v5124_v31, %v464_v50  ;;  %4390 = vrot.lane.b32.xlu0 %v4389_v49, %s4746_s23 }
 0x16f   :  { %v466_v54 = vpop.f32.mrf.mxu0  ;;  %v5223_v55 = vld [vmem:[#allocation3 + $0x50] sm:$0xff] }
 0x170   :  { %556 = vst.msk [vmem:[#allocation3 + $0x60] sm:$0xff] %vm30_vm0, %v540_v51  ;;  %v525_v56 = vadd.f32 %v5129_v1, %v502_v53  ;;  %v4399_v24 = vpack.i.bf16 %v5223_v55, %v5215_v47 }
 0x171   :  { %v469_v5 = vpop.f32.mrf.mxu0 }
 0x172   :  { %v541_v8 = vmax.f32 %v525_v56, 0.0  ;;  %v503_v57 = vmul.f32 %v5124_v31, %v469_v5  ;;  %4400 = vrot.lane.b32.xlu0 %v4399_v24, %s4744_s13  ;;  %4395 = vrot.lane.b32.xlu1 %v4399_v24, %s4745_s14 }
 0x173   :  { %v471_v58 = vpop.f32.mrf.mxu0  ;;  %v5232_v59 = vld [vmem:[#allocation3 + $0x58] sm:$0xff] }
 0x174   :  { %557 = vst.msk [vmem:[#allocation3 + $0x68] sm:$0xff] %vm30_vm0, %v541_v8  ;;  %v526_v61 = vadd.f32 %v5129_v1, %v503_v57  ;;  %v4404_v62 = vpack.i.bf16 %v5232_v59, %v5223_v55 }
 0x175   :  { %v472_v63 = vpop.f32.mrf.mxu0 }
 0x176   :  { %v542_v4 = vmax.f32 %v526_v61, 0.0  ;;  %v504_v6 = vmul.f32 %v5124_v31, %v472_v63  ;;  %4405 = vrot.lane.b32.xlu1 %v4404_v62, %s4746_s23  ;;  %v795_v63 = vpack.c.bf16 %v5198_v28, %v5189_v39 }
 0x177   :  { %v474_v7 = vpop.f32.mrf.mxu0  ;;  %v5240_v14 = vld [vmem:[#allocation3 + $0x60] sm:$0xff] }
 0x178   :  { %558 = vst.msk [vmem:[#allocation3 + $0x70] sm:$0xff] %vm30_vm0, %v542_v4  ;;  %v527_v33 = vadd.f32 %v5129_v1, %v504_v6  ;;  %v4414_v30 = vpack.i.bf16 %v5240_v14, %v5232_v59 }
 0x179   :  { %v477_v15 = vpop.f32.mrf.mxu0 }
 0x17a   :  { %v543_v16 = vmax.f32 %v527_v33, 0.0  ;;  %v505_v0 = vmul.f32 %v5124_v31, %v477_v15  ;;  %4415 = vrot.lane.b32.xlu1 %v4414_v30, %s4744_s13  ;;  %4410 = vrot.lane.b32.xlu0 %v4414_v30, %s4745_s14 }
 0x17b   :  { %v479_v9 = vpop.f32.mrf.mxu0  ;;  %v5249_v18 = vld [vmem:[#allocation3 + $0x68] sm:$0xff] }
 0x17c   :  { %559 = vst.msk [vmem:[#allocation3 + $0x78] sm:$0xff] %vm30_vm0, %v543_v16  ;;  %v528_v19 = vadd.f32 %v5129_v1, %v505_v0  ;;  %v4419_v21 = vpack.i.bf16 %v5249_v18, %v5240_v14 }
 0x17d   :  { %v480_v42 = vpop.f32.mrf.mxu0 }
 0x17e   :  { %v544_v45 = vmax.f32 %v528_v19, 0.0  ;;  %v506_v46 = vmul.f32 %v5124_v31, %v480_v42  ;;  %4420 = vrot.lane.b32.xlu0 %v4419_v21, %s4746_s23 }
 0x17f   :  { %v482_v23 = vpop.f32.mrf.mxu0  ;;  %v5257_v10 = vld [vmem:[#allocation3 + $0x70] sm:$0xff] }
 0x180   :  { %560 = vst.msk [vmem:[#allocation3 + $0x80] sm:$0xff] %vm30_vm0, %v544_v45  ;;  %v529_v11 = vadd.f32 %v5129_v1, %v506_v46  ;;  %v4429_v13 = vpack.i.bf16 %v5257_v10, %v5249_v18 }
 0x182   :  { %v545_v25 = vmax.f32 %v529_v11, 0.0  ;;  %4430 = vrot.lane.b32.xlu0 %v4429_v13, %s4744_s13  ;;  %4425 = vrot.lane.b32.xlu1 %v4429_v13, %s4745_s14 }
 0x183   :  { %v5265_v26 = vld [vmem:[#allocation3 + $0x78] sm:$0xff] }
 0x184   :  { %561 = vst.msk [vmem:[#allocation3 + $0x88] sm:$0xff] %vm30_vm0, %v545_v25  ;;  %v4434_v31 = vpack.i.bf16 %v5265_v26, %v5257_v10 }
 0x186   :  { %4435 = vrot.lane.b32.xlu1 %v4434_v31, %s4746_s23 }
 0x187   :  { %v5271_v29 = vld [vmem:[#allocation3 + $0x80] sm:$0xff] }
 0x188   :  { %v4444_v1 = vpack.i.bf16 %v5271_v29, %v5265_v26 }
 0x18a   :  { %4445 = vrot.lane.b32.xlu1 %v4444_v1, %s4744_s13  ;;  %4440 = vrot.lane.b32.xlu0 %v4444_v1, %s4745_s14 }
 0x18b   :  { %v5279_v32 = vld [vmem:[#allocation3 + $0x88] sm:$0xff] }
 0x18c   :  { %v4454_v34 = vpack.i.bf16 %v5275_v2, %v5279_v32  ;;  %v4449_v36 = vpack.i.bf16 %v5279_v32, %v5271_v29 }
 0x18e   :  { %4455 = vrot.lane.b32.xlu1 %v4454_v34, %s4745_s14  ;;  %4450 = vrot.lane.b32.xlu0 %v4449_v36, %s4746_s23 }
 0x1c4   :  { %v4341_v37 = vpop.permute.xlu0 %4340 }
 0x1c5   :  { %v4343_v38 = vunpack.i.h.bf16 %v4341_v37  ;;  %v4342_v40 = vunpack.i.l.bf16 %v4341_v37 }
 0x1c7   :  { %v745_v49 = vsel %vm30_vm0, %v5147_v52, %v4343_v38  ;;  %v744_v50 = vsel %vm30_vm0, %v5287_v41, %v4342_v40 }
 0x1c8   :  { %v4346_v20 = vpop.permute.xlu1 %4345 }
 0x1c9   :  { %v4348_v43 = vunpack.i.h.bf16 %v4346_v20  ;;  %v4347_v44 = vunpack.i.l.bf16 %v4346_v20 }
 0x1cb   :  { %v760_v56 = vsel %vm233_vm1, %v744_v50, %v4347_v44  ;;  %v761_v24 = vsel %vm233_vm1, %v745_v49, %v4348_v43 }
 0x1cc   :  { %v4351_v48 = vpop.permute.xlu0 %4350  ;;  %v4356_v54 = vpop.permute.xlu1 %4355 }
 0x1cd   :  { %v4353_v51 = vunpack.i.h.bf16 %v4351_v48  ;;  %v4352_v53 = vunpack.i.l.bf16 %v4351_v48  ;;  %v4358_v61 = vunpack.i.h.bf16 %v4356_v54  ;;  %v4357_v62 = vunpack.i.l.bf16 %v4356_v54 }
 0x1cf   :  { %v776_v5 = vsel %vm250_vm2, %v760_v56, %v4352_v53  ;;  %v777_v8 = vsel %vm250_vm2, %v761_v24, %v4353_v51  ;;  %v747_v33 = vsel %vm30_vm0, %v5161_v60, %v4358_v61  ;;  %v746_v30 = vsel %vm30_vm0, %v5153_v27, %v4357_v62 }
 0x1d0   :  { %v4361_v57 = vpop.permute.xlu0 %4360  ;;  %v792_v58 = vpack.c.bf16 %v777_v8, %v776_v5  ;;  %v797_v60 = vpack.c.bf16 %v5215_v47, %v5206_v22 }
 0x1d1   :  { %v4363_v4 = vunpack.i.h.bf16 %v4361_v57  ;;  %v4362_v6 = vunpack.i.l.bf16 %v4361_v57 }
 0x1d2   :  { %946 = vmatmul.mubr.bf16.vlgmr.msra.gmra.mxu1 %v792_v58 }
 0x1d3   :  { %3832 = vmatprep.mubr.msk.bf16.mxu1 %vm30_vm0, %v795_v63  ;;  %v762_v9 = vsel %vm233_vm1, %v746_v30, %v4362_v6  ;;  %v763_v19 = vsel %vm233_vm1, %v747_v33, %v4363_v4 }
 0x1d4   :  { %v4366_v7 = vpop.permute.xlu1 %4365  ;;  %v4371_v0 = vpop.permute.xlu0 %4370 }
 0x1d5   :  { %v4368_v15 = vunpack.i.h.bf16 %v4366_v7  ;;  %v4367_v16 = vunpack.i.l.bf16 %v4366_v7  ;;  %v4373_v23 = vunpack.i.h.bf16 %v4371_v0  ;;  %v4372_v11 = vunpack.i.l.bf16 %v4371_v0 }
 0x1d7   :  { %v778_v21 = vsel %vm250_vm2, %v762_v9, %v4367_v16  ;;  %v779_v42 = vsel %vm250_vm2, %v763_v19, %v4368_v15  ;;  %v749_v31 = vsel %vm30_vm0, %v5178_v17, %v4373_v23  ;;  %v748_v1 = vsel %vm30_vm0, %v5169_v12, %v4372_v11 }
 0x1d8   :  { %v4376_v45 = vpop.permute.xlu1 %4375  ;;  %v794_v46 = vpack.c.bf16 %v779_v42, %v778_v21  ;;  %v799_v17 = vpack.c.bf16 %v5232_v59, %v5223_v55 }
 0x1d9   :  { %v4378_v13 = vunpack.i.h.bf16 %v4376_v45  ;;  %v4377_v27 = vunpack.i.l.bf16 %v4376_v45 }
 0x1da   :  { %954 = vmatmul.mubr.bf16.gmra.mxu1 %v794_v46 }
 0x1db   :  { %3833 = vmatprep.mubr.msk.bf16.mxu1 %vm30_vm0, %v797_v60  ;;  %v764_v20 = vsel %vm233_vm1, %v748_v1, %v4377_v27  ;;  %v765_v38 = vsel %vm233_vm1, %v749_v31, %v4378_v13 }
 0x1dc   :  { %v4381_v25 = vpop.permute.xlu0 %4380  ;;  %v4386_v37 = vpop.permute.xlu1 %4385 }
 0x1dd   :  { %v4383_v34 = vunpack.i.h.bf16 %v4381_v25  ;;  %v4382_v36 = vunpack.i.l.bf16 %v4381_v25  ;;  %v4388_v49 = vunpack.i.h.bf16 %v4386_v37  ;;  %v4387_v50 = vunpack.i.l.bf16 %v4386_v37 }
 0x1df   :  { %v780_v40 = vsel %vm250_vm2, %v764_v20, %v4382_v36  ;;  %v781_v43 = vsel %vm250_vm2, %v765_v38, %v4383_v34  ;;  %v751_v54 = vsel %vm30_vm0, %v5198_v28, %v4388_v49  ;;  %v750_v56 = vsel %vm30_vm0, %v5189_v39, %v4387_v50 }
 0x1e0   :  { %v4391_v44 = vpop.permute.xlu0 %4390  ;;  %v796_v48 = vpack.c.bf16 %v781_v43, %v780_v40  ;;  %v801_v28 = vpack.c.bf16 %v5249_v18, %v5240_v14 }
 0x1e1   :  { %v4393_v51 = vunpack.i.h.bf16 %v4391_v44  ;;  %v4392_v12 = vunpack.i.l.bf16 %v4391_v44 }
 0x1e2   :  { %962 = vmatmul.mubr.bf16.gmra.mxu1 %v796_v48 }
 0x1e3   :  { %3834 = vmatprep.mubr.msk.bf16.mxu1 %vm30_vm0, %v799_v17  ;;  %v766_v57 = vsel %vm233_vm1, %v750_v56, %v4392_v12  ;;  %v767_v58 = vsel %vm233_vm1, %v751_v54, %v4393_v51  ;;  %v581_v51 = vld [vmem:[#allocation3 + $0x98] sm:$0xff] }
 0x1e4   :  { %v4396_v53 = vpop.permute.xlu1 %4395  ;;  %v4401_v8 = vpop.permute.xlu0 %4400 }
 0x1e5   :  { %v4398_v24 = vunpack.i.h.bf16 %v4396_v53  ;;  %v4397_v5 = vunpack.i.l.bf16 %v4396_v53  ;;  %v4403_v6 = vunpack.i.h.bf16 %v4401_v8  ;;  %v4402_v7 = vunpack.i.l.bf16 %v4401_v8 }
 0x1e7   :  { %v782_v61 = vsel %vm250_vm2, %v766_v57, %v4397_v5  ;;  %v783_v62 = vsel %vm250_vm2, %v767_v58, %v4398_v24  ;;  %v753_v15 = vsel %vm30_vm0, %v5215_v47, %v4403_v6  ;;  %v752_v16 = vsel %vm30_vm0, %v5206_v22, %v4402_v7 }
 0x1e8   :  { %v4406_v63 = vpop.permute.xlu1 %4405  ;;  %v798_v4 = vpack.c.bf16 %v783_v62, %v782_v61  ;;  %v803_v47 = vpack.c.bf16 %v5265_v26, %v5257_v10  ;;  %v5362_v58 = vpack.c.bf16 %v581_v51, %v5275_v2 }
 0x1e9   :  { %v4408_v33 = vunpack.i.h.bf16 %v4406_v63  ;;  %v4407_v39 = vunpack.i.l.bf16 %v4406_v63 }
 0x1ea   :  { %970 = vmatmul.mubr.bf16.gmra.mxu1 %v798_v4 }
 0x1eb   :  { %3835 = vmatprep.mubr.msk.bf16.mxu1 %vm30_vm0, %v801_v28  ;;  %v768_v21 = vsel %vm233_vm1, %v752_v16, %v4407_v39  ;;  %v769_v42 = vsel %vm233_vm1, %v753_v15, %v4408_v33 }
 0x1ec   :  { %v4411_v30 = vpop.permute.xlu0 %4410  ;;  %v4416_v19 = vpop.permute.xlu1 %4415 }
 0x1ed   :  { %v4413_v0 = vunpack.i.h.bf16 %v4411_v30  ;;  %v4412_v9 = vunpack.i.l.bf16 %v4411_v30  ;;  %v4418_v60 = vunpack.i.h.bf16 %v4416_v19  ;;  %v4417_v13 = vunpack.i.l.bf16 %v4416_v19  ;;  %v4601_v19 = vld [vmem:[%s6460_s2 + $0xc8] sm:$0xff]  }
 0x1ef   :  { %v784_v45 = vsel %vm250_vm2, %v768_v21, %v4412_v9  ;;  %v785_v46 = vsel %vm250_vm2, %v769_v42, %v4413_v0  ;;  %v755_v31 = vsel %vm30_vm0, %v5232_v59, %v4418_v60  ;;  %v754_v1 = vsel %vm30_vm0, %v5223_v55, %v4417_v13  ;;  %v4602_v21 = vld [vmem:[%s6460_s2 + $0xc0] sm:$0xff]   ;;  %v4603_v42 = vld [vmem:[%s6460_s2 + $0xb8] sm:$0xff]  }
 0x1f0   :  { %v4421_v23 = vpop.permute.xlu0 %4420  ;;  %v800_v11 = vpack.c.bf16 %v785_v46, %v784_v45  ;;  %v805_v59 = vpack.c.bf16 %v5279_v32, %v5271_v29  ;;  %v4604_v45 = vld [vmem:[%s6460_s2 + $0xb0] sm:$0xff]   ;;  %v4605_v46 = vld [vmem:[%s6460_s2 + $0xa8] sm:$0xff]   ;;  %v5416_v13 = vld [vmem:[%s6462_s4 + $0x1] ss:$0 sm:$0xff] }
 0x1f1   :  { %v4423_v27 = vunpack.i.h.bf16 %v4421_v23  ;;  %v4422_v22 = vunpack.i.l.bf16 %v4421_v23  ;;  %v4606_v23 = vld [vmem:[%s6460_s2 + $0xa0] sm:$0xff]  }
 0x1f2   :  { %978 = vmatmul.mubr.bf16.gmra.mxu1 %v800_v11  ;;  %v5411_v11 = vld [vmem:[%s6461_s3 + $0x1] ss:$0 sm:$0xff] }
 0x1f3   :  { %3836 = vmatprep.mubr.msk.bf16.mxu1 %vm30_vm0, %v803_v47  ;;  %v770_v20 = vsel %vm233_vm1, %v754_v1, %v4422_v22  ;;  %v771_v38 = vsel %vm233_vm1, %v755_v31, %v4423_v27 }
 0x1f4   :  { %v4426_v25 = vpop.permute.xlu1 %4425  ;;  %v4431_v37 = vpop.permute.xlu0 %4430 }
 0x1f5   :  { %v4428_v34 = vunpack.i.h.bf16 %v4426_v25  ;;  %v4427_v36 = vunpack.i.l.bf16 %v4426_v25  ;;  %v4433_v49 = vunpack.i.h.bf16 %v4431_v37  ;;  %v4432_v50 = vunpack.i.l.bf16 %v4431_v37 }
 0x1f7   :  { %v786_v40 = vsel %vm250_vm2, %v770_v20, %v4427_v36  ;;  %v787_v43 = vsel %vm250_vm2, %v771_v38, %v4428_v34  ;;  %v757_v54 = vsel %vm30_vm0, %v5249_v18, %v4433_v49  ;;  %v756_v56 = vsel %vm30_vm0, %v5240_v14, %v4432_v50  ;;  %v4607_v36 = vld [vmem:[%s6460_s2 + $0xe8] sm:$0xff]  }
 0x1f8   :  { %v4436_v44 = vpop.permute.xlu1 %4435  ;;  %v802_v48 = vpack.c.bf16 %v787_v43, %v786_v40 }
 0x1f9   :  { %v4438_v17 = vunpack.i.h.bf16 %v4436_v44  ;;  %v4437_v55 = vunpack.i.l.bf16 %v4436_v44  ;;  %v4608_v44 = vld [vmem:[%s6460_s2 + $0xe0] sm:$0xff]  }
 0x1fa   :  { %986 = vmatmul.mubr.bf16.gmra.mxu1 %v802_v48 }
 0x1fb   :  { %3837 = vmatprep.mubr.msk.bf16.mxu1 %vm30_vm0, %v805_v59  ;;  %v772_v29 = vsel %vm233_vm1, %v756_v56, %v4437_v55  ;;  %v773_v32 = vsel %vm233_vm1, %v757_v54, %v4438_v17 }
 0x1fc   :  { %v4446_v12 = vpop.permute.xlu1 %4445  ;;  %v4441_v53 = vpop.permute.xlu0 %4440 }
 0x1fd   :  { %v4443_v24 = vunpack.i.h.bf16 %v4441_v53  ;;  %v4442_v5 = vunpack.i.l.bf16 %v4441_v53  ;;  %v4448_v8 = vunpack.i.h.bf16 %v4446_v12  ;;  %v4447_v57 = vunpack.i.l.bf16 %v4446_v12 }
 0x1ff   :  { %v788_v61 = vsel %vm250_vm2, %v772_v29, %v4442_v5  ;;  %v789_v62 = vsel %vm250_vm2, %v773_v32, %v4443_v24  ;;  %v759_v33 = vsel %vm30_vm0, %v5265_v26, %v4448_v8  ;;  %v758_v39 = vsel %vm30_vm0, %v5257_v10, %v4447_v57  ;;  %v4599_v26 = vld [vmem:[%s6460_s2 + $0xd8] sm:$0xff]   ;;  %v4600_v10 = vld [vmem:[%s6460_s2 + $0xd0] sm:$0xff]  }
 0x200   :  { %v4456_v63 = vpop.permute.xlu1 %4455  ;;  %v4451_v18 = vpop.permute.xlu0 %4450  ;;  %v804_v4 = vpack.c.bf16 %v789_v62, %v788_v61  ;;  %1442 = vmatpush1.bf16.msra.mxu0 %v4599_v26 }
 0x201   :  { %v4458_v6 = vunpack.i.h.bf16 %v4456_v63  ;;  %v4457_v14 = vunpack.i.l.bf16 %v4456_v63  ;;  %v4453_v7 = vunpack.i.h.bf16 %v4451_v18  ;;  %v4452_v28 = vunpack.i.l.bf16 %v4451_v18  ;;  %1443 = vmatprep.subr.bf16.mxu0 %v4743_v3 }
 0x202   :  { %994 = vmatmul.mubr.bf16.gmra.mxu1 %v804_v4 }
 0x203   :  { %3838 = vmatprep.mubr.msk.bf16.mxu1 %vm30_vm0, %v5362_v58  ;;  %v774_v30 = vsel %vm233_vm1, %v758_v39, %v4452_v28  ;;  %v775_v15 = vsel %vm233_vm1, %v759_v33, %v4453_v7 }
 0x204   :  { %v790_v16 = vsel %vm250_vm2, %v774_v30, %v4457_v14  ;;  %v791_v0 = vsel %vm250_vm2, %v775_v15, %v4458_v6  ;;  %1444 = vmatpush1.bf16.msra.mxu0 %v4600_v10 }
 0x205   :  { %v806_v9 = vpack.c.bf16 %v791_v0, %v790_v16  ;;  %1445 = vmatprep.subr.bf16.mxu0 %v4743_v3 }
 0x208   :  { %1446 = vmatpush1.bf16.msra.mxu0 %v4601_v19 }
 0x209   :  { %1447 = vmatprep.subr.bf16.mxu0 %v4743_v3 }
 0x20a   :  { %1002 = vmatmul.mubr.bf16.gmra.mxu1 %v806_v9 }
 0x20c   :  { %1448 = vmatpush1.bf16.msra.mxu0 %v4602_v21 }
 0x20d   :  { %1449 = vmatprep.subr.bf16.mxu0 %v4743_v3 }
 0x210   :  { %1450 = vmatpush1.bf16.msra.mxu0 %v4603_v42 }
 0x211   :  { %1451 = vmatprep.subr.bf16.mxu0 %v4743_v3 }
 0x214   :  { %1452 = vmatpush1.bf16.msra.mxu0 %v4604_v45 }
 0x215   :  { %1453 = vmatprep.subr.bf16.mxu0 %v4743_v3 }
 0x218   :  { %1454 = vmatpush1.bf16.msra.mxu0 %v4605_v46 }
 0x219   :  { %1455 = vmatprep.subr.bf16.mxu0 %v4743_v3 }
 0x21c   :  { %1456 = vmatpush1.bf16.msra.mxu0 %v4606_v23 }
 0x21d   :  { %1469 = vmatprep.subr.bf16.mxu0 %v4743_v3 }
 0x220   :  { %1470 = vmatpush2.bf16.msra.mxu0 %v4607_v36 }
 0x221   :  { %1471 = vmatprep.subr.bf16.mxu0 %v4743_v3 }
 0x224   :  { %1472 = vmatpush2.bf16.msra.mxu0 %v4608_v44 }
 0x225   :  { %4081 = vmatprep.subr.mxu0 %v4747_v35 }
 0x292   :  { %v947_v60 = vpop.f32.mrf.mxu1 }
 0x293   :  { %v1018_v47 = vmul.f32 %v5411_v11, %v947_v60 }
 0x294   :  { %v949_v27 = vpop.f32.mrf.mxu1 }
 0x295   :  { %v1042_v22 = vadd.f32 %v5416_v13, %v1018_v47 }
 0x296   :  { %v950_v25 = vpop.f32.mrf.mxu1 }
 0x297   :  { %v1058_v31 = vmax.f32 %v1042_v22, 0.0  ;;  %v1019_v1 = vmul.f32 %v5411_v11, %v950_v25 }
 0x298   :  { %v952_v34 = vpop.f32.mrf.mxu1 }
 0x299   :  { %1074 = vst.msk [vmem:[#allocation3 + $0x10] sm:$0xff] %vm30_vm0, %v1058_v31  ;;  %v1043_v37 = vadd.f32 %v5416_v13, %v1019_v1 }
 0x29a   :  { %v955_v20 = vpop.f32.mrf.mxu1 }
 0x29b   :  { %v1059_v38 = vmax.f32 %v1043_v37, 0.0  ;;  %v1020_v40 = vmul.f32 %v5411_v11, %v955_v20 }
 0x29c   :  { %v957_v43 = vpop.f32.mrf.mxu1 }
 0x29d   :  { %1075 = vst.msk [vmem:[#allocation3 + $0x18] sm:$0xff] %vm30_vm0, %v1059_v38  ;;  %v1044_v48 = vadd.f32 %v5416_v13, %v1020_v40 }
 0x29e   :  { %v958_v49 = vpop.f32.mrf.mxu1 }
 0x29f   :  { %v1060_v50 = vmax.f32 %v1044_v48, 0.0  ;;  %v1021_v59 = vmul.f32 %v5411_v11, %v958_v49 }
 0x2a0   :  { %v960_v17 = vpop.f32.mrf.mxu1  ;;  %v5435_v55 = vld [vmem:[#allocation3 + $0x10] sm:$0xff] }
 0x2a1   :  { %1076 = vst.msk [vmem:[#allocation3 + $0x20] sm:$0xff] %vm30_vm0, %v1060_v50  ;;  %v1045_v3 = vadd.f32 %v5416_v13, %v1021_v59  ;;  %v4459_v51 = vpack.i.bf16 %v5435_v55, %v5147_v52 }
 0x2a2   :  { %v963_v12 = vpop.f32.mrf.mxu1 }
 0x2a3   :  { %v1061_v53 = vmax.f32 %v1045_v3, 0.0  ;;  %v1022_v54 = vmul.f32 %v5411_v11, %v963_v12  ;;  %4460 = vrot.lane.b32.xlu0 %v4459_v51, %s4744_s13 }
 0x2a4   :  { %v965_v56 = vpop.f32.mrf.mxu1  ;;  %v5443_v24 = vld [vmem:[#allocation3 + $0x18] sm:$0xff] }
 0x2a5   :  { %1077 = vst.msk [vmem:[#allocation3 + $0x28] sm:$0xff] %vm30_vm0, %v1061_v53  ;;  %v1046_v5 = vadd.f32 %v5416_v13, %v1022_v54  ;;  %v4464_v8 = vpack.i.bf16 %v5443_v24, %v5435_v55 }
 0x2a6   :  { %v966_v57 = vpop.f32.mrf.mxu1 }
 0x2a7   :  { %v1062_v29 = vmax.f32 %v1046_v5, 0.0  ;;  %v1023_v32 = vmul.f32 %v5411_v11, %v966_v57  ;;  %4465 = vrot.lane.b32.xlu1 %v4464_v8, %s4746_s23 }
 0x2a8   :  { %v968_v61 = vpop.f32.mrf.mxu1  ;;  %v5451_v62 = vld [vmem:[#allocation3 + $0x20] sm:$0xff] }
 0x2a9   :  { %1078 = vst.msk [vmem:[#allocation3 + $0x30] sm:$0xff] %vm30_vm0, %v1062_v29  ;;  %v1047_v63 = vadd.f32 %v5416_v13, %v1023_v32  ;;  %v4474_v18 = vpack.i.bf16 %v5451_v62, %v5443_v24 }
 0x2aa   :  { %v971_v4 = vpop.f32.mrf.mxu1 }
 0x2ab   :  { %v1063_v6 = vmax.f32 %v1047_v63, 0.0  ;;  %v1024_v14 = vmul.f32 %v5411_v11, %v971_v4  ;;  %4475 = vrot.lane.b32.xlu1 %v4474_v18, %s4744_s13  ;;  %4470 = vrot.lane.b32.xlu0 %v4474_v18, %s4745_s14 }
 0x2ac   :  { %v973_v7 = vpop.f32.mrf.mxu1  ;;  %v5460_v28 = vld [vmem:[#allocation3 + $0x28] sm:$0xff] }
 0x2ad   :  { %1079 = vst.msk [vmem:[#allocation3 + $0x38] sm:$0xff] %vm30_vm0, %v1063_v6  ;;  %v1048_v33 = vadd.f32 %v5416_v13, %v1024_v14  ;;  %v1321_v39 = vpack.c.bf16 %v5460_v28, %v5451_v62  ;;  %v4479_v30 = vpack.i.bf16 %v5460_v28, %v5451_v62 }
 0x2ae   :  { %v974_v15 = vpop.f32.mrf.mxu1 }
 0x2af   :  { %v1064_v16 = vmax.f32 %v1048_v33, 0.0  ;;  %v1025_v0 = vmul.f32 %v5411_v11, %v974_v15  ;;  %3873 = vmatprep.mubr.msk.bf16.mxu0 %vm30_vm0, %v1321_v39  ;;  %4480 = vrot.lane.b32.xlu0 %v4479_v30, %s4746_s23 }
 0x2b0   :  { %v976_v9 = vpop.f32.mrf.mxu1  ;;  %v5471_v26 = vld [vmem:[#allocation3 + $0x30] sm:$0xff] }
 0x2b1   :  { %1080 = vst.msk [vmem:[#allocation3 + $0x40] sm:$0xff] %vm30_vm0, %v1064_v16  ;;  %v1049_v10 = vadd.f32 %v5416_v13, %v1025_v0  ;;  %v4484_v19 = vpack.i.bf16 %v5471_v26, %v5460_v28 }
 0x2b2   :  { %v979_v21 = vpop.f32.mrf.mxu1 }
 0x2b3   :  { %v1065_v42 = vmax.f32 %v1049_v10, 0.0  ;;  %v1026_v45 = vmul.f32 %v5411_v11, %v979_v21  ;;  %4485 = vrot.lane.b32.xlu1 %v4484_v19, %s4745_s14  ;;  %4490 = vrot.lane.b32.xlu0 %v4484_v19, %s4744_s13 }
 0x2b4   :  { %v981_v46 = vpop.f32.mrf.mxu1  ;;  %v5480_v23 = vld [vmem:[#allocation3 + $0x38] sm:$0xff] }
 0x2b5   :  { %1081 = vst.msk [vmem:[#allocation3 + $0x48] sm:$0xff] %vm30_vm0, %v1065_v42  ;;  %v1050_v60 = vadd.f32 %v5416_v13, %v1026_v45  ;;  %v4494_v47 = vpack.i.bf16 %v5480_v23, %v5471_v26 }
 0x2b6   :  { %v982_v27 = vpop.f32.mrf.mxu1 }
 0x2b7   :  { %v1066_v22 = vmax.f32 %v1050_v60, 0.0  ;;  %v1027_v25 = vmul.f32 %v5411_v11, %v982_v27  ;;  %4495 = vrot.lane.b32.xlu1 %v4494_v47, %s4746_s23 }
 0x2b8   :  { %v984_v31 = vpop.f32.mrf.mxu1  ;;  %v5488_v1 = vld [vmem:[#allocation3 + $0x40] sm:$0xff] }
 0x2b9   :  { %1082 = vst.msk [vmem:[#allocation3 + $0x50] sm:$0xff] %vm30_vm0, %v1066_v22  ;;  %v1051_v34 = vadd.f32 %v5416_v13, %v1027_v25  ;;  %v4504_v36 = vpack.i.bf16 %v5488_v1, %v5480_v23 }
 0x2ba   :  { %v987_v37 = vpop.f32.mrf.mxu1 }
 0x2bb   :  { %v1067_v20 = vmax.f32 %v1051_v34, 0.0  ;;  %v1028_v38 = vmul.f32 %v5411_v11, %v987_v37  ;;  %4505 = vrot.lane.b32.xlu1 %v4504_v36, %s4744_s13  ;;  %4500 = vrot.lane.b32.xlu0 %v4504_v36, %s4745_s14  ;;  %v4609_v36 = vld [vmem:[%s6463_s5 + $0x8] sm:$0xff]  }
 0x2bc   :  { %v989_v40 = vpop.f32.mrf.mxu1  ;;  %v5497_v43 = vld [vmem:[#allocation3 + $0x48] sm:$0xff]  ;;  %4017 = vmatprep.subr.bf16.mxu1 %v4609_v36 }
 0x2bd   :  { %1083 = vst.msk [vmem:[#allocation3 + $0x58] sm:$0xff] %vm30_vm0, %v1067_v20  ;;  %v1052_v44 = vadd.f32 %v5416_v13, %v1028_v38  ;;  %v4509_v48 = vpack.i.bf16 %v5497_v43, %v5488_v1  ;;  %4018 = vmatpush3.bf16.msra.mxu1 %v4609_v36 }
 0x2be   :  { %v990_v49 = vpop.f32.mrf.mxu1 }
 0x2bf   :  { %v1068_v50 = vmax.f32 %v1052_v44, 0.0  ;;  %v1029_v59 = vmul.f32 %v5411_v11, %v990_v49  ;;  %4510 = vrot.lane.b32.xlu0 %v4509_v48, %s4746_s23 }
 0x2c0   :  { %v992_v17 = vpop.f32.mrf.mxu1  ;;  %v5505_v3 = vld [vmem:[#allocation3 + $0x50] sm:$0xff] }
 0x2c1   :  { %1084 = vst.msk [vmem:[#allocation3 + $0x60] sm:$0xff] %vm30_vm0, %v1068_v50  ;;  %v1053_v51 = vadd.f32 %v5416_v13, %v1029_v59  ;;  %v4514_v12 = vpack.i.bf16 %v5505_v3, %v5497_v43 }
 0x2c2   :  { %v995_v53 = vpop.f32.mrf.mxu1 }
 0x2c3   :  { %v1069_v54 = vmax.f32 %v1053_v51, 0.0  ;;  %v1030_v56 = vmul.f32 %v5411_v11, %v995_v53  ;;  %4515 = vrot.lane.b32.xlu1 %v4514_v12, %s4745_s14  ;;  %4520 = vrot.lane.b32.xlu0 %v4514_v12, %s4744_s13 }
 0x2c4   :  { %v997_v5 = vpop.f32.mrf.mxu1  ;;  %v5514_v8 = vld [vmem:[#allocation3 + $0x58] sm:$0xff] }
 0x2c5   :  { %1085 = vst.msk [vmem:[#allocation3 + $0x68] sm:$0xff] %vm30_vm0, %v1069_v54  ;;  %v1054_v57 = vadd.f32 %v5416_v13, %v1030_v56  ;;  %v4524_v29 = vpack.i.bf16 %v5514_v8, %v5505_v3 }
 0x2c6   :  { %v998_v32 = vpop.f32.mrf.mxu1 }
 0x2c7   :  { %v1070_v61 = vmax.f32 %v1054_v57, 0.0  ;;  %v1031_v63 = vmul.f32 %v5411_v11, %v998_v32  ;;  %4525 = vrot.lane.b32.xlu1 %v4524_v29, %s4746_s23 }
 0x2c8   :  { %v1000_v18 = vpop.f32.mrf.mxu1  ;;  %v5522_v4 = vld [vmem:[#allocation3 + $0x60] sm:$0xff] }
 0x2c9   :  { %1086 = vst.msk [vmem:[#allocation3 + $0x70] sm:$0xff] %vm30_vm0, %v1070_v61  ;;  %v1055_v6 = vadd.f32 %v5416_v13, %v1031_v63  ;;  %v4534_v14 = vpack.i.bf16 %v5522_v4, %v5514_v8 }
 0x2ca   :  { %v1003_v7 = vpop.f32.mrf.mxu1 }
 0x2cb   :  { %v1071_v33 = vmax.f32 %v1055_v6, 0.0  ;;  %v1032_v39 = vmul.f32 %v5411_v11, %v1003_v7  ;;  %4535 = vrot.lane.b32.xlu1 %v4534_v14, %s4744_s13  ;;  %4530 = vrot.lane.b32.xlu0 %v4534_v14, %s4745_s14 }
 0x2cc   :  { %v1005_v30 = vpop.f32.mrf.mxu1  ;;  %v5531_v15 = vld [vmem:[#allocation3 + $0x68] sm:$0xff] }
 0x2cd   :  { %1087 = vst.msk [vmem:[#allocation3 + $0x78] sm:$0xff] %vm30_vm0, %v1071_v33  ;;  %v1056_v16 = vadd.f32 %v5416_v13, %v1032_v39  ;;  %v4539_v0 = vpack.i.bf16 %v5531_v15, %v5522_v4 }
 0x2ce   :  { %v1006_v9 = vpop.f32.mrf.mxu1 }
 0x2cf   :  { %v1072_v10 = vmax.f32 %v1056_v16, 0.0  ;;  %v1033_v19 = vmul.f32 %v5411_v11, %v1006_v9  ;;  %4540 = vrot.lane.b32.xlu0 %v4539_v0, %s4746_s23 }
 0x2d0   :  { %v1008_v21 = vpop.f32.mrf.mxu1  ;;  %v5539_v42 = vld [vmem:[#allocation3 + $0x70] sm:$0xff] }
 0x2d1   :  { %1088 = vst.msk [vmem:[#allocation3 + $0x80] sm:$0xff] %vm30_vm0, %v1072_v10  ;;  %v1057_v45 = vadd.f32 %v5416_v13, %v1033_v19  ;;  %v4549_v46 = vpack.i.bf16 %v5539_v42, %v5531_v15 }
 0x2d3   :  { %v1073_v60 = vmax.f32 %v1057_v45, 0.0  ;;  %4550 = vrot.lane.b32.xlu0 %v4549_v46, %s4744_s13  ;;  %4545 = vrot.lane.b32.xlu1 %v4549_v46, %s4745_s14 }
 0x2d4   :  { %v5547_v47 = vld [vmem:[#allocation3 + $0x78] sm:$0xff] }
 0x2d5   :  { %1089 = vst.msk [vmem:[#allocation3 + $0x88] sm:$0xff] %vm30_vm0, %v1073_v60  ;;  %v4554_v11 = vpack.i.bf16 %v5547_v47, %v5539_v42 }
 0x2d7   :  { %4555 = vrot.lane.b32.xlu1 %v4554_v11, %s4746_s23 }
 0x2d8   :  { %v5553_v27 = vld [vmem:[#allocation3 + $0x80] sm:$0xff] }
 0x2d9   :  { %v4564_v13 = vpack.i.bf16 %v5553_v27, %v5547_v47 }
 0x2db   :  { %4565 = vrot.lane.b32.xlu1 %v4564_v13, %s4744_s13  ;;  %4560 = vrot.lane.b32.xlu0 %v4564_v13, %s4745_s14 }
 0x2dc   :  { %v5559_v22 = vld [vmem:[#allocation3 + $0x88] sm:$0xff] }
 0x2dd   :  { %v4574_v25 = vpack.i.bf16 %v5275_v2, %v5559_v22  ;;  %v4569_v31 = vpack.i.bf16 %v5559_v22, %v5553_v27  ;;  %v1333_v34 = vpack.c.bf16 %v5559_v22, %v5553_v27 }
 0x2df   :  { %4575 = vrot.lane.b32.xlu1 %v4574_v25, %s4745_s14  ;;  %4570 = vrot.lane.b32.xlu0 %v4569_v31, %s4746_s23 }
 0x315   :  { %v4461_v37 = vpop.permute.xlu0 %4460 }
 0x316   :  { %v4463_v38 = vunpack.i.h.bf16 %v4461_v37  ;;  %v4462_v2 = vunpack.i.l.bf16 %v4461_v37 }
 0x318   :  { %v1273_v49 = vsel %vm30_vm0, %v5147_v52, %v4463_v38  ;;  %v1272_v50 = vsel %vm30_vm0, %v5287_v41, %v4462_v2  ;;  %v1323_v52 = vpack.c.bf16 %v5480_v23, %v5471_v26 }
 0x319   :  { %v4466_v20 = vpop.permute.xlu1 %4465 }
 0x31a   :  { %v4468_v40 = vunpack.i.h.bf16 %v4466_v20  ;;  %v4467_v44 = vunpack.i.l.bf16 %v4466_v20 }
 0x31c   :  { %v1288_v51 = vsel %vm233_vm1, %v1272_v50, %v4467_v44  ;;  %v1289_v12 = vsel %vm233_vm1, %v1273_v49, %v4468_v40 }
 0x31d   :  { %v4471_v48 = vpop.permute.xlu0 %4470  ;;  %v4476_v53 = vpop.permute.xlu1 %4475 }
 0x31e   :  { %v4473_v59 = vunpack.i.h.bf16 %v4471_v48  ;;  %v4472_v17 = vunpack.i.l.bf16 %v4471_v48  ;;  %v4478_v29 = vunpack.i.h.bf16 %v4476_v53  ;;  %v4477_v32 = vunpack.i.l.bf16 %v4476_v53 }
 0x320   :  { %v1304_v54 = vsel %vm250_vm2, %v1288_v51, %v4472_v17  ;;  %v1305_v56 = vsel %vm250_vm2, %v1289_v12, %v4473_v59  ;;  %v1275_v18 = vsel %vm30_vm0, %v5443_v24, %v4478_v29  ;;  %v1274_v6 = vsel %vm30_vm0, %v5435_v55, %v4477_v32 }
 0x321   :  { %v1320_v5 = vpack.c.bf16 %v1305_v56, %v1304_v54  ;;  %v4481_v57 = vpop.permute.xlu0 %4480  ;;  %v1325_v24 = vpack.c.bf16 %v5497_v43, %v5488_v1 }
 0x322   :  { %v4483_v61 = vunpack.i.h.bf16 %v4481_v57  ;;  %v4482_v41 = vunpack.i.l.bf16 %v4481_v57 }
 0x323   :  { %1474 = vmatmul.mubr.bf16.vlgmr.msra.gmra.mxu0 %v1320_v5 }
 0x324   :  { %3874 = vmatprep.mubr.msk.bf16.mxu0 %vm30_vm0, %v1323_v52  ;;  %v1290_v39 = vsel %vm233_vm1, %v1274_v6, %v4482_v41  ;;  %v1291_v30 = vsel %vm233_vm1, %v1275_v18, %v4483_v61 }
 0x325   :  { %v4486_v63 = vpop.permute.xlu1 %4485  ;;  %v4491_v33 = vpop.permute.xlu0 %4490 }
 0x326   :  { %v4488_v14 = vunpack.i.h.bf16 %v4486_v63  ;;  %v4487_v7 = vunpack.i.l.bf16 %v4486_v63  ;;  %v4493_v19 = vunpack.i.h.bf16 %v4491_v33  ;;  %v4492_v21 = vunpack.i.l.bf16 %v4491_v33 }
 0x328   :  { %v1306_v16 = vsel %vm250_vm2, %v1290_v39, %v4487_v7  ;;  %v1307_v0 = vsel %vm250_vm2, %v1291_v30, %v4488_v14  ;;  %v1277_v60 = vsel %vm30_vm0, %v5460_v28, %v4493_v19  ;;  %v1276_v11 = vsel %vm30_vm0, %v5451_v62, %v4492_v21 }
 0x329   :  { %v4496_v9 = vpop.permute.xlu1 %4495  ;;  %v1322_v10 = vpack.c.bf16 %v1307_v0, %v1306_v16  ;;  %v1327_v28 = vpack.c.bf16 %v5514_v8, %v5505_v3 }
 0x32a   :  { %v4498_v45 = vunpack.i.h.bf16 %v4496_v9  ;;  %v4497_v55 = vunpack.i.l.bf16 %v4496_v9 }
 0x32b   :  { %1482 = vmatmul.mubr.bf16.gmra.mxu0 %v1322_v10 }
 0x32c   :  { %3875 = vmatprep.mubr.msk.bf16.mxu0 %vm30_vm0, %v1325_v24  ;;  %v1292_v36 = vsel %vm233_vm1, %v1276_v11, %v4497_v55  ;;  %v1293_v37 = vsel %vm233_vm1, %v1277_v60, %v4498_v45 }
 0x32d   :  { %v4501_v46 = vpop.permute.xlu0 %4500  ;;  %v4506_v31 = vpop.permute.xlu1 %4505 }
 0x32e   :  { %v4503_v13 = vunpack.i.h.bf16 %v4501_v46  ;;  %v4502_v25 = vunpack.i.l.bf16 %v4501_v46  ;;  %v4508_v44 = vunpack.i.h.bf16 %v4506_v31  ;;  %v4507_v48 = vunpack.i.l.bf16 %v4506_v31 }
 0x330   :  { %v1308_v20 = vsel %vm250_vm2, %v1292_v36, %v4502_v25  ;;  %v1309_v38 = vsel %vm250_vm2, %v1293_v37, %v4503_v13  ;;  %v1279_v59 = vsel %vm30_vm0, %v5480_v23, %v4508_v44  ;;  %v1278_v17 = vsel %vm30_vm0, %v5471_v26, %v4507_v48 }
 0x331   :  { %v4511_v2 = vpop.permute.xlu0 %4510  ;;  %v1324_v40 = vpack.c.bf16 %v1309_v38, %v1308_v20  ;;  %v1329_v23 = vpack.c.bf16 %v5531_v15, %v5522_v4 }
 0x332   :  { %v4513_v49 = vunpack.i.h.bf16 %v4511_v2  ;;  %v4512_v62 = vunpack.i.l.bf16 %v4511_v2 }
 0x333   :  { %1490 = vmatmul.mubr.bf16.gmra.mxu0 %v1324_v40 }
 0x334   :  { %3876 = vmatprep.mubr.msk.bf16.mxu0 %vm30_vm0, %v1327_v28  ;;  %v1294_v54 = vsel %vm233_vm1, %v1278_v17, %v4512_v62  ;;  %v1295_v56 = vsel %vm233_vm1, %v1279_v59, %v4513_v49 }
 0x335   :  { %v4516_v50 = vpop.permute.xlu1 %4515  ;;  %v4521_v53 = vpop.permute.xlu0 %4520 }
 0x336   :  { %v4518_v51 = vunpack.i.h.bf16 %v4516_v50  ;;  %v4517_v12 = vunpack.i.l.bf16 %v4516_v50  ;;  %v4523_v52 = vunpack.i.h.bf16 %v4521_v53  ;;  %v4522_v61 = vunpack.i.l.bf16 %v4521_v53 }
 0x338   :  { %v1310_v5 = vsel %vm250_vm2, %v1294_v54, %v4517_v12  ;;  %v1311_v57 = vsel %vm250_vm2, %v1295_v56, %v4518_v51  ;;  %v1281_v18 = vsel %vm30_vm0, %v5497_v43, %v4523_v52  ;;  %v1280_v6 = vsel %vm30_vm0, %v5488_v1, %v4522_v61 }
 0x339   :  { %v4526_v29 = vpop.permute.xlu1 %4525  ;;  %v1326_v32 = vpack.c.bf16 %v1311_v57, %v1310_v5  ;;  %v1331_v43 = vpack.c.bf16 %v5547_v47, %v5539_v42 }
 0x33a   :  { %v4528_v41 = vunpack.i.h.bf16 %v4526_v29  ;;  %v4527_v26 = vunpack.i.l.bf16 %v4526_v29 }
 0x33b   :  { %1498 = vmatmul.mubr.bf16.gmra.mxu0 %v1326_v32 }
 0x33c   :  { %3877 = vmatprep.mubr.msk.bf16.mxu0 %vm30_vm0, %v1329_v23  ;;  %v1296_v39 = vsel %vm233_vm1, %v1280_v6, %v4527_v26  ;;  %v1297_v30 = vsel %vm233_vm1, %v1281_v18, %v4528_v41  ;;  %v5678_v26 = vld [vmem:[%s6464_s6 + $0x8] sm:$0xff]  ;;  %v5694_v18 = vld [vmem:[%s6461_s3 + $0x2] ss:$0 sm:$0xff] }
 0x33d   :  { %v4531_v63 = vpop.permute.xlu0 %4530  ;;  %v4536_v33 = vpop.permute.xlu1 %4535 }
 0x33e   :  { %v4533_v14 = vunpack.i.h.bf16 %v4531_v63  ;;  %v4532_v7 = vunpack.i.l.bf16 %v4531_v63  ;;  %v4538_v19 = vunpack.i.h.bf16 %v4536_v33  ;;  %v4537_v21 = vunpack.i.l.bf16 %v4536_v33  ;;  %v5684_v63 = vld [vmem:[%s6464_s6] sm:$0xff] }
 0x340   :  { %v1312_v16 = vsel %vm250_vm2, %v1296_v39, %v4532_v7  ;;  %v1313_v0 = vsel %vm250_vm2, %v1297_v30, %v4533_v14  ;;  %v1283_v55 = vsel %vm30_vm0, %v5514_v8, %v4538_v19  ;;  %v1282_v46 = vsel %vm30_vm0, %v5505_v3, %v4537_v21  ;;  %v5700_v7 = vld [vmem:[%s6462_s4 + $0x2] ss:$0 sm:$0xff] }
 0x341   :  { %v4541_v9 = vpop.permute.xlu0 %4540  ;;  %v1328_v10 = vpack.c.bf16 %v1313_v0, %v1312_v16 }
 0x342   :  { %v4543_v24 = vunpack.i.h.bf16 %v4541_v9  ;;  %v4542_v1 = vunpack.i.l.bf16 %v4541_v9 }
 0x343   :  { %1506 = vmatmul.mubr.bf16.gmra.mxu0 %v1328_v10 }
 0x344   :  { %3878 = vmatprep.mubr.msk.bf16.mxu0 %vm30_vm0, %v1331_v43  ;;  %v1298_v25 = vsel %vm233_vm1, %v1282_v46, %v4542_v1  ;;  %v1299_v31 = vsel %vm233_vm1, %v1283_v55, %v4543_v24 }
 0x345   :  { %v4546_v45 = vpop.permute.xlu1 %4545  ;;  %v4551_v13 = vpop.permute.xlu0 %4550 }
 0x346   :  { %v4548_v60 = vunpack.i.h.bf16 %v4546_v45  ;;  %v4547_v11 = vunpack.i.l.bf16 %v4546_v45  ;;  %v4553_v2 = vunpack.i.h.bf16 %v4551_v13  ;;  %v4552_v40 = vunpack.i.l.bf16 %v4551_v13 }
 0x348   :  { %v1314_v36 = vsel %vm250_vm2, %v1298_v25, %v4547_v11  ;;  %v1315_v37 = vsel %vm250_vm2, %v1299_v31, %v4548_v60  ;;  %v1285_v28 = vsel %vm30_vm0, %v5531_v15, %v4553_v2  ;;  %v1284_v49 = vsel %vm30_vm0, %v5522_v4, %v4552_v40 }
 0x349   :  { %v4556_v20 = vpop.permute.xlu1 %4555  ;;  %v1330_v38 = vpack.c.bf16 %v1315_v37, %v1314_v36 }
 0x34a   :  { %v4558_v44 = vunpack.i.h.bf16 %v4556_v20  ;;  %v4557_v8 = vunpack.i.l.bf16 %v4556_v20 }
 0x34b   :  { %1514 = vmatmul.mubr.bf16.gmra.mxu0 %v1330_v38 }
 0x34c   :  { %3879 = vmatprep.mubr.msk.bf16.mxu0 %vm30_vm0, %v1333_v34  ;;  %v1300_v51 = vsel %vm233_vm1, %v1284_v49, %v4557_v8  ;;  %v1301_v12 = vsel %vm233_vm1, %v1285_v28, %v4558_v44 }
 0x34d   :  { %v4566_v3 = vpop.permute.xlu1 %4565  ;;  %v4561_v48 = vpop.permute.xlu0 %4560 }
 0x34e   :  { %v4563_v62 = vunpack.i.h.bf16 %v4561_v48  ;;  %v4562_v50 = vunpack.i.l.bf16 %v4561_v48  ;;  %v4568_v59 = vunpack.i.h.bf16 %v4566_v3  ;;  %v4567_v17 = vunpack.i.l.bf16 %v4566_v3 }
 0x350   :  { %v1316_v27 = vsel %vm250_vm2, %v1300_v51, %v4562_v50  ;;  %v1317_v22 = vsel %vm250_vm2, %v1301_v12, %v4563_v62  ;;  %v1287_v4 = vsel %vm30_vm0, %v5547_v47, %v4568_v59  ;;  %v1286_v29 = vsel %vm30_vm0, %v5539_v42, %v4567_v17  ;;  %v4610_v47 = vld [vmem:[%s6463_s5] sm:$0xff]   ;;  %v5664_v42 = vld [vmem:[%s6464_s6 + $0x18] sm:$0xff] }
 0x351   :  { %v4576_v34 = vpop.permute.xlu1 %4575  ;;  %v4571_v53 = vpop.permute.xlu0 %4570  ;;  %v1332_v54 = vpack.c.bf16 %v1317_v22, %v1316_v27  ;;  %4019 = vmatprep.subr.bf16.mxu1 %v4610_v47  ;;  %4082 = vmatpush3.msra.mxu0 %v5664_v42 }
 0x352   :  { %v4578_v56 = vunpack.i.h.bf16 %v4576_v34  ;;  %v4577_v15 = vunpack.i.l.bf16 %v4576_v34  ;;  %v4573_v5 = vunpack.i.h.bf16 %v4571_v53  ;;  %v4572_v57 = vunpack.i.l.bf16 %v4571_v53  ;;  %4020 = vmatpush3.bf16.msra.mxu1 %v4610_v47  ;;  %4083 = vmatprep.subr.mxu0 %v4747_v35 }
 0x353   :  { %1522 = vmatmul.mubr.bf16.gmra.mxu0 %v1332_v54  ;;  %4037 = vmatprep.subr.mxu1 %v4747_v35 }
 0x354   :  { %v1303_v32 = vsel %vm233_vm1, %v1287_v4, %v4573_v5  ;;  %v1302_v52 = vsel %vm233_vm1, %v1286_v29, %v4572_v57  ;;  %3880 = vmatprep.mubr.msk.bf16.mxu0 %vm30_vm0, %v5362_v58  ;;  %v5671_v58 = vld [vmem:[%s6464_s6 + $0x10] sm:$0xff] }
 0x355   :  { %v1318_v61 = vsel %vm250_vm2, %v1302_v52, %v4577_v15  ;;  %v1319_v23 = vsel %vm250_vm2, %v1303_v32, %v4578_v56  ;;  %4084 = vmatpush3.msra.mxu0 %v5671_v58 }
 0x356   :  { %v1334_v41 = vpack.c.bf16 %v1319_v23, %v1318_v61  ;;  %4085 = vmatprep.subr.mxu0 %v4747_v35 }
 0x357   :  { %4086 = vmatpush3.msra.mxu0 %v5678_v26 }
 0x358   :  { %4087 = vmatprep.subr.mxu0 %v4747_v35 }
 0x359   :  { %4088 = vmatpush3.msra.mxu0 %v5684_v63 }
 0x35a   :  { %4103 = vmatprep.subr.mxu0 %v4747_v35 }
 0x35b   :  { %1530 = vmatmul.mubr.bf16.gmra.mxu0 %v1334_v41 }
 0x35c   :  { %4089 = vmatprep.mubr.msk.f32.mxu0 %vm4748_vm3, %v4747_v35 }
 0x3e3   :  { %v1475_v6 = vpop.f32.mrf.mxu0 }
 0x3e4   :  { %v1546_v14 = vmul.f32 %v5694_v18, %v1475_v6 }
 0x3e5   :  { %v1477_v33 = vpop.f32.mrf.mxu0 }
 0x3e6   :  { %v1570_v30 = vadd.f32 %v5700_v7, %v1546_v14 }
 0x3e7   :  { %v1478_v39 = vpop.f32.mrf.mxu0 }
 0x3e8   :  { %v1547_v16 = vmul.f32 %v5694_v18, %v1478_v39  ;;  %v1586_v19 = vmax.f32 %v1570_v30, 0.0 }
 0x3e9   :  { %v1480_v0 = vpop.f32.mrf.mxu0 }
 0x3ea   :  { %v1571_v9 = vadd.f32 %v5700_v7, %v1547_v16 }
 0x3eb   :  { %v1483_v10 = vpop.f32.mrf.mxu0 }
 0x3ec   :  { %v1587_v21 = vmax.f32 %v1571_v9, 0.0  ;;  %v1548_v43 = vmul.f32 %v5694_v18, %v1483_v10 }
 0x3ed   :  { %v1485_v24 = vpop.f32.mrf.mxu0 }
 0x3ee   :  { %v1602_v1 = vpack.c.bf16 %v1587_v21, %v1586_v19  ;;  %v1572_v55 = vadd.f32 %v5700_v7, %v1548_v43 }
 0x3ef   :  { %v1486_v45 = vpop.f32.mrf.mxu0 }
 0x3f0   :  { %v1549_v46 = vmul.f32 %v5694_v18, %v1486_v45  ;;  %4021 = vmatprep.mubr.msk.bf16.mxu1 %vm30_vm0, %v1602_v1  ;;  %v1588_v25 = vmax.f32 %v1572_v55, 0.0 }
 0x3f1   :  { %v1488_v60 = vpop.f32.mrf.mxu0 }
 0x3f2   :  { %v1573_v11 = vadd.f32 %v5700_v7, %v1549_v46 }
 0x3f3   :  { %v1491_v13 = vpop.f32.mrf.mxu0 }
 0x3f4   :  { %v1589_v31 = vmax.f32 %v1573_v11, 0.0  ;;  %v1550_v36 = vmul.f32 %v5694_v18, %v1491_v13 }
 0x3f5   :  { %v1493_v37 = vpop.f32.mrf.mxu0 }
 0x3f6   :  { %v1603_v20 = vpack.c.bf16 %v1589_v31, %v1588_v25  ;;  %v1574_v2 = vadd.f32 %v5700_v7, %v1550_v36 }
 0x3f7   :  { %v1494_v38 = vpop.f32.mrf.mxu0 }
 0x3f8   :  { %v1551_v40 = vmul.f32 %v5694_v18, %v1494_v38  ;;  %4022 = vmatmul.mubr.msk.bf16.vlgmr.msra.gmra.mxu1 %vm30_vm0, %v1603_v20  ;;  %v1590_v48 = vmax.f32 %v1574_v2, 0.0 }
 0x3f9   :  { %v1496_v44 = vpop.f32.mrf.mxu0  ;;  %4038 = vmatpush3.msra.mxu1 %v5664_v42 }
 0x3fa   :  { %v1575_v8 = vadd.f32 %v5700_v7, %v1551_v40  ;;  %4039 = vmatprep.subr.mxu1 %v4747_v35 }
 0x3fb   :  { %v1499_v3 = vpop.f32.mrf.mxu0  ;;  %4040 = vmatpush3.msra.mxu1 %v5671_v58 }
 0x3fc   :  { %v1591_v28 = vmax.f32 %v1575_v8, 0.0  ;;  %v1552_v49 = vmul.f32 %v5694_v18, %v1499_v3  ;;  %4041 = vmatprep.subr.mxu1 %v4747_v35 }
 0x3fd   :  { %v1501_v62 = vpop.f32.mrf.mxu0  ;;  %4042 = vmatpush3.msra.mxu1 %v5678_v26 }
 0x3fe   :  { %v1604_v50 = vpack.c.bf16 %v1591_v28, %v1590_v48  ;;  %4043 = vmatprep.subr.mxu1 %v4747_v35  ;;  %v1576_v17 = vadd.f32 %v5700_v7, %v1552_v49 }
 0x3ff   :  { %v1502_v59 = vpop.f32.mrf.mxu0  ;;  %4044 = vmatpush3.msra.mxu1 %v5684_v63 }
 0x400   :  { %v1553_v51 = vmul.f32 %v5694_v18, %v1502_v59  ;;  %4025 = vmatprep.mubr.msk.bf16.mxu1 %vm30_vm0, %v1604_v50  ;;  %4048 = vmatprep.subr.mxu1 %v4747_v35  ;;  %v1592_v34 = vmax.f32 %v1576_v17, 0.0 }
 0x401   :  { %v1504_v12 = vpop.f32.mrf.mxu0 }
 0x402   :  { %v1577_v27 = vadd.f32 %v5700_v7, %v1553_v51 }
 0x403   :  { %v1507_v22 = vpop.f32.mrf.mxu0 }
 0x404   :  { %v1593_v53 = vmax.f32 %v1577_v27, 0.0  ;;  %v1554_v54 = vmul.f32 %v5694_v18, %v1507_v22 }
 0x405   :  { %v1509_v56 = vpop.f32.mrf.mxu0 }
 0x406   :  { %v1605_v15 = vpack.c.bf16 %v1593_v53, %v1592_v34  ;;  %v1578_v57 = vadd.f32 %v5700_v7, %v1554_v54  ;;  %v1774_v34 = vlaneseq }
 0x407   :  { %v1510_v5 = vpop.f32.mrf.mxu0 }
 0x408   :  { %v1555_v4 = vmul.f32 %v5694_v18, %v1510_v5  ;;  %4026 = vmatmul.mubr.msk.bf16.gmra.mxu1 %vm30_vm0, %v1605_v15  ;;  %v1594_v61 = vmax.f32 %v1578_v57, 0.0  ;;  %v5779_v15 = vand.u32 127, %v1774_v34  ;;  %v1891_v34 = vld [vmem:[%s6466_s1] sm:$0xff] }
 0x409   :  { %v1512_v29 = vpop.f32.mrf.mxu0 }
 0x40a   :  { %v1579_v32 = vadd.f32 %v5700_v7, %v1555_v4  ;;  %v1780_v5 = vand.u32 31, %v5779_v15  ;;  %vm1789_vm5 = vcmp.lt.s32.totalorder %v5779_v15, 16 }
 0x40b   :  { %v1515_v52 = vpop.f32.mrf.mxu0 }
 0x40c   :  { %v1595_v23 = vmax.f32 %v1579_v32, 0.0  ;;  %v1556_v41 = vmul.f32 %v5694_v18, %v1515_v52  ;;  %vm5782_vm4 = vcmp.lt.s32.totalorder %v1780_v5, 16 }
 0x40d   :  { %v1517_v47 = vpop.f32.mrf.mxu0 }
 0x40e   :  { %v1606_v6 = vpack.c.bf16 %v1595_v23, %v1594_v61  ;;  %v1580_v33 = vadd.f32 %v5700_v7, %v1556_v41 }
 0x40f   :  { %v1518_v14 = vpop.f32.mrf.mxu0 }
 0x410   :  { %v1557_v39 = vmul.f32 %v5694_v18, %v1518_v14  ;;  %4029 = vmatprep.mubr.msk.bf16.mxu1 %vm30_vm0, %v1606_v6  ;;  %v1596_v9 = vmax.f32 %v1580_v33, 0.0 }
 0x411   :  { %v1520_v30 = vpop.f32.mrf.mxu0 }
 0x412   :  { %v1581_v16 = vadd.f32 %v5700_v7, %v1557_v39 }
 0x413   :  { %v1523_v0 = vpop.f32.mrf.mxu0 }
 0x414   :  { %v1597_v10 = vmax.f32 %v1581_v16, 0.0  ;;  %v1558_v19 = vmul.f32 %v5694_v18, %v1523_v0 }
 0x415   :  { %v1525_v21 = vpop.f32.mrf.mxu0 }
 0x416   :  { %v1607_v43 = vpack.c.bf16 %v1597_v10, %v1596_v9  ;;  %v1582_v1 = vadd.f32 %v5700_v7, %v1558_v19 }
 0x417   :  { %v1526_v24 = vpop.f32.mrf.mxu0 }
 0x418   :  { %v1559_v45 = vmul.f32 %v5694_v18, %v1526_v24  ;;  %4030 = vmatmul.mubr.msk.bf16.gmra.mxu1 %vm30_vm0, %v1607_v43  ;;  %v1598_v11 = vmax.f32 %v1582_v1, 0.0 }
 0x419   :  { %v1528_v55 = vpop.f32.mrf.mxu0 }
 0x41a   :  { %v1583_v46 = vadd.f32 %v5700_v7, %v1559_v45 }
 0x41b   :  { %v1531_v60 = vpop.f32.mrf.mxu0 }
 0x41c   :  { %v1599_v13 = vmax.f32 %v1583_v46, 0.0  ;;  %v1560_v25 = vmul.f32 %v5694_v18, %v1531_v60 }
 0x41d   :  { %v1533_v31 = vpop.f32.mrf.mxu0 }
 0x41e   :  { %v1608_v36 = vpack.c.bf16 %v1599_v13, %v1598_v11  ;;  %v1584_v20 = vadd.f32 %v5700_v7, %v1560_v25 }
 0x41f   :  { %v1534_v37 = vpop.f32.mrf.mxu0 }
 0x420   :  { %v1561_v38 = vmul.f32 %v5694_v18, %v1534_v37  ;;  %4033 = vmatprep.mubr.msk.bf16.mxu1 %vm30_vm0, %v1608_v36  ;;  %v1600_v44 = vmax.f32 %v1584_v20, 0.0  ;;  %v3885_v18 = vld [vmem:[%s6465_s7] ss:$0 sm:$0xff] }
 0x421   :  { %v1536_v2 = vpop.f32.mrf.mxu0 }
 0x422   :  { %v1585_v40 = vadd.f32 %v5700_v7, %v1561_v38 }
 0x424   :  { %v1601_v8 = vmax.f32 %v1585_v40, 0.0 }
 0x426   :  { %v1609_v3 = vpack.c.bf16 %v1601_v8, %v1600_v44 }
 0x428   :  { %4034 = vmatmul.mubr.msk.bf16.gmra.mxu1 %vm30_vm0, %v1609_v3 }
 0x429   :  { %4045 = vmatprep.mubr.msk.f32.mxu1 %vm4748_vm3, %v4747_v35 }
 0x430   :  { %4046 = vmatmul.mubr.f32.vlgmr.msra.gmra.mxu1 %v4747_v35 }
 0x431   :  { %4049 = vmatpush3.msra.mxu1 %v5664_v42  ;;  %4056 = vmatprep.mubr.msk.f32.mxu1 %vm4748_vm3, %v4747_v35 }
 0x432   :  { %4050 = vmatprep.subr.mxu1 %v4747_v35 }
 0x433   :  { %4051 = vmatpush3.msra.mxu1 %v5671_v58 }
 0x434   :  { %4052 = vmatprep.subr.mxu1 %v4747_v35 }
 0x435   :  { %4053 = vmatpush3.msra.mxu1 %v5678_v26 }
 0x436   :  { %4054 = vmatprep.subr.mxu1 %v4747_v35 }
 0x437   :  { %4055 = vmatpush3.msra.mxu1 %v5684_v63 }
 0x438   :  { %4059 = vmatprep.subr.mxu1 %v4747_v35 }
 0x4b8   :  { %v4023_v7 = vpop.f32.mrf.mxu1 }
 0x4b9   :  { %v5765_v48 = vadd.f32 %v4023_v7, %v3885_v18 }
 0x4ba   :  { %v1691_v28 = vpop.f32.mrf.mxu1 }
 0x4bb   :  { %v5838_v55 = vadd.f32 %v3885_v18, %v1691_v28 }
 0x4bc   :  { %v4024_v49 = vpop.f32.mrf.mxu1 }
 0x4bd   :  { %v5767_v62 = vadd.f32 %v4024_v49, %v3885_v18 }
 0x4be   :  { %v1694_v50 = vpop.f32.mrf.mxu1 }
 0x4bf   :  { %v5769_v59 = vadd.f32 %v3885_v18, %v1694_v50 }
 0x4c8   :  { %v4027_v17 = vpop.f32.mrf.mxu1 }
 0x4c9   :  { %v5771_v51 = vadd.f32 %v4027_v17, %v3885_v18 }
 0x4ca   :  { %v1707_v12 = vpop.f32.mrf.mxu1 }
 0x4cb   :  { %v5773_v27 = vadd.f32 %v3885_v18, %v1707_v12 }
 0x4cc   :  { %v4028_v22 = vpop.f32.mrf.mxu1 }
 0x4cd   :  { %v5775_v53 = vadd.f32 %v4028_v22, %v3885_v18 }
 0x4ce   :  { %v1710_v54 = vpop.f32.mrf.mxu1 }
 0x4cf   :  { %v5777_v56 = vadd.f32 %v3885_v18, %v1710_v54  ;;  %v1892_v54 = vld [vmem:[%s6466_s1 + $0x78] sm:$0xff] }
 0x4d0   :  { %v1893_v5 = vsel %vm1789_vm5, %v1891_v34, %v1892_v54  ;;  %v2017_v54 = vld [vmem:[%s6466_s1 + $0x8] sm:$0xff] }
 0x4d8   :  { %v4031_v57 = vpop.f32.mrf.mxu1 }
 0x4d9   :  { %v5786_v29 = vadd.f32 %v4031_v57, %v3885_v18  ;;  %v1899_v57 = vsub.f32 1.0, %v1893_v5 }
 0x4da   :  { %v1723_v32 = vpop.f32.mrf.mxu1 }
 0x4db   :  { %v5788_v52 = vadd.f32 %v3885_v18, %v1723_v32  ;;  %v2414_v61 = vsel %vm5782_vm4, %v5777_v56, %v5786_v29  ;;  %v3039_v23 = vsel %vm5782_vm4, %v5786_v29, %v5777_v56 }
 0x4dc   :  { %v4032_v41 = vpop.f32.mrf.mxu1 }
 0x4dd   :  { %v5798_v47 = vadd.f32 %v4032_v41, %v3885_v18  ;;  %v2664_v6 = vsel %vm5782_vm4, %v5775_v53, %v5788_v52  ;;  %v2789_v14 = vsel %vm5782_vm4, %v5788_v52, %v5775_v53 }
 0x4de   :  { %v1726_v33 = vpop.f32.mrf.mxu1 }
 0x4df   :  { %v5808_v39 = vadd.f32 %v3885_v18, %v1726_v33  ;;  %v2289_v30 = vsel %vm5782_vm4, %v5773_v27, %v5798_v47  ;;  %v3164_v16 = vsel %vm5782_vm4, %v5798_v47, %v5773_v27  ;;  %v1900_v33 = vmul.f32 0.0, %v1899_v57 }
 0x4e1   :  { %v2539_v0 = vsel %vm5782_vm4, %v5771_v51, %v5808_v39  ;;  %v2914_v9 = vsel %vm5782_vm4, %v5808_v39, %v5771_v51 }
 0x4e8   :  { %v4035_v10 = vpop.f32.mrf.mxu1 }
 0x4e9   :  { %v5826_v19 = vadd.f32 %v4035_v10, %v3885_v18 }
 0x4ea   :  { %v1739_v21 = vpop.f32.mrf.mxu1 }
 0x4eb   :  { %v5828_v43 = vadd.f32 %v3885_v18, %v1739_v21  ;;  %v1914_v24 = vsel %vm5782_vm4, %v5769_v59, %v5826_v19  ;;  %v3539_v1 = vsel %vm5782_vm4, %v5826_v19, %v5769_v59 }
 0x4ec   :  { %v4036_v45 = vpop.f32.mrf.mxu1 }
 0x4ed   :  { %v5840_v46 = vadd.f32 %v4036_v45, %v3885_v18  ;;  %v2164_v60 = vsel %vm5782_vm4, %v5767_v62, %v5828_v43  ;;  %v3289_v11 = vsel %vm5782_vm4, %v5828_v43, %v5767_v62 }
 0x4ee   :  { %v1742_v13 = vpop.f32.mrf.mxu1 }
 0x4ef   :  { %v5850_v25 = vadd.f32 %v3885_v18, %v1742_v13  ;;  %v1792_v31 = vsel %vm5782_vm4, %v5838_v55, %v5840_v46  ;;  %v3664_v36 = vsel %vm5782_vm4, %v5840_v46, %v5838_v55 }
 0x4f0   :  { %v1862_v37 = vpop.f32.mrf.mxu1 }
 0x4f1   :  { %v1866_v20 = vadd.f32 %v1862_v37, %v1792_v31  ;;  %v2039_v38 = vsel %vm5782_vm4, %v5765_v48, %v5850_v25  ;;  %v3414_v2 = vsel %vm5782_vm4, %v5850_v25, %v5765_v48 }
 0x4f2   :  { %v4047_v40 = vpop.f32.mrf.mxu1 }
 0x4f3   :  { %4611 = vtanh.f32 %v1866_v20  ;;  %v3896_v8 = vmul.f32 -1.442695, %v1866_v20 }
 0x4f5   :  { %4613 = vpow2.f32 %v3896_v8 }
 0x500   :  { %v4612_v44 = vpop.eup %4611 }
 0x501   :  { %1876 = vrot.lane.b32.xlu0 %v4612_v44, %s4746_s23 }
 0x502   :  { %v4614_v3 = vpop.eup %4613 }
 0x503   :  { %v1870_v18 = vadd.f32 1.0, %v4614_v3 }
 0x505   :  { %4615 = vrcp.f32 %v1870_v18 }
 0x512   :  { %v4616_v7 = vpop.eup %4615 }
 0x513   :  { %v1874_v50 = vmul.f32 0.0, %v4616_v7 }
 0x573   :  { %v1877_v28 = vpop.permute.xlu0 %1876 }
 0x574   :  { %v1879_v49 = vmul.f32 %v4616_v7, %v1877_v28 }
 0x576   :  { %1881 = vrot.lane.b32.xlu1 %v1879_v49, %s4744_s13 }
 0x5e8   :  { %v1882_v17 = vpop.permute.xlu1 %1881 }
 0x5e9   :  { %v1884_v12 = vadd.f32 %v1882_v17, %v1874_v50 }
 0x5eb   :  { %4617 = vtanh.f32 %v1884_v12 }
 0x5f8   :  { %v4618_v22 = vpop.eup %4617 }
 0x5f9   :  { %1887 = vrot.lane.b32.xlu0 %v4618_v22, %s4746_s23 }
 0x5fd   :  { %1903 = vrot.lane.b32.xlu0 %v1884_v12, %s4745_s14 }
 0x66b   :  { %v1888_v32 = vpop.permute.xlu0 %1887 }
 0x66c   :  { %v1890_v41 = vmul.f32 %v4616_v7, %v1888_v32 }
 0x66e   :  { %1895 = vrot.lane.b32.xlu1 %v1890_v41, %s4744_s13 }
 0x66f   :  { %v1904_v10 = vpop.permute.xlu0 %1903 }
 0x670   :  { %v1906_v21 = vmul.f32 %v1904_v10, %v1893_v5 }
 0x672   :  { %v1907_v45 = vadd.f32 %v1906_v21, %v1900_v33 }
 0x674   :  { %1997 = vrot.lane.b32.xlu0 %v1907_v45, %s4744_s13 }
 0x6e0   :  { %v1896_v13 = vpop.permute.xlu1 %1895 }
 0x6e1   :  { %v1898_v31 = vmul.f32 %v1896_v13, %v1893_v5  ;;  %v2018_v5 = vld [vmem:[%s6466_s1 + $0x70] sm:$0xff] }
 0x6e2   :  { %v2019_v57 = vsel %vm1789_vm5, %v2017_v54, %v2018_v5  ;;  %v2142_v5 = vld [vmem:[%s6466_s1 + $0x10] sm:$0xff] }
 0x6e3   :  { %v1901_v37 = vadd.f32 %v1900_v33, %v1898_v31  ;;  %1909 = vst.msk [vmem:[%s6467_s8] sm:$0xff] %vm1908_vm6, %v1898_v31  ;;  %v2025_v33 = vsub.f32 1.0, %v2019_v57 }
 0x6e4   :  { %1911 = vst.msk [vmem:[%s6467_s8 + $0x78] sm:$0xff] %vm1910_vm7, %v1898_v31 }
 0x6e5   :  { %4057 = vmatmul.mubr.msk.f32.vlgmr.msra.gmra.mxu1 %vm30_vm0, %v1901_v37  ;;  %v2033_v21 = vmul.f32 %v2025_v33, %v1907_v45 }
 0x6e6   :  { %4060 = vmatpush3.msra.mxu1 %v5664_v42  ;;  %4067 = vmatprep.mubr.msk.f32.mxu1 %vm4748_vm3, %v4747_v35  ;;  %v1998_v17 = vpop.permute.xlu0 %1997 }
 0x6e7   :  { %4061 = vmatprep.subr.mxu1 %v4747_v35 }
 0x6e8   :  { %4062 = vmatpush3.msra.mxu1 %v5671_v58 }
 0x6e9   :  { %4063 = vmatprep.subr.mxu1 %v4747_v35 }
 0x6ea   :  { %4064 = vmatpush3.msra.mxu1 %v5678_v26 }
 0x6eb   :  { %4065 = vmatprep.subr.mxu1 %v4747_v35 }
 0x6ec   :  { %4066 = vmatpush3.msra.mxu1 %v5684_v63 }
 0x6ed   :  { %4070 = vmatprep.subr.mxu1 %v4747_v35 }
 0x7a5   :  { %v1984_v20 = vpop.f32.mrf.mxu1 }
 0x7a6   :  { %v1988_v40 = vadd.f32 %v1984_v20, %v1914_v24 }
 0x7a7   :  { %v4058_v44 = vpop.f32.mrf.mxu1 }
 0x7a8   :  { %4619 = vtanh.f32 %v1988_v40  ;;  %v3898_v3 = vmul.f32 -1.442695, %v1988_v40  ;;  %v2026_v40 = vmul.f32 %v2025_v33, %v1901_v37 }
 0x7aa   :  { %4621 = vpow2.f32 %v3898_v3 }
 0x7b5   :  { %v4620_v8 = vpop.eup %4619 }
 0x7b6   :  { %2002 = vrot.lane.b32.xlu1 %v4620_v8, %s4746_s23 }
 0x7b7   :  { %v4622_v18 = vpop.eup %4621 }
 0x7b8   :  { %v1992_v7 = vadd.f32 1.0, %v4622_v18 }
 0x7ba   :  { %4623 = vrcp.f32 %v1992_v7 }
 0x7c7   :  { %v4624_v28 = vpop.eup %4623 }
 0x7c8   :  { %v2000_v12 = vmul.f32 %v4624_v28, %v1998_v17 }
 0x828   :  { %v2003_v49 = vpop.permute.xlu1 %2002 }
 0x829   :  { %v2005_v50 = vmul.f32 %v4624_v28, %v2003_v49 }
 0x82b   :  { %2007 = vrot.lane.b32.xlu1 %v2005_v50, %s4744_s13 }
 0x89d   :  { %v2008_v22 = vpop.permute.xlu1 %2007 }
 0x89e   :  { %v2010_v34 = vadd.f32 %v2008_v22, %v2000_v12 }
 0x8a0   :  { %4625 = vtanh.f32 %v2010_v34 }
 0x8ad   :  { %v4626_v24 = vpop.eup %4625 }
 0x8ae   :  { %2013 = vrot.lane.b32.xlu0 %v4626_v24, %s4746_s23 }
 0x8b2   :  { %2029 = vrot.lane.b32.xlu0 %v2010_v34, %s4745_s14 }
 0x920   :  { %v2014_v32 = vpop.permute.xlu0 %2013 }
 0x921   :  { %v2016_v41 = vmul.f32 %v4624_v28, %v2014_v32 }
 0x923   :  { %2021 = vrot.lane.b32.xlu1 %v2016_v41, %s4744_s13 }
 0x924   :  { %v2030_v10 = vpop.permute.xlu0 %2029 }
 0x925   :  { %v2032_v13 = vmul.f32 %v2030_v10, %v2019_v57 }
 0x927   :  { %v2034_v31 = vadd.f32 %v2033_v21, %v2032_v13 }
 0x929   :  { %2122 = vrot.lane.b32.xlu0 %v2034_v31, %s4744_s13 }
 0x995   :  { %v2022_v20 = vpop.permute.xlu1 %2021 }
 0x996   :  { %v2024_v44 = vmul.f32 %v2022_v20, %v2019_v57  ;;  %v2143_v57 = vld [vmem:[%s6466_s1 + $0x68] sm:$0xff] }
 0x997   :  { %v2144_v32 = vsel %vm1789_vm5, %v2142_v5, %v2143_v57  ;;  %v5990_v5 = vld [vmem:[%s6466_s1 + $0x18] sm:$0xff]  ;;  %v5995_v57 = vld [vmem:[%s6466_s1 + $0x60] sm:$0xff] }
 0x998   :  { %v2027_v8 = vadd.f32 %v2026_v40, %v2024_v44  ;;  %2035 = vst.msk [vmem:[%s6467_s8 + $0x8] sm:$0xff] %vm1908_vm6, %v2024_v44  ;;  %v2150_v10 = vsub.f32 1.0, %v2144_v32 }
 0x999   :  { %2036 = vst.msk [vmem:[%s6467_s8 + $0x70] sm:$0xff] %vm1910_vm7, %v2024_v44 }
 0x99a   :  { %4068 = vmatmul.mubr.msk.f32.vlgmr.msra.gmra.mxu1 %vm30_vm0, %v2027_v8  ;;  %v2158_v13 = vmul.f32 %v2150_v10, %v2034_v31 }
 0x99b   :  { %4071 = vmatpush3.msra.mxu1 %v5664_v42  ;;  %4078 = vmatprep.mubr.msk.f32.mxu1 %vm4748_vm3, %v4747_v35  ;;  %v2123_v22 = vpop.permute.xlu0 %2122 }
 0x99c   :  { %4072 = vmatprep.subr.mxu1 %v4747_v35 }
 0x99d   :  { %4073 = vmatpush3.msra.mxu1 %v5671_v58 }
 0x99e   :  { %4074 = vmatprep.subr.mxu1 %v4747_v35 }
 0x99f   :  { %4075 = vmatpush3.msra.mxu1 %v5678_v26 }
 0x9a0   :  { %4076 = vmatprep.subr.mxu1 %v4747_v35 }
 0x9a1   :  { %4077 = vmatpush3.msra.mxu1 %v5684_v63 }
 0x9a2   :  { %4092 = vmatprep.subr.mxu1 %v4747_v35 }
 0xa5a   :  { %v2109_v45 = vpop.f32.mrf.mxu1 }
 0xa5b   :  { %v2113_v37 = vadd.f32 %v2109_v45, %v2039_v38  ;;  %v2151_v45 = vmul.f32 %v2150_v10, %v2027_v8 }
 0xa5c   :  { %v4069_v3 = vpop.f32.mrf.mxu1 }
 0xa5d   :  { %4627 = vtanh.f32 %v2113_v37  ;;  %v3900_v7 = vmul.f32 -1.442695, %v2113_v37 }
 0xa5f   :  { %4629 = vpow2.f32 %v3900_v7 }
 0xa6a   :  { %v4628_v18 = vpop.eup %4627 }
 0xa6b   :  { %2127 = vrot.lane.b32.xlu1 %v4628_v18, %s4746_s23 }
 0xa6c   :  { %v4630_v28 = vpop.eup %4629 }
 0xa6d   :  { %v2117_v49 = vadd.f32 1.0, %v4630_v28 }
 0xa6f   :  { %4631 = vrcp.f32 %v2117_v49 }
 0xa7c   :  { %v4632_v50 = vpop.eup %4631 }
 0xa7d   :  { %v2125_v34 = vmul.f32 %v4632_v50, %v2123_v22 }
 0xadd   :  { %v2128_v17 = vpop.permute.xlu1 %2127 }
 0xade   :  { %v2130_v12 = vmul.f32 %v4632_v50, %v2128_v17 }
 0xae0   :  { %2132 = vrot.lane.b32.xlu1 %v2130_v12, %s4744_s13 }
 0xb52   :  { %v2133_v24 = vpop.permute.xlu1 %2132 }
 0xb53   :  { %v2135_v54 = vadd.f32 %v2133_v24, %v2125_v34 }
 0xb55   :  { %4633 = vtanh.f32 %v2135_v54 }
 0xb62   :  { %v4634_v38 = vpop.eup %4633 }
 0xb63   :  { %2138 = vrot.lane.b32.xlu0 %v4634_v38, %s4746_s23 }
 0xb67   :  { %2154 = vrot.lane.b32.xlu0 %v2135_v54, %s4745_s14 }
 0xbd5   :  { %v2139_v41 = vpop.permute.xlu0 %2138 }
 0xbd6   :  { %v2141_v33 = vmul.f32 %v4632_v50, %v2139_v41 }
 0xbd8   :  { %2146 = vrot.lane.b32.xlu1 %v2141_v33, %s4744_s13 }
 0xbd9   :  { %v2155_v21 = vpop.permute.xlu0 %2154 }
 0xbda   :  { %v2157_v20 = vmul.f32 %v2155_v21, %v2144_v32 }
 0xbdc   :  { %v2159_v40 = vadd.f32 %v2158_v13, %v2157_v20 }
 0xbde   :  { %2247 = vrot.lane.b32.xlu0 %v2159_v40, %s4744_s13 }
 0xc4a   :  { %v2147_v44 = vpop.permute.xlu1 %2146 }
 0xc4b   :  { %v2149_v37 = vmul.f32 %v2147_v44, %v2144_v32  ;;  %v2269_v32 = vsel %vm1789_vm5, %v5990_v5, %v5995_v57 }
 0xc4c   :  { %v2275_v10 = vsub.f32 1.0, %v2269_v32 }
 0xc4d   :  { %v2152_v3 = vadd.f32 %v2151_v45, %v2149_v37  ;;  %2160 = vst.msk [vmem:[%s6467_s8 + $0x10] sm:$0xff] %vm1908_vm6, %v2149_v37 }
 0xc4e   :  { %2161 = vst.msk [vmem:[%s6467_s8 + $0x68] sm:$0xff] %vm1910_vm7, %v2149_v37  ;;  %v2283_v13 = vmul.f32 %v2275_v10, %v2159_v40 }
 0xc4f   :  { %4079 = vmatmul.mubr.msk.f32.vlgmr.msra.gmra.mxu1 %vm30_vm0, %v2152_v3  ;;  %v2276_v37 = vmul.f32 %v2275_v10, %v2152_v3 }
 0xc50   :  { %4093 = vmatpush3.msra.mxu1 %v5664_v42  ;;  %4100 = vmatprep.mubr.msk.f32.mxu1 %vm4748_vm3, %v4747_v35  ;;  %v2248_v34 = vpop.permute.xlu0 %2247 }
 0xc51   :  { %4094 = vmatprep.subr.mxu1 %v4747_v35 }
 0xc52   :  { %4095 = vmatpush3.msra.mxu1 %v5671_v58 }
 0xc53   :  { %4096 = vmatprep.subr.mxu1 %v4747_v35 }
 0xc54   :  { %4097 = vmatpush3.msra.mxu1 %v5678_v26 }
 0xc55   :  { %4098 = vmatprep.subr.mxu1 %v4747_v35 }
 0xc56   :  { %4099 = vmatpush3.msra.mxu1 %v5684_v63 }
 0xc57   :  { %4114 = vmatprep.subr.mxu1 %v4747_v35 }
 0xd0f   :  { %v2234_v31 = vpop.f32.mrf.mxu1 }
 0xd10   :  { %v2238_v8 = vadd.f32 %v2234_v31, %v2164_v60 }
 0xd11   :  { %v4080_v18 = vpop.f32.mrf.mxu1 }
 0xd12   :  { %4635 = vtanh.f32 %v2238_v8  ;;  %v3902_v28 = vmul.f32 -1.442695, %v2238_v8 }
 0xd14   :  { %4637 = vpow2.f32 %v3902_v28 }
 0xd1f   :  { %v4636_v7 = vpop.eup %4635 }
 0xd20   :  { %2252 = vrot.lane.b32.xlu1 %v4636_v7, %s4746_s23 }
 0xd21   :  { %v4638_v49 = vpop.eup %4637 }
 0xd22   :  { %v2242_v50 = vadd.f32 1.0, %v4638_v49 }
 0xd24   :  { %4639 = vrcp.f32 %v2242_v50 }
 0xd31   :  { %v4640_v17 = vpop.eup %4639 }
 0xd32   :  { %v2250_v24 = vmul.f32 %v4640_v17, %v2248_v34 }
 0xd92   :  { %v2253_v12 = vpop.permute.xlu1 %2252 }
 0xd93   :  { %v2255_v22 = vmul.f32 %v4640_v17, %v2253_v12 }
 0xd95   :  { %2257 = vrot.lane.b32.xlu1 %v2255_v22, %s4744_s13 }
 0xe07   :  { %v2258_v54 = vpop.permute.xlu1 %2257 }
 0xe08   :  { %v2260_v38 = vadd.f32 %v2258_v54, %v2250_v24 }
 0xe0a   :  { %4641 = vtanh.f32 %v2260_v38 }
 0xe17   :  { %v4642_v60 = vpop.eup %4641 }
 0xe18   :  { %2263 = vrot.lane.b32.xlu0 %v4642_v60, %s4746_s23  ;;  %v6034_v60 = vld [vmem:[%s6466_s1 + $0x20] sm:$0xff] }
 0xe1c   :  { %2279 = vrot.lane.b32.xlu0 %v2260_v38, %s4745_s14 }
 0xe8a   :  { %v2264_v41 = vpop.permute.xlu0 %2263 }
 0xe8b   :  { %v2266_v33 = vmul.f32 %v4640_v17, %v2264_v41 }
 0xe8d   :  { %2271 = vrot.lane.b32.xlu1 %v2266_v33, %s4744_s13 }
 0xe8e   :  { %v2280_v21 = vpop.permute.xlu0 %2279 }
 0xe8f   :  { %v2282_v20 = vmul.f32 %v2280_v21, %v2269_v32 }
 0xe91   :  { %v2284_v44 = vadd.f32 %v2283_v13, %v2282_v20 }
 0xe93   :  { %2372 = vrot.lane.b32.xlu0 %v2284_v44, %s4744_s13 }
 0xeff   :  { %v2272_v45 = vpop.permute.xlu1 %2271 }
 0xf00   :  { %v2274_v31 = vmul.f32 %v2272_v45, %v2269_v32  ;;  %v6039_v32 = vld [vmem:[%s6466_s1 + $0x58] sm:$0xff] }
 0xf01   :  { %v2394_v41 = vsel %vm1789_vm5, %v6034_v60, %v6039_v32 }
 0xf02   :  { %v2277_v8 = vadd.f32 %v2276_v37, %v2274_v31  ;;  %2285 = vst.msk [vmem:[%s6467_s8 + $0x18] sm:$0xff] %vm1908_vm6, %v2274_v31  ;;  %v2400_v21 = vsub.f32 1.0, %v2394_v41 }
 0xf03   :  { %2286 = vst.msk [vmem:[%s6467_s8 + $0x60] sm:$0xff] %vm1910_vm7, %v2274_v31 }
 0xf04   :  { %4090 = vmatmul.mubr.msk.f32.vlgmr.msra.gmra.mxu0 %vm30_vm0, %v2277_v8  ;;  %v2408_v20 = vmul.f32 %v2400_v21, %v2284_v44 }
 0xf05   :  { %4104 = vmatpush3.msra.mxu0 %v5664_v42  ;;  %4111 = vmatprep.mubr.msk.f32.mxu0 %vm4748_vm3, %v4747_v35  ;;  %v2373_v34 = vpop.permute.xlu0 %2372 }
 0xf06   :  { %4105 = vmatprep.subr.mxu0 %v4747_v35 }
 0xf07   :  { %4106 = vmatpush3.msra.mxu0 %v5671_v58 }
 0xf08   :  { %4107 = vmatprep.subr.mxu0 %v4747_v35 }
 0xf09   :  { %4108 = vmatpush3.msra.mxu0 %v5678_v26 }
 0xf0a   :  { %4109 = vmatprep.subr.mxu0 %v4747_v35 }
 0xf0b   :  { %4110 = vmatpush3.msra.mxu0 %v5684_v63 }
 0xf0c   :  { %4125 = vmatprep.subr.mxu0 %v4747_v35 }
 0xfc4   :  { %v2359_v40 = vpop.f32.mrf.mxu0 }
 0xfc5   :  { %v2363_v3 = vadd.f32 %v2359_v40, %v2289_v30  ;;  %v2401_v40 = vmul.f32 %v2400_v21, %v2277_v8 }
 0xfc6   :  { %v4091_v18 = vpop.f32.mrf.mxu0 }
 0xfc7   :  { %4643 = vtanh.f32 %v2363_v3  ;;  %v3904_v28 = vmul.f32 -1.442695, %v2363_v3 }
 0xfc9   :  { %4645 = vpow2.f32 %v3904_v28 }
 0xfd4   :  { %v4644_v7 = vpop.eup %4643 }
 0xfd5   :  { %2377 = vrot.lane.b32.xlu1 %v4644_v7, %s4746_s23 }
 0xfd6   :  { %v4646_v49 = vpop.eup %4645 }
 0xfd7   :  { %v2367_v50 = vadd.f32 1.0, %v4646_v49 }
 0xfd9   :  { %4647 = vrcp.f32 %v2367_v50 }
 0xfe6   :  { %v4648_v17 = vpop.eup %4647 }
 0xfe7   :  { %v2375_v24 = vmul.f32 %v4648_v17, %v2373_v34 }
0x1047   :  { %v2378_v12 = vpop.permute.xlu1 %2377 }
0x1048   :  { %v2380_v22 = vmul.f32 %v4648_v17, %v2378_v12 }
0x104a   :  { %2382 = vrot.lane.b32.xlu1 %v2380_v22, %s4744_s13 }
0x10bc   :  { %v2383_v54 = vpop.permute.xlu1 %2382 }
0x10bd   :  { %v2385_v38 = vadd.f32 %v2383_v54, %v2375_v24 }
0x10bf   :  { %4649 = vtanh.f32 %v2385_v38 }
0x10cc   :  { %v4650_v30 = vpop.eup %4649 }
0x10cd   :  { %2388 = vrot.lane.b32.xlu0 %v4650_v30, %s4746_s23 }
0x10d1   :  { %2404 = vrot.lane.b32.xlu0 %v2385_v38, %s4745_s14 }
0x113f   :  { %v2389_v33 = vpop.permute.xlu0 %2388 }
0x1140   :  { %v2391_v10 = vmul.f32 %v4648_v17, %v2389_v33  ;;  %v6083_v33 = vld [vmem:[%s6466_s1 + $0x50] sm:$0xff] }
0x1142   :  { %2396 = vrot.lane.b32.xlu1 %v2391_v10, %s4744_s13 }
0x1143   :  { %v2405_v13 = vpop.permute.xlu0 %2404 }
0x1144   :  { %v2407_v45 = vmul.f32 %v2405_v13, %v2394_v41 }
0x1146   :  { %v2409_v37 = vadd.f32 %v2408_v20, %v2407_v45 }
0x1148   :  { %2497 = vrot.lane.b32.xlu0 %v2409_v37, %s4744_s13 }
0x11b4   :  { %v2397_v31 = vpop.permute.xlu1 %2396 }
0x11b5   :  { %v2399_v3 = vmul.f32 %v2397_v31, %v2394_v41  ;;  %v6078_v41 = vld [vmem:[%s6466_s1 + $0x28] sm:$0xff] }
0x11b6   :  { %v2519_v10 = vsel %vm1789_vm5, %v6078_v41, %v6083_v33 }
0x11b7   :  { %v2402_v18 = vadd.f32 %v2401_v40, %v2399_v3  ;;  %2410 = vst.msk [vmem:[%s6467_s8 + $0x20] sm:$0xff] %vm1908_vm6, %v2399_v3  ;;  %v2525_v20 = vsub.f32 1.0, %v2519_v10 }
0x11b8   :  { %2411 = vst.msk [vmem:[%s6467_s8 + $0x58] sm:$0xff] %vm1910_vm7, %v2399_v3 }
0x11b9   :  { %4101 = vmatmul.mubr.msk.f32.vlgmr.msra.gmra.mxu1 %vm30_vm0, %v2402_v18  ;;  %v2533_v40 = vmul.f32 %v2525_v20, %v2409_v37 }
0x11ba   :  { %4115 = vmatpush3.msra.mxu1 %v5664_v42  ;;  %4122 = vmatprep.mubr.msk.f32.mxu1 %vm4748_vm3, %v4747_v35  ;;  %v2498_v24 = vpop.permute.xlu0 %2497 }
0x11bb   :  { %4116 = vmatprep.subr.mxu1 %v4747_v35 }
0x11bc   :  { %4117 = vmatpush3.msra.mxu1 %v5671_v58 }
0x11bd   :  { %4118 = vmatprep.subr.mxu1 %v4747_v35 }
0x11be   :  { %4119 = vmatpush3.msra.mxu1 %v5678_v26 }
0x11bf   :  { %4120 = vmatprep.subr.mxu1 %v4747_v35 }
0x11c0   :  { %4121 = vmatpush3.msra.mxu1 %v5684_v63 }
0x11c1   :  { %4136 = vmatprep.subr.mxu1 %v4747_v35 }
0x1279   :  { %v2484_v44 = vpop.f32.mrf.mxu1 }
0x127a   :  { %v2488_v8 = vadd.f32 %v2484_v44, %v2414_v61 }
0x127b   :  { %v4102_v7 = vpop.f32.mrf.mxu1 }
0x127c   :  { %4651 = vtanh.f32 %v2488_v8  ;;  %v3906_v49 = vmul.f32 -1.442695, %v2488_v8  ;;  %v2526_v8 = vmul.f32 %v2525_v20, %v2402_v18 }
0x127e   :  { %4653 = vpow2.f32 %v3906_v49 }
0x1289   :  { %v4652_v28 = vpop.eup %4651 }
0x128a   :  { %2502 = vrot.lane.b32.xlu1 %v4652_v28, %s4746_s23 }
0x128b   :  { %v4654_v50 = vpop.eup %4653 }
0x128c   :  { %v2492_v17 = vadd.f32 1.0, %v4654_v50 }
0x128e   :  { %4655 = vrcp.f32 %v2492_v17 }
0x129b   :  { %v4656_v12 = vpop.eup %4655 }
0x129c   :  { %v2500_v54 = vmul.f32 %v4656_v12, %v2498_v24 }
0x12fc   :  { %v2503_v22 = vpop.permute.xlu1 %2502 }
0x12fd   :  { %v2505_v34 = vmul.f32 %v4656_v12, %v2503_v22 }
0x12ff   :  { %2507 = vrot.lane.b32.xlu1 %v2505_v34, %s4744_s13 }
0x1371   :  { %v2508_v38 = vpop.permute.xlu1 %2507 }
0x1372   :  { %v2510_v30 = vadd.f32 %v2508_v38, %v2500_v54  ;;  %v6122_v38 = vld [vmem:[%s6466_s1 + $0x30] sm:$0xff] }
0x1374   :  { %4657 = vtanh.f32 %v2510_v30 }
0x1381   :  { %v4658_v61 = vpop.eup %4657 }
0x1382   :  { %2513 = vrot.lane.b32.xlu0 %v4658_v61, %s4746_s23 }
0x1386   :  { %2529 = vrot.lane.b32.xlu0 %v2510_v30, %s4745_s14  ;;  %v6127_v30 = vld [vmem:[%s6466_s1 + $0x48] sm:$0xff] }
0x1387   :  { %v2644_v61 = vsel %vm1789_vm5, %v6122_v38, %v6127_v30 }
0x13f4   :  { %v2514_v21 = vpop.permute.xlu0 %2513 }
0x13f5   :  { %v2516_v13 = vmul.f32 %v4656_v12, %v2514_v21 }
0x13f7   :  { %2521 = vrot.lane.b32.xlu1 %v2516_v13, %s4744_s13  ;;  %v2650_v13 = vsub.f32 1.0, %v2644_v61 }
0x13f8   :  { %v2530_v45 = vpop.permute.xlu0 %2529 }
0x13f9   :  { %v2532_v31 = vmul.f32 %v2530_v45, %v2519_v10 }
0x13fb   :  { %v2534_v3 = vadd.f32 %v2533_v40, %v2532_v31 }
0x13fd   :  { %2622 = vrot.lane.b32.xlu0 %v2534_v3, %s4744_s13  ;;  %v2658_v45 = vmul.f32 %v2650_v13, %v2534_v3  ;;  %v6147_v3 = vld [vmem:[%s6464_s6 + $0x18] sm:$0xff] }
0x1469   :  { %v2522_v44 = vpop.permute.xlu1 %2521 }
0x146a   :  { %v2524_v7 = vmul.f32 %v2522_v44, %v2519_v10 }
0x146c   :  { %v2527_v28 = vadd.f32 %v2526_v8, %v2524_v7  ;;  %2535 = vst.msk [vmem:[%s6467_s8 + $0x28] sm:$0xff] %vm1908_vm6, %v2524_v7 }
0x146d   :  { %2536 = vst.msk [vmem:[%s6467_s8 + $0x50] sm:$0xff] %vm1910_vm7, %v2524_v7 }
0x146e   :  { %4112 = vmatmul.mubr.msk.f32.vlgmr.msra.gmra.mxu0 %vm30_vm0, %v2527_v28  ;;  %v2651_v8 = vmul.f32 %v2650_v13, %v2527_v28  ;;  %v6156_v28 = vld [vmem:[%s6464_s6 + $0x10] sm:$0xff]  ;;  %v2768_v13 = vld [vmem:[%s6466_s1 + $0x40] sm:$0xff] }
0x146f   :  { %4126 = vmatpush3.msra.mxu0 %v5664_v42  ;;  %4133 = vmatprep.mubr.msk.f32.mxu0 %vm4748_vm3, %v4747_v35  ;;  %v2623_v22 = vpop.permute.xlu0 %2622 }
0x1470   :  { %4127 = vmatprep.subr.mxu0 %v4747_v35 }
0x1471   :  { %4128 = vmatpush3.msra.mxu0 %v5671_v58 }
0x1472   :  { %4129 = vmatprep.subr.mxu0 %v4747_v35 }
0x1473   :  { %4130 = vmatpush3.msra.mxu0 %v5678_v26 }
0x1474   :  { %4131 = vmatprep.subr.mxu0 %v4747_v35 }
0x1475   :  { %4132 = vmatpush3.msra.mxu0 %v5684_v63 }
0x1476   :  { %4147 = vmatprep.subr.mxu0 %v4747_v35 }
0x152e   :  { %v2609_v37 = vpop.f32.mrf.mxu0 }
0x152f   :  { %v2613_v42 = vadd.f32 %v2609_v37, %v2539_v0 }
0x1530   :  { %v4113_v18 = vpop.f32.mrf.mxu0 }
0x1531   :  { %4659 = vtanh.f32 %v2613_v42  ;;  %v3908_v49 = vmul.f32 -1.442695, %v2613_v42  ;;  %v6163_v42 = vld [vmem:[%s6464_s6 + $0x8] sm:$0xff]  ;;  %v6170_v18 = vld [vmem:[%s6464_s6] sm:$0xff] }
0x1533   :  { %4661 = vpow2.f32 %v3908_v49 }
0x153e   :  { %v4660_v58 = vpop.eup %4659 }
0x153f   :  { %2627 = vrot.lane.b32.xlu1 %v4660_v58, %s4746_s23 }
0x1540   :  { %v4662_v26 = vpop.eup %4661 }
0x1541   :  { %v2617_v50 = vadd.f32 1.0, %v4662_v26 }
0x1543   :  { %4663 = vrcp.f32 %v2617_v50 }
0x1550   :  { %v4664_v63 = vpop.eup %4663 }
0x1551   :  { %v2625_v34 = vmul.f32 %v4664_v63, %v2623_v22 }
0x15b1   :  { %v2628_v17 = vpop.permute.xlu1 %2627 }
0x15b2   :  { %v2630_v12 = vmul.f32 %v4664_v63, %v2628_v17 }
0x15b4   :  { %2632 = vrot.lane.b32.xlu1 %v2630_v12, %s4744_s13 }
0x1626   :  { %v2633_v24 = vpop.permute.xlu1 %2632 }
0x1627   :  { %v2635_v54 = vadd.f32 %v2633_v24, %v2625_v34 }
0x1629   :  { %4665 = vtanh.f32 %v2635_v54 }
0x1636   :  { %v4666_v0 = vpop.eup %4665 }
0x1637   :  { %2638 = vrot.lane.b32.xlu0 %v4666_v0, %s4746_s23 }
0x163b   :  { %2654 = vrot.lane.b32.xlu0 %v2635_v54, %s4745_s14 }
0x16a9   :  { %v2639_v10 = vpop.permute.xlu0 %2638 }
0x16aa   :  { %v2641_v21 = vmul.f32 %v4664_v63, %v2639_v10 }
0x16ac   :  { %2646 = vrot.lane.b32.xlu1 %v2641_v21, %s4744_s13  ;;  %v2767_v21 = vld [vmem:[%s6466_s1 + $0x38] sm:$0xff] }
0x16ad   :  { %v2655_v20 = vpop.permute.xlu0 %2654 }
0x16ae   :  { %v2657_v31 = vmul.f32 %v2655_v20, %v2644_v61  ;;  %v2769_v20 = vsel %vm1789_vm5, %v2767_v21, %v2768_v13 }
0x16b0   :  { %v2659_v40 = vadd.f32 %v2658_v45, %v2657_v31 }
0x16b2   :  { %2747 = vrot.lane.b32.xlu0 %v2659_v40, %s4744_s13 }
0x171e   :  { %v2647_v44 = vpop.permute.xlu1 %2646 }
0x171f   :  { %v2649_v7 = vmul.f32 %v2647_v44, %v2644_v61  ;;  %v2775_v44 = vsub.f32 1.0, %v2769_v20 }
0x1721   :  { %v2652_v37 = vadd.f32 %v2651_v8, %v2649_v7  ;;  %2660 = vst.msk [vmem:[%s6467_s8 + $0x30] sm:$0xff] %vm1908_vm6, %v2649_v7 }
0x1722   :  { %2661 = vst.msk [vmem:[%s6467_s8 + $0x48] sm:$0xff] %vm1910_vm7, %v2649_v7 }
0x1723   :  { %4123 = vmatmul.mubr.msk.f32.vlgmr.msra.gmra.mxu1 %vm30_vm0, %v2652_v37 }
0x1724   :  { %4137 = vmatpush3.msra.mxu1 %v6147_v3  ;;  %4144 = vmatprep.mubr.msk.f32.mxu1 %vm4748_vm3, %v4747_v35  ;;  %v2748_v54 = vpop.permute.xlu0 %2747 }
0x1725   :  { %4138 = vmatprep.subr.mxu1 %v4747_v35 }
0x1726   :  { %4139 = vmatpush3.msra.mxu1 %v6156_v28 }
0x1727   :  { %4140 = vmatprep.subr.mxu1 %v4747_v35 }
0x1728   :  { %4141 = vmatpush3.msra.mxu1 %v6163_v42 }
0x1729   :  { %4142 = vmatprep.subr.mxu1 %v4747_v35 }
0x172a   :  { %4143 = vmatpush3.msra.mxu1 %v6170_v18 }
0x172b   :  { %4158 = vmatprep.subr.mxu1 %v4747_v35 }
0x17e3   :  { %v2734_v58 = vpop.f32.mrf.mxu1 }
0x17e4   :  { %v2738_v49 = vadd.f32 %v2734_v58, %v2664_v6  ;;  %v2783_v58 = vmul.f32 %v2775_v44, %v2659_v40 }
0x17e5   :  { %v4124_v26 = vpop.f32.mrf.mxu1 }
0x17e6   :  { %4667 = vtanh.f32 %v2738_v49  ;;  %v3910_v63 = vmul.f32 -1.442695, %v2738_v49 }
0x17e8   :  { %4669 = vpow2.f32 %v3910_v63 }
0x17f3   :  { %v4668_v50 = vpop.eup %4667 }
0x17f4   :  { %2752 = vrot.lane.b32.xlu1 %v4668_v50, %s4746_s23  ;;  %v2776_v50 = vmul.f32 %v2775_v44, %v2652_v37 }
0x17f5   :  { %v4670_v17 = vpop.eup %4669 }
0x17f6   :  { %v2742_v12 = vadd.f32 1.0, %v4670_v17 }
0x17f8   :  { %4671 = vrcp.f32 %v2742_v12 }
0x1805   :  { %v4672_v22 = vpop.eup %4671 }
0x1806   :  { %v2750_v0 = vmul.f32 %v4672_v22, %v2748_v54 }
0x1866   :  { %v2753_v34 = vpop.permute.xlu1 %2752 }
0x1867   :  { %v2755_v24 = vmul.f32 %v4672_v22, %v2753_v34 }
0x1869   :  { %2757 = vrot.lane.b32.xlu1 %v2755_v24, %s4744_s13 }
0x18db   :  { %v2758_v61 = vpop.permute.xlu1 %2757 }
0x18dc   :  { %v2760_v10 = vadd.f32 %v2758_v61, %v2750_v0 }
0x18de   :  { %4673 = vtanh.f32 %v2760_v10 }
0x18eb   :  { %v4674_v6 = vpop.eup %4673 }
0x18ec   :  { %2763 = vrot.lane.b32.xlu0 %v4674_v6, %s4746_s23 }
0x18f0   :  { %2779 = vrot.lane.b32.xlu0 %v2760_v10, %s4745_s14 }
0x195e   :  { %v2764_v45 = vpop.permute.xlu0 %2763 }
0x195f   :  { %v2766_v31 = vmul.f32 %v4672_v22, %v2764_v45 }
0x1961   :  { %2771 = vrot.lane.b32.xlu1 %v2766_v31, %s4744_s13 }
0x1962   :  { %v2780_v8 = vpop.permute.xlu0 %2779 }
0x1963   :  { %v2782_v7 = vmul.f32 %v2780_v8, %v2769_v20 }
0x1965   :  { %v2784_v49 = vadd.f32 %v2783_v58, %v2782_v7 }
0x1967   :  { %2872 = vrot.lane.b32.xlu0 %v2784_v49, %s4744_s13 }
0x19d3   :  { %v2772_v26 = vpop.permute.xlu1 %2771 }
0x19d4   :  { %v2774_v63 = vmul.f32 %v2772_v26, %v2769_v20 }
0x19d6   :  { %v2777_v17 = vadd.f32 %v2776_v50, %v2774_v63  ;;  %2785 = vst.msk [vmem:[%s6467_s8 + $0x38] sm:$0xff] %vm1908_vm6, %v2774_v63 }
0x19d7   :  { %2786 = vst.msk [vmem:[%s6467_s8 + $0x40] sm:$0xff] %vm1910_vm7, %v2774_v63 }
0x19d8   :  { %4134 = vmatmul.mubr.msk.f32.vlgmr.msra.gmra.mxu0 %vm30_vm0, %v2777_v17 }
0x19d9   :  { %4148 = vmatpush3.msra.mxu0 %v6147_v3  ;;  %4155 = vmatprep.mubr.msk.f32.mxu0 %vm4748_vm3, %v4747_v35  ;;  %v2873_v6 = vpop.permute.xlu0 %2872 }
0x19da   :  { %4149 = vmatprep.subr.mxu0 %v4747_v35 }
0x19db   :  { %4150 = vmatpush3.msra.mxu0 %v6156_v28 }
0x19dc   :  { %4151 = vmatprep.subr.mxu0 %v4747_v35 }
0x19dd   :  { %4152 = vmatpush3.msra.mxu0 %v6163_v42 }
0x19de   :  { %4153 = vmatprep.subr.mxu0 %v4747_v35 }
0x19df   :  { %4154 = vmatpush3.msra.mxu0 %v6170_v18 }
0x19e0   :  { %4169 = vmatprep.subr.mxu0 %v4747_v35 }
0x1a98   :  { %v2859_v40 = vpop.f32.mrf.mxu0 }
0x1a99   :  { %v2863_v37 = vadd.f32 %v2859_v40, %v2789_v14  ;;  %v2894_v14 = vsel %vm1789_vm5, %v2768_v13, %v2767_v21 }
0x1a9a   :  { %v4135_v12 = vpop.f32.mrf.mxu0  ;;  %v2900_v8 = vsub.f32 1.0, %v2894_v14 }
0x1a9b   :  { %4675 = vtanh.f32 %v2863_v37  ;;  %v3912_v34 = vmul.f32 -1.442695, %v2863_v37 }
0x1a9c   :  { %v2908_v58 = vmul.f32 %v2900_v8, %v2784_v49  ;;  %v2901_v40 = vmul.f32 %v2900_v8, %v2777_v17 }
0x1a9d   :  { %4677 = vpow2.f32 %v3912_v34 }
0x1aa8   :  { %v4676_v22 = vpop.eup %4675 }
0x1aa9   :  { %2877 = vrot.lane.b32.xlu1 %v4676_v22, %s4746_s23 }
0x1aaa   :  { %v4678_v24 = vpop.eup %4677 }
0x1aab   :  { %v2867_v54 = vadd.f32 1.0, %v4678_v24 }
0x1aad   :  { %4679 = vrcp.f32 %v2867_v54 }
0x1aba   :  { %v4680_v0 = vpop.eup %4679 }
0x1abb   :  { %v2875_v20 = vmul.f32 %v4680_v0, %v2873_v6 }
0x1b1b   :  { %v2878_v61 = vpop.permute.xlu1 %2877 }
0x1b1c   :  { %v2880_v10 = vmul.f32 %v4680_v0, %v2878_v61 }
0x1b1e   :  { %2882 = vrot.lane.b32.xlu1 %v2880_v10, %s4744_s13 }
0x1b90   :  { %v2883_v45 = vpop.permute.xlu1 %2882 }
0x1b91   :  { %v2885_v53 = vadd.f32 %v2883_v45, %v2875_v20 }
0x1b93   :  { %4681 = vtanh.f32 %v2885_v53 }
0x1ba0   :  { %v4682_v52 = vpop.eup %4681 }
0x1ba1   :  { %2888 = vrot.lane.b32.xlu0 %v4682_v52, %s4746_s23 }
0x1ba5   :  { %2904 = vrot.lane.b32.xlu0 %v2885_v53, %s4745_s14 }
0x1c13   :  { %v2889_v31 = vpop.permute.xlu0 %2888 }
0x1c14   :  { %v2891_v44 = vmul.f32 %v4680_v0, %v2889_v31 }
0x1c16   :  { %2896 = vrot.lane.b32.xlu1 %v2891_v44, %s4744_s13 }
0x1c17   :  { %v2905_v7 = vpop.permute.xlu0 %2904 }
0x1c18   :  { %v2907_v26 = vmul.f32 %v2905_v7, %v2894_v14 }
0x1c1a   :  { %v2909_v50 = vadd.f32 %v2908_v58, %v2907_v26 }
0x1c1c   :  { %2997 = vrot.lane.b32.xlu0 %v2909_v50, %s4744_s13 }
0x1c88   :  { %v2897_v63 = vpop.permute.xlu1 %2896 }
0x1c89   :  { %v2899_v37 = vmul.f32 %v2897_v63, %v2894_v14 }
0x1c8b   :  { %v2902_v12 = vadd.f32 %v2901_v40, %v2899_v37  ;;  %2910 = vst.msk [vmem:[%s6467_s8 + $0x40] sm:$0xff] %vm1908_vm6, %v2899_v37 }
0x1c8c   :  { %2911 = vst.msk [vmem:[%s6467_s8 + $0x38] sm:$0xff] %vm1910_vm7, %v2899_v37 }
0x1c8d   :  { %4145 = vmatmul.mubr.msk.f32.vlgmr.msra.gmra.mxu1 %vm30_vm0, %v2902_v12 }
0x1c8e   :  { %4159 = vmatpush3.msra.mxu1 %v6147_v3  ;;  %4166 = vmatprep.mubr.msk.f32.mxu1 %vm4748_vm3, %v4747_v35  ;;  %v2998_v10 = vpop.permute.xlu0 %2997 }
0x1c8f   :  { %4160 = vmatprep.subr.mxu1 %v4747_v35 }
0x1c90   :  { %4161 = vmatpush3.msra.mxu1 %v6156_v28 }
0x1c91   :  { %4162 = vmatprep.subr.mxu1 %v4747_v35 }
0x1c92   :  { %4163 = vmatpush3.msra.mxu1 %v6163_v42 }
0x1c93   :  { %4164 = vmatprep.subr.mxu1 %v4747_v35 }
0x1c94   :  { %4165 = vmatpush3.msra.mxu1 %v6170_v18 }
0x1c95   :  { %4180 = vmatprep.subr.mxu1 %v4747_v35 }
0x1d4d   :  { %v2984_v21 = vpop.f32.mrf.mxu1 }
0x1d4e   :  { %v2988_v13 = vadd.f32 %v2984_v21, %v2914_v9  ;;  %v3019_v9 = vsel %vm1789_vm5, %v6127_v30, %v6122_v38 }
0x1d4f   :  { %v4146_v49 = vpop.f32.mrf.mxu1  ;;  %v3025_v52 = vsub.f32 1.0, %v3019_v9 }
0x1d50   :  { %4683 = vtanh.f32 %v2988_v13  ;;  %v3914_v22 = vmul.f32 -1.442695, %v2988_v13 }
0x1d51   :  { %v3033_v44 = vmul.f32 %v3025_v52, %v2909_v50  ;;  %v3026_v58 = vmul.f32 %v3025_v52, %v2902_v12 }
0x1d52   :  { %4685 = vpow2.f32 %v3914_v22 }
0x1d5d   :  { %v4684_v17 = vpop.eup %4683 }
0x1d5e   :  { %3002 = vrot.lane.b32.xlu1 %v4684_v17, %s4746_s23 }
0x1d5f   :  { %v4686_v34 = vpop.eup %4685 }
0x1d60   :  { %v2992_v24 = vadd.f32 1.0, %v4686_v34 }
0x1d62   :  { %4687 = vrcp.f32 %v2992_v24 }
0x1d6f   :  { %v4688_v54 = vpop.eup %4687 }
0x1d70   :  { %v3000_v6 = vmul.f32 %v4688_v54, %v2998_v10 }
0x1dd0   :  { %v3003_v0 = vpop.permute.xlu1 %3002 }
0x1dd1   :  { %v3005_v61 = vmul.f32 %v4688_v54, %v3003_v0 }
0x1dd3   :  { %3007 = vrot.lane.b32.xlu1 %v3005_v61, %s4744_s13 }
0x1e45   :  { %v3008_v20 = vpop.permute.xlu1 %3007 }
0x1e46   :  { %v3010_v51 = vadd.f32 %v3008_v20, %v3000_v6 }
0x1e48   :  { %4689 = vtanh.f32 %v3010_v51 }
0x1e55   :  { %v4690_v39 = vpop.eup %4689 }
0x1e56   :  { %3013 = vrot.lane.b32.xlu0 %v4690_v39, %s4746_s23 }
0x1e5a   :  { %3029 = vrot.lane.b32.xlu0 %v3010_v51, %s4745_s14 }
0x1ec8   :  { %v3014_v45 = vpop.permute.xlu0 %3013 }
0x1ec9   :  { %v3016_v53 = vmul.f32 %v4688_v54, %v3014_v45 }
0x1ecb   :  { %3021 = vrot.lane.b32.xlu1 %v3016_v53, %s4744_s13 }
0x1ecc   :  { %v3030_v14 = vpop.permute.xlu0 %3029 }
0x1ecd   :  { %v3032_v31 = vmul.f32 %v3030_v14, %v3019_v9 }
0x1ecf   :  { %v3034_v8 = vadd.f32 %v3033_v44, %v3032_v31 }
0x1ed1   :  { %3122 = vrot.lane.b32.xlu0 %v3034_v8, %s4744_s13 }
0x1f3d   :  { %v3022_v7 = vpop.permute.xlu1 %3021 }
0x1f3e   :  { %v3024_v26 = vmul.f32 %v3022_v7, %v3019_v9 }
0x1f40   :  { %v3027_v63 = vadd.f32 %v3026_v58, %v3024_v26  ;;  %3035 = vst.msk [vmem:[%s6467_s8 + $0x48] sm:$0xff] %vm1908_vm6, %v3024_v26 }
0x1f41   :  { %3036 = vst.msk [vmem:[%s6467_s8 + $0x30] sm:$0xff] %vm1910_vm7, %v3024_v26 }
0x1f42   :  { %4156 = vmatmul.mubr.msk.f32.vlgmr.msra.gmra.mxu0 %vm30_vm0, %v3027_v63 }
0x1f43   :  { %4170 = vmatpush3.msra.mxu0 %v6147_v3  ;;  %4177 = vmatprep.mubr.msk.f32.mxu0 %vm4748_vm3, %v4747_v35  ;;  %v3123_v22 = vpop.permute.xlu0 %3122 }
0x1f44   :  { %4171 = vmatprep.subr.mxu0 %v4747_v35 }
0x1f45   :  { %4172 = vmatpush3.msra.mxu0 %v6156_v28 }
0x1f46   :  { %4173 = vmatprep.subr.mxu0 %v4747_v35 }
0x1f47   :  { %4174 = vmatpush3.msra.mxu0 %v6163_v42 }
0x1f48   :  { %4175 = vmatprep.subr.mxu0 %v4747_v35 }
0x1f49   :  { %4176 = vmatpush3.msra.mxu0 %v6170_v18 }
0x1f4a   :  { %4191 = vmatprep.subr.mxu0 %v4747_v35 }
0x2002   :  { %v3109_v38 = vpop.f32.mrf.mxu0 }
0x2003   :  { %v3113_v30 = vadd.f32 %v3109_v38, %v3039_v23  ;;  %v3144_v23 = vsel %vm1789_vm5, %v6083_v33, %v6078_v41 }
0x2004   :  { %v4157_v50 = vpop.f32.mrf.mxu0  ;;  %v3150_v61 = vsub.f32 1.0, %v3144_v23 }
0x2005   :  { %4691 = vtanh.f32 %v3113_v30  ;;  %v3916_v37 = vmul.f32 -1.442695, %v3113_v30 }
0x2006   :  { %v3158_v6 = vmul.f32 %v3150_v61, %v3034_v8  ;;  %v3151_v9 = vmul.f32 %v3150_v61, %v3027_v63 }
0x2007   :  { %4693 = vpow2.f32 %v3916_v37 }
0x2012   :  { %v4692_v40 = vpop.eup %4691 }
0x2013   :  { %3127 = vrot.lane.b32.xlu1 %v4692_v40, %s4746_s23 }
0x2014   :  { %v4694_v12 = vpop.eup %4693 }
0x2015   :  { %v3117_v21 = vadd.f32 1.0, %v4694_v12 }
0x2017   :  { %4695 = vrcp.f32 %v3117_v21 }
0x2024   :  { %v4696_v13 = vpop.eup %4695 }
0x2025   :  { %v3125_v34 = vmul.f32 %v4696_v13, %v3123_v22 }
0x2085   :  { %v3128_v49 = vpop.permute.xlu1 %3127 }
0x2086   :  { %v3130_v17 = vmul.f32 %v4696_v13, %v3128_v49 }
0x2088   :  { %3132 = vrot.lane.b32.xlu1 %v3130_v17, %s4744_s13 }
0x20fa   :  { %v3133_v24 = vpop.permute.xlu1 %3132 }
0x20fb   :  { %v3135_v56 = vadd.f32 %v3133_v24, %v3125_v34 }
0x20fd   :  { %4697 = vtanh.f32 %v3135_v56 }
0x210a   :  { %v4698_v29 = vpop.eup %4697 }
0x210b   :  { %3138 = vrot.lane.b32.xlu0 %v4698_v29, %s4746_s23 }
0x210f   :  { %3154 = vrot.lane.b32.xlu0 %v3135_v56, %s4745_s14 }
0x217d   :  { %v3139_v54 = vpop.permute.xlu0 %3138 }
0x217e   :  { %v3141_v0 = vmul.f32 %v4696_v13, %v3139_v54 }
0x2180   :  { %3146 = vrot.lane.b32.xlu1 %v3141_v0, %s4744_s13 }
0x2181   :  { %v3155_v10 = vpop.permute.xlu0 %3154 }
0x2182   :  { %v3157_v20 = vmul.f32 %v3155_v10, %v3144_v23 }
0x2184   :  { %v3159_v51 = vadd.f32 %v3158_v6, %v3157_v20 }
0x2186   :  { %3247 = vrot.lane.b32.xlu0 %v3159_v51, %s4744_s13 }
0x21f2   :  { %v3147_v39 = vpop.permute.xlu1 %3146 }
0x21f3   :  { %v3149_v45 = vmul.f32 %v3147_v39, %v3144_v23 }
0x21f5   :  { %v3152_v53 = vadd.f32 %v3151_v9, %v3149_v45  ;;  %3160 = vst.msk [vmem:[%s6467_s8 + $0x50] sm:$0xff] %vm1908_vm6, %v3149_v45 }
0x21f6   :  { %3161 = vst.msk [vmem:[%s6467_s8 + $0x28] sm:$0xff] %vm1910_vm7, %v3149_v45 }
0x21f7   :  { %4167 = vmatmul.mubr.msk.f32.vlgmr.msra.gmra.mxu1 %vm30_vm0, %v3152_v53 }
0x21f8   :  { %4181 = vmatpush3.msra.mxu1 %v6147_v3  ;;  %4188 = vmatprep.mubr.msk.f32.mxu1 %vm4748_vm3, %v4747_v35  ;;  %v3248_v63 = vpop.permute.xlu0 %3247 }
0x21f9   :  { %4182 = vmatprep.subr.mxu1 %v4747_v35 }
0x21fa   :  { %4183 = vmatpush3.msra.mxu1 %v6156_v28 }
0x21fb   :  { %4184 = vmatprep.subr.mxu1 %v4747_v35 }
0x21fc   :  { %4185 = vmatpush3.msra.mxu1 %v6163_v42 }
0x21fd   :  { %4186 = vmatprep.subr.mxu1 %v4747_v35 }
0x21fe   :  { %4187 = vmatpush3.msra.mxu1 %v6170_v18 }
0x21ff   :  { %4202 = vmatprep.subr.mxu1 %v4747_v35 }
0x22b7   :  { %v3234_v41 = vpop.f32.mrf.mxu1 }
0x22b8   :  { %v3238_v33 = vadd.f32 %v3234_v41, %v3164_v16  ;;  %v3269_v16 = vsel %vm1789_vm5, %v6039_v32, %v6034_v60 }
0x22b9   :  { %v4168_v52 = vpop.f32.mrf.mxu1  ;;  %v3275_v37 = vsub.f32 1.0, %v3269_v16 }
0x22ba   :  { %4699 = vtanh.f32 %v3238_v33  ;;  %v3918_v31 = vmul.f32 -1.442695, %v3238_v33 }
0x22bb   :  { %v3283_v13 = vmul.f32 %v3275_v37, %v3159_v51  ;;  %v3276_v22 = vmul.f32 %v3275_v37, %v3152_v53 }
0x22bc   :  { %4701 = vpow2.f32 %v3918_v31 }
0x22c7   :  { %v4700_v14 = vpop.eup %4699 }
0x22c8   :  { %3252 = vrot.lane.b32.xlu1 %v4700_v14, %s4746_s23 }
0x22c9   :  { %v4702_v44 = vpop.eup %4701 }
0x22ca   :  { %v3242_v8 = vadd.f32 1.0, %v4702_v44 }
0x22cc   :  { %4703 = vrcp.f32 %v3242_v8 }
0x22d9   :  { %v4704_v7 = vpop.eup %4703 }
0x22da   :  { %v3250_v38 = vmul.f32 %v4704_v7, %v3248_v63 }
0x233a   :  { %v3253_v58 = vpop.permute.xlu1 %3252 }
0x233b   :  { %v3255_v26 = vmul.f32 %v4704_v7, %v3253_v58 }
0x233d   :  { %3257 = vrot.lane.b32.xlu1 %v3255_v26, %s4744_s13 }
0x23af   :  { %v3258_v30 = vpop.permute.xlu1 %3257 }
0x23b0   :  { %v3260_v27 = vadd.f32 %v3258_v30, %v3250_v38 }
0x23b2   :  { %4705 = vtanh.f32 %v3260_v27 }
0x23bf   :  { %v4706_v47 = vpop.eup %4705 }
0x23c0   :  { %3263 = vrot.lane.b32.xlu0 %v4706_v47, %s4746_s23  ;;  %v3518_v47 = vld [vmem:[%s6466_s1 + $0x10] sm:$0xff] }
0x23c4   :  { %3279 = vrot.lane.b32.xlu0 %v3260_v27, %s4745_s14 }
0x2432   :  { %v3264_v50 = vpop.permute.xlu0 %3263 }
0x2433   :  { %v3266_v40 = vmul.f32 %v4704_v7, %v3264_v50 }
0x2435   :  { %3271 = vrot.lane.b32.xlu1 %v3266_v40, %s4744_s13 }
0x2436   :  { %v3280_v12 = vpop.permute.xlu0 %3279 }
0x2437   :  { %v3282_v21 = vmul.f32 %v3280_v12, %v3269_v16 }
0x2439   :  { %v3284_v49 = vadd.f32 %v3283_v13, %v3282_v21 }
0x243b   :  { %3372 = vrot.lane.b32.xlu0 %v3284_v49, %s4744_s13 }
0x24a7   :  { %v3272_v17 = vpop.permute.xlu1 %3271 }
0x24a8   :  { %v3274_v34 = vmul.f32 %v3272_v17, %v3269_v16 }
0x24aa   :  { %v3277_v24 = vadd.f32 %v3276_v22, %v3274_v34  ;;  %3285 = vst.msk [vmem:[%s6467_s8 + $0x58] sm:$0xff] %vm1908_vm6, %v3274_v34 }
0x24ab   :  { %3286 = vst.msk [vmem:[%s6467_s8 + $0x20] sm:$0xff] %vm1910_vm7, %v3274_v34 }
0x24ac   :  { %4178 = vmatmul.mubr.msk.f32.vlgmr.msra.gmra.mxu0 %vm30_vm0, %v3277_v24 }
0x24ad   :  { %4192 = vmatpush3.msra.mxu0 %v6147_v3  ;;  %4199 = vmatprep.mubr.msk.f32.mxu0 %vm4748_vm3, %v4747_v35  ;;  %v3373_v20 = vpop.permute.xlu0 %3372 }
0x24ae   :  { %4193 = vmatprep.subr.mxu0 %v4747_v35 }
0x24af   :  { %4194 = vmatpush3.msra.mxu0 %v6156_v28 }
0x24b0   :  { %4195 = vmatprep.subr.mxu0 %v4747_v35 }
0x24b1   :  { %4196 = vmatpush3.msra.mxu0 %v6163_v42 }
0x24b2   :  { %4197 = vmatprep.subr.mxu0 %v4747_v35 }
0x24b3   :  { %4198 = vmatpush3.msra.mxu0 %v6170_v18 }
0x256c   :  { %v3359_v60 = vpop.f32.mrf.mxu0 }
0x256d   :  { %v3363_v32 = vadd.f32 %v3359_v60, %v3289_v11  ;;  %v3394_v11 = vsel %vm1789_vm5, %v5995_v57, %v5990_v5 }
0x256e   :  { %v4179_v56 = vpop.f32.mrf.mxu0  ;;  %v3400_v53 = vsub.f32 1.0, %v3394_v11 }
0x256f   :  { %4707 = vtanh.f32 %v3363_v32  ;;  %v3920_v23 = vmul.f32 -1.442695, %v3363_v32 }
0x2570   :  { %v3408_v33 = vmul.f32 %v3400_v53, %v3284_v49  ;;  %v3401_v44 = vmul.f32 %v3400_v53, %v3277_v24 }
0x2571   :  { %4709 = vpow2.f32 %v3920_v23 }
0x257c   :  { %v4708_v29 = vpop.eup %4707 }
0x257d   :  { %3377 = vrot.lane.b32.xlu1 %v4708_v29, %s4746_s23 }
0x257e   :  { %v4710_v54 = vpop.eup %4709 }
0x257f   :  { %v3367_v0 = vadd.f32 1.0, %v4710_v54 }
0x2581   :  { %4711 = vrcp.f32 %v3367_v0 }
0x258e   :  { %v4712_v61 = vpop.eup %4711 }
0x258f   :  { %v3375_v51 = vmul.f32 %v4712_v61, %v3373_v20 }
0x25ef   :  { %v3378_v10 = vpop.permute.xlu1 %3377 }
0x25f0   :  { %v3380_v6 = vmul.f32 %v4712_v61, %v3378_v10 }
0x25f2   :  { %3382 = vrot.lane.b32.xlu1 %v3380_v6, %s4744_s13 }
0x2664   :  { %v3383_v39 = vpop.permute.xlu1 %3382 }
0x2665   :  { %v3385_v62 = vadd.f32 %v3383_v39, %v3375_v51 }
0x2667   :  { %4713 = vtanh.f32 %v3385_v62 }
0x2674   :  { %v4714_v43 = vpop.eup %4713 }
0x2675   :  { %3388 = vrot.lane.b32.xlu0 %v4714_v43, %s4746_s23 }
0x2679   :  { %3404 = vrot.lane.b32.xlu0 %v3385_v62, %s4745_s14  ;;  %v3643_v62 = vld [vmem:[%s6466_s1 + $0x8] sm:$0xff] }
0x26e7   :  { %v3389_v9 = vpop.permute.xlu0 %3388 }
0x26e8   :  { %v3391_v45 = vmul.f32 %v4712_v61, %v3389_v9 }
0x26ea   :  { %3396 = vrot.lane.b32.xlu1 %v3391_v45, %s4744_s13 }
0x26eb   :  { %v3405_v41 = vpop.permute.xlu0 %3404 }
0x26ec   :  { %v3407_v52 = vmul.f32 %v3405_v41, %v3394_v11 }
0x26ee   :  { %v3409_v14 = vadd.f32 %v3408_v33, %v3407_v52 }
0x26f0   :  { %3497 = vrot.lane.b32.xlu0 %v3409_v14, %s4744_s13 }
0x275c   :  { %v3397_v31 = vpop.permute.xlu1 %3396 }
0x275d   :  { %v3399_v8 = vmul.f32 %v3397_v31, %v3394_v11 }
0x275f   :  { %v3402_v7 = vadd.f32 %v3401_v44, %v3399_v8  ;;  %3410 = vst.msk [vmem:[%s6467_s8 + $0x60] sm:$0xff] %vm1908_vm6, %v3399_v8 }
0x2760   :  { %3411 = vst.msk [vmem:[%s6467_s8 + $0x18] sm:$0xff] %vm1910_vm7, %v3399_v8 }
0x2761   :  { %4189 = vmatmul.mubr.msk.f32.vlgmr.msra.gmra.mxu1 %vm30_vm0, %v3402_v7 }
0x2762   :  { %4203 = vmatpush3.msra.mxu1 %v6147_v3  ;;  %4210 = vmatprep.mubr.msk.f32.mxu1 %vm4748_vm3, %v4747_v35  ;;  %v3498_v38 = vpop.permute.xlu0 %3497 }
0x2763   :  { %4204 = vmatprep.subr.mxu1 %v4747_v35 }
0x2764   :  { %4205 = vmatpush3.msra.mxu1 %v6156_v28 }
0x2765   :  { %4206 = vmatprep.subr.mxu1 %v4747_v35 }
0x2766   :  { %4207 = vmatpush3.msra.mxu1 %v6163_v42 }
0x2767   :  { %4208 = vmatprep.subr.mxu1 %v4747_v35 }
0x2768   :  { %4209 = vmatpush3.msra.mxu1 %v6170_v18 }
0x2821   :  { %v3484_v5 = vpop.f32.mrf.mxu1 }
0x2822   :  { %v3488_v57 = vadd.f32 %v3484_v5, %v3414_v2  ;;  %v3517_v2 = vld [vmem:[%s6466_s1 + $0x68] sm:$0xff] }
0x2823   :  { %v4190_v3 = vpop.f32.mrf.mxu1  ;;  %v3519_v16 = vsel %vm1789_vm5, %v3517_v2, %v3518_v47 }
0x2824   :  { %4715 = vtanh.f32 %v3488_v57  ;;  %v3922_v28 = vmul.f32 -1.442695, %v3488_v57  ;;  %v3525_v37 = vsub.f32 1.0, %v3519_v16 }
0x2826   :  { %4717 = vpow2.f32 %v3922_v28  ;;  %v3533_v13 = vmul.f32 %v3525_v37, %v3409_v14  ;;  %v3526_v22 = vmul.f32 %v3525_v37, %v3402_v7 }
0x2831   :  { %v4716_v58 = vpop.eup %4715 }
0x2832   :  { %3502 = vrot.lane.b32.xlu1 %v4716_v58, %s4746_s23 }
0x2833   :  { %v4718_v26 = vpop.eup %4717 }
0x2834   :  { %v3492_v42 = vadd.f32 1.0, %v4718_v26 }
0x2836   :  { %4719 = vrcp.f32 %v3492_v42 }
0x2843   :  { %v4720_v35 = vpop.eup %4719 }
0x2844   :  { %v3500_v30 = vmul.f32 %v4720_v35, %v3498_v38 }
0x28a4   :  { %v3503_v63 = vpop.permute.xlu1 %3502 }
0x28a5   :  { %v3505_v18 = vmul.f32 %v4720_v35, %v3503_v63 }
0x28a7   :  { %3507 = vrot.lane.b32.xlu1 %v3505_v18, %s4744_s13 }
0x2919   :  { %v3508_v27 = vpop.permute.xlu1 %3507 }
0x291a   :  { %v3510_v48 = vadd.f32 %v3508_v27, %v3500_v30  ;;  %v3767_v27 = vld [vmem:[%s6466_s1 + $0x78] sm:$0xff] }
0x291c   :  { %4721 = vtanh.f32 %v3510_v48 }
0x2929   :  { %v4722_v25 = vpop.eup %4721 }
0x292a   :  { %3513 = vrot.lane.b32.xlu0 %v4722_v25, %s4746_s23 }
0x292e   :  { %3529 = vrot.lane.b32.xlu0 %v3510_v48, %s4745_s14  ;;  %v3768_v48 = vld [vmem:[%s6466_s1] sm:$0xff] }
0x292f   :  { %v3769_v25 = vsel %vm1789_vm5, %v3767_v27, %v3768_v48 }
0x299c   :  { %v3514_v50 = vpop.permute.xlu0 %3513 }
0x299d   :  { %v3516_v40 = vmul.f32 %v4720_v35, %v3514_v50 }
0x299f   :  { %3521 = vrot.lane.b32.xlu1 %v3516_v40, %s4744_s13 }
0x29a0   :  { %v3530_v12 = vpop.permute.xlu0 %3529 }
0x29a1   :  { %v3532_v21 = vmul.f32 %v3530_v12, %v3519_v16 }
0x29a3   :  { %v3534_v49 = vadd.f32 %v3533_v13, %v3532_v21 }
0x29a5   :  { %3622 = vrot.lane.b32.xlu0 %v3534_v49, %s4744_s13 }
0x2a11   :  { %v3522_v17 = vpop.permute.xlu1 %3521 }
0x2a12   :  { %v3524_v34 = vmul.f32 %v3522_v17, %v3519_v16 }
0x2a14   :  { %v3527_v24 = vadd.f32 %v3526_v22, %v3524_v34  ;;  %3535 = vst.msk [vmem:[%s6467_s8 + $0x68] sm:$0xff] %vm1908_vm6, %v3524_v34 }
0x2a15   :  { %3536 = vst.msk [vmem:[%s6467_s8 + $0x10] sm:$0xff] %vm1910_vm7, %v3524_v34 }
0x2a16   :  { %4200 = vmatmul.mubr.msk.f32.vlgmr.msra.gmra.mxu0 %vm30_vm0, %v3527_v24 }
0x2a17   :  { %v3623_v20 = vpop.permute.xlu0 %3622 }
0x2ad6   :  { %v3609_v60 = vpop.f32.mrf.mxu0 }
0x2ad7   :  { %v3613_v32 = vadd.f32 %v3609_v60, %v3539_v1  ;;  %v3642_v1 = vld [vmem:[%s6466_s1 + $0x70] sm:$0xff] }
0x2ad8   :  { %v4201_v56 = vpop.f32.mrf.mxu0  ;;  %v3644_v43 = vsel %vm1789_vm5, %v3642_v1, %v3643_v62 }
0x2ad9   :  { %4723 = vtanh.f32 %v3613_v32  ;;  %v3924_v23 = vmul.f32 -1.442695, %v3613_v32  ;;  %v3650_v45 = vsub.f32 1.0, %v3644_v43 }
0x2adb   :  { %4725 = vpow2.f32 %v3924_v23  ;;  %v3658_v41 = vmul.f32 %v3650_v45, %v3534_v49  ;;  %v3651_v31 = vmul.f32 %v3650_v45, %v3527_v24 }
0x2ae6   :  { %v4724_v29 = vpop.eup %4723 }
0x2ae7   :  { %3627 = vrot.lane.b32.xlu1 %v4724_v29, %s4746_s23 }
0x2ae8   :  { %v4726_v54 = vpop.eup %4725 }
0x2ae9   :  { %v3617_v0 = vadd.f32 1.0, %v4726_v54 }
0x2aeb   :  { %4727 = vrcp.f32 %v3617_v0 }
0x2af8   :  { %v4728_v61 = vpop.eup %4727 }
0x2af9   :  { %v3625_v51 = vmul.f32 %v4728_v61, %v3623_v20 }
0x2b59   :  { %v3628_v10 = vpop.permute.xlu1 %3627 }
0x2b5a   :  { %v3630_v6 = vmul.f32 %v4728_v61, %v3628_v10 }
0x2b5c   :  { %3632 = vrot.lane.b32.xlu1 %v3630_v6, %s4744_s13 }
0x2bce   :  { %v3633_v39 = vpop.permute.xlu1 %3632 }
0x2bcf   :  { %v3635_v59 = vadd.f32 %v3633_v39, %v3625_v51 }
0x2bd1   :  { %4729 = vtanh.f32 %v3635_v59 }
0x2bde   :  { %v4730_v19 = vpop.eup %4729 }
0x2bdf   :  { %3638 = vrot.lane.b32.xlu0 %v4730_v19, %s4746_s23 }
0x2be3   :  { %3654 = vrot.lane.b32.xlu0 %v3635_v59, %s4745_s14 }
0x2c51   :  { %v3639_v11 = vpop.permute.xlu0 %3638 }
0x2c52   :  { %v3641_v9 = vmul.f32 %v4728_v61, %v3639_v11 }
0x2c54   :  { %3646 = vrot.lane.b32.xlu1 %v3641_v9, %s4744_s13 }
0x2c55   :  { %v3655_v53 = vpop.permute.xlu0 %3654 }
0x2c56   :  { %v3657_v33 = vmul.f32 %v3655_v53, %v3644_v43 }
0x2c58   :  { %v3659_v52 = vadd.f32 %v3658_v41, %v3657_v33 }
0x2c5a   :  { %3747 = vrot.lane.b32.xlu0 %v3659_v52, %s4744_s13 }
0x2cc6   :  { %v3647_v14 = vpop.permute.xlu1 %3646 }
0x2cc7   :  { %v3649_v44 = vmul.f32 %v3647_v14, %v3644_v43 }
0x2cc9   :  { %v3652_v8 = vadd.f32 %v3651_v31, %v3649_v44  ;;  %3660 = vst.msk [vmem:[%s6467_s8 + $0x70] sm:$0xff] %vm1908_vm6, %v3649_v44 }
0x2cca   :  { %3661 = vst.msk [vmem:[%s6467_s8 + $0x8] sm:$0xff] %vm1910_vm7, %v3649_v44 }
0x2ccb   :  { %4211 = vmatmul.mubr.msk.f32.vlgmr.msra.gmra.mxu1 %vm30_vm0, %v3652_v8 }
0x2ccc   :  { %v3748_v4 = vpop.permute.xlu0 %3747 }
0x2d8b   :  { %v3734_v7 = vpop.f32.mrf.mxu1 }
0x2d8c   :  { %v3738_v5 = vadd.f32 %v3734_v7, %v3664_v36 }
0x2d8d   :  { %v4212_v57 = vpop.f32.mrf.mxu1 }
0x2d8e   :  { %4731 = vtanh.f32 %v3738_v5  ;;  %v3926_v58 = vmul.f32 -1.442695, %v3738_v5 }
0x2d90   :  { %4733 = vpow2.f32 %v3926_v58 }
0x2d9b   :  { %v4732_v3 = vpop.eup %4731 }
0x2d9c   :  { %3752 = vrot.lane.b32.xlu1 %v4732_v3, %s4746_s23 }
0x2d9d   :  { %v4734_v28 = vpop.eup %4733 }
0x2d9e   :  { %v3742_v26 = vadd.f32 1.0, %v4734_v28 }
0x2da0   :  { %4735 = vrcp.f32 %v3742_v26 }
0x2dad   :  { %v4736_v42 = vpop.eup %4735 }
0x2dae   :  { %v3750_v18 = vmul.f32 %v4736_v42, %v3748_v4 }
0x2e0e   :  { %v3753_v35 = vpop.permute.xlu1 %3752 }
0x2e0f   :  { %v3755_v63 = vmul.f32 %v4736_v42, %v3753_v35 }
0x2e11   :  { %3757 = vrot.lane.b32.xlu1 %v3755_v63, %s4744_s13 }
0x2e83   :  { %v3758_v38 = vpop.permute.xlu1 %3757 }
0x2e84   :  { %v3760_v55 = vadd.f32 %v3758_v38, %v3750_v18 }
0x2e86   :  { %4737 = vtanh.f32 %v3760_v55 }
0x2e93   :  { %v4738_v46 = vpop.eup %4737 }
0x2e94   :  { %3763 = vrot.lane.b32.xlu0 %v4738_v46, %s4746_s23 }
0x2f06   :  { %v3764_v36 = vpop.permute.xlu0 %3763 }
0x2f07   :  { %v3766_v30 = vmul.f32 %v4736_v42, %v3764_v36 }
0x2f09   :  { %3771 = vrot.lane.b32.xlu1 %v3766_v30, %s4744_s13 }
0x2f7b   :  { %v3772_v2 = vpop.permute.xlu1 %3771 }
0x2f7c   :  { %v3774_v47 = vmul.f32 %v3772_v2, %v3769_v25 }
0x2f7e   :  { %3775 = vst.msk [vmem:[%s6467_s8 + $0x78] sm:$0xff] %vm1908_vm6, %v3774_v47 }
0x2f7f   :  { %3776 = vst.msk [vmem:[%s6467_s8] sm:$0xff] %vm1910_vm7, %v3774_v47 }

</bundles_post_ra>
